<compile_context>
chip_gen: v7x
topology: tpu7x:2x2x1
jax: 0.10.0
libtpu: 0.0.40
codegen_flags: <defaults>
</compile_context>

<pallas_src>
import jax
import jax.numpy as jnp
from jax.experimental import pallas as pl
from jax.experimental.pallas import tpu as pltpu

# ---------------- static configuration (model_params / params) ----------------
BATCH = 2
SEQ = 8
RNN_N_INPUTS = 16
RNN_N_NEURONS = 32          # unidirectional, 1 layer, tanh
NUM_ANT = 4                 # params['num_antennas']
NUM_USERS = 4               # params['num_users']
NUM_REFL = 8                # params['num_reflectors']
N_OUTPUTS_IRS = 2 * NUM_REFL
NUM_ITS_WMMSE = 2
NUM_ITS_PGD = 2
TOTAL_POWER = 1.0
SIGMA0 = 1.0
SIGMA2 = float(SIGMA0 ** 2)
SQRTP = float(TOTAL_POWER ** 0.5)

TMP1 = NUM_ANT * NUM_REFL    # 32
TMP2 = NUM_ANT * NUM_USERS   # 16
TMP3 = NUM_REFL * NUM_USERS  # 32
TMP = TMP1 + TMP2 + TMP3     # 80
N_CH = 2 * TMP               # 160

# fused dense-output column layout (width 176)
G_OFF = N_OUTPUTS_IRS              # 16 : 4 rows x [G_re(8)  | G_im(8) ]
RT_OFF = G_OFF + 2 * TMP1          # 80 : 4 rows x [Rt_re(8) | Rt_im(8)]
DT_OFF = RT_OFF + 2 * TMP3         # 144: 4 rows x [Dt_re(4) | Dt_im(4)]
DENSE_W = DT_OFF + 2 * TMP2        # 176

BS_HALF = NUM_USERS * NUM_ANT      # 16
BS_W = 2 * BS_HALF                 # 32
OUT_W = BS_W + N_OUTPUTS_IRS       # 48


# ------------------------------- small helpers --------------------------------
def _mm(a, b):
    return jnp.dot(a, b, preferred_element_type=jnp.float32)


_DN_T = (((0,), (0,)), ((), ()))   # contract dim 0 of both  -> a^T @ b
_DN_1 = (((1,), (1,)), ((), ()))   # contract dim 1 of both  -> a @ b^T


def _dgT(a, b):
    return jax.lax.dot_general(a, b, _DN_T, preferred_element_type=jnp.float32)


def _dg1(a, b):
    return jax.lax.dot_general(a, b, _DN_1, preferred_element_type=jnp.float32)


# ------------------------------- fused kernel ---------------------------------
def fused_kernel(x_ref, win_ref, whh_ref, brnn_ref, wout_ref, bout_ref,
                 bf0r_ref, bf0i_ref, lr_ref,
                 out_ref, dense_scr, mat_scr, bt_scr):
    # ---------------- RNN (fully unrolled, x-projections off the h-chain) -----
    w_in = win_ref[...]            # (I, H)
    w_hh = whh_ref[...]            # (H, H)
    b_rnn = brnn_ref[...]          # (1, H)
    xw = [_mm(x_ref[:, t * RNN_N_INPUTS:(t + 1) * RNN_N_INPUTS], w_in)
          for t in range(SEQ)]     # each (B, H); independent of h
    h = jnp.tanh(xw[0] + b_rnn)    # initial hidden state is zero
    for t in range(1, SEQ):
        h = jnp.tanh(xw[t] + _mm(h, w_hh) + b_rnn)

    # ---------------- fused output Linear layers ------------------------------
    dense = _mm(h, wout_ref[...]) + bout_ref[...]      # (B, 176)
    dense_scr[...] = dense                             # park in VMEM scratch

    # ---------------- IRS phase normalization ---------------------------------
    re = dense_scr[:, 0:NUM_REFL]                      # (B, 8)
    im = dense_scr[:, NUM_REFL:2 * NUM_REFL]
    inv = jax.lax.rsqrt(re * re + im * im)
    thr = re * inv
    thi = im * inv
    out_ref[:, BS_W:BS_W + NUM_REFL] = thr             # out[:, 32:40]
    out_ref[:, BS_W + NUM_REFL:OUT_W] = thi            # out[:, 40:48]

    nu, nt = NUM_USERS, NUM_ANT
    row = jax.lax.broadcasted_iota(jnp.int32, (nu, nu), 0)
    col = jax.lax.broadcasted_iota(jnp.int32, (nu, nu), 1)
    eye = (row == col).astype(jnp.float32)

    # ---------------- per-batch channel composition + unfolded WMMSE ----------
    for b in range(BATCH):
        # regather the channel matrices (lane chunks -> sublane rows via VMEM)
        for t in range(nt):        # rows 0..3 : [G_re | G_im]       (NT, 2*NR)
            mat_scr[b, t:t + 1, :] = dense_scr[b:b + 1,
                                               G_OFF + 16 * t:G_OFF + 16 * t + 16]
        for u in range(nu):        # rows 4..7 : [Rt_re | Rt_im]     (NU, 2*NR)
            mat_scr[b, 4 + u:5 + u, :] = dense_scr[b:b + 1,
                                                   RT_OFF + 16 * u:RT_OFF + 16 * u + 16]
        for u in range(nu):        # rows 8..11: [Dt_re(4) | Dt_im(4)]
            mat_scr[b, 8 + u:9 + u, 0:8] = dense_scr[b:b + 1,
                                                     DT_OFF + 8 * u:DT_OFF + 8 * u + 8]

        Gr = mat_scr[b, 0:4, 0:8]      # G   (NT, NR)
        Gi = mat_scr[b, 0:4, 8:16]
        Rtr = mat_scr[b, 4:8, 0:8]     # R^T (NU, NR)
        Rti = mat_scr[b, 4:8, 8:16]
        Dtr = mat_scr[b, 8:12, 0:4]    # D^T (NU, NT)
        Dti = mat_scr[b, 8:12, 4:8]

        thr_b = out_ref[b:b + 1, BS_W:BS_W + NUM_REFL]          # (1, NR)
        thi_b = out_ref[b:b + 1, BS_W + NUM_REFL:OUT_W]

        # R^T diag(theta)
        RTr = Rtr * thr_b - Rti * thi_b
        RTi = Rtr * thi_b + Rti * thr_b
        # H^T := (D + G diag(theta) R)^T  == torch's "H"  (NU, NT)
        Hr = Dtr + _dg1(RTr, Gr) - _dg1(RTi, Gi)
        Hi = Dti + _dg1(RTr, Gi) + _dg1(RTi, Gr)

        # carry Bt = BF^T (NU, NT) so the output rows are lane-contiguous
        Br = bf0r_ref[...]
        Bi = bf0i_ref[...]

        for i in range(NUM_ITS_WMMSE):
            # prod[u,v] = sum_t conj(H^T)[u,t] * Bt[v,t]   -> (NU, NU)
            Pr = _dg1(Hr, Br) + _dg1(Hi, Bi)
            Pi = _dg1(Hr, Bi) - _dg1(Hi, Br)
            abs_sq = Pr * Pr + Pi * Pi
            diag_r = jnp.sum(Pr * eye, axis=1, keepdims=True)        # (NU,1)
            diag_i = jnp.sum(Pi * eye, axis=1, keepdims=True)
            diag_sq = jnp.sum(abs_sq * eye, axis=1, keepdims=True)
            sum1 = jnp.sum(abs_sq, axis=1, keepdims=True)

            denom = sum1 + SIGMA2
            inv_den = pl.reciprocal(denom, approx=True)
            Uir = diag_r * inv_den
            Uii = diag_i * inv_den
            Wi = denom * pl.reciprocal(sum1 - diag_sq + SIGMA2, approx=True)
            temp = (Uir * Uir + Uii * Uii) * Wi                      # (NU,1)

            # A^T[s,t] = sum_u conj(H^T)[u,s] * temp[u] * H^T[u,t]   -> (NT,NT)
            Hrt = Hr * temp
            Hit = Hi * temp
            Atr = _dgT(Hr, Hrt) + _dgT(Hi, Hit)
            Ati = _dgT(Hr, Hit) - _dgT(Hi, Hrt)

            uwr = Uir * Wi
            uwi = Uii * Wi
            T2r = Hr * uwr - Hi * uwi          # (H_T * Ui*Wi)^T
            T2i = Hr * uwi + Hi * uwr

            for j in range(NUM_ITS_PGD):
                ABr = _mm(Br, Atr) - _mm(Bi, Ati)
                ABi = _mm(Br, Ati) + _mm(Bi, Atr)
                Gradr = 2.0 * (ABr - T2r)
                Gradi = 2.0 * (ABi - T2i)
                step = lr_ref[i * NUM_ITS_PGD + j]
                Br = Br - step * Gradr
                Bi = Bi - step * Gradi
                nrm = jnp.sqrt(jnp.sum(Br * Br + Bi * Bi))
                scale = SQRTP / (SQRTP + jnp.maximum(0.0, nrm - SQRTP))
                Br = Br * scale
                Bi = Bi * scale

        # ---- pack BF^T (row-major) straight into the output row --------------
        bt_scr[b, :, 0:4] = Br
        bt_scr[b, :, 4:8] = Bi
        for u in range(nu):
            out_ref[b:b + 1, 4 * u:4 * u + 4] = bt_scr[b, u:u + 1, 0:4]
            out_ref[b:b + 1, BS_HALF + 4 * u:BS_HALF + 4 * u + 4] = \
                bt_scr[b, u:u + 1, 4:8]


_VMEM_SPEC = pl.BlockSpec(memory_space=pltpu.MemorySpace.VMEM)
_SMEM_SPEC = pl.BlockSpec(memory_space=pltpu.MemorySpace.SMEM)

_FUSED = pl.pallas_call(
    fused_kernel,
    out_shape=jax.ShapeDtypeStruct((BATCH, OUT_W), jnp.float32),
    in_specs=[_VMEM_SPEC] * 8 + [_SMEM_SPEC],
    out_specs=pl.BlockSpec(memory_space=pltpu.MemorySpace.VMEM),
    scratch_shapes=[
        pltpu.VMEM((BATCH, DENSE_W), jnp.float32),      # dense layer output
        pltpu.VMEM((BATCH, 12, 16), jnp.float32),       # regathered G / R^T / D^T
        pltpu.VMEM((BATCH, NUM_USERS, 8), jnp.float32),  # BF^T (re | im)
    ],
)


# -------------------------------- full forward --------------------------------
def forward(x, kp):
    x2 = x.reshape(BATCH, SEQ * RNN_N_INPUTS)            # free (contiguous) reshape
    out = _FUSED(x2, kp['w_in'], kp['w_hh'], kp['b_rnn'], kp['w_out'],
                 kp['b_out'], kp['bf0t_r'], kp['bf0t_i'], kp['lr_flat'])
    norm_bs = out[:, :BS_W]
    norm_irs = out[:, BS_W:]
    return {'out_BS': norm_bs, 'out_IRS': norm_irs, 'out': out, 'in': x}


# --------------------- parameter preparation (done once) ----------------------
def prepare_params(p):
    """Pre-permute / fuse the weights into the kernel's column layout."""
    perm = []
    for t in range(NUM_ANT):                       # G rows  [re | im]
        perm += [t * NUM_REFL + r for r in range(NUM_REFL)]
        perm += [TMP1 + t * NUM_REFL + r for r in range(NUM_REFL)]
    base_r = 2 * TMP1 + 2 * TMP2                   # R block start (96)
    for u in range(NUM_USERS):                     # R^T rows [re | im]
        perm += [base_r + r * NUM_USERS + u for r in range(NUM_REFL)]
        perm += [base_r + TMP3 + r * NUM_USERS + u for r in range(NUM_REFL)]
    base_d = 2 * TMP1                              # D block start (64)
    for u in range(NUM_USERS):                     # D^T rows [re | im]
        perm += [base_d + t * NUM_USERS + u for t in range(NUM_ANT)]
        perm += [base_d + TMP2 + t * NUM_USERS + u for t in range(NUM_ANT)]
    perm = jnp.asarray(perm, dtype=jnp.int32)

    w_out = jnp.concatenate([p['wirs'], p['wch'][:, perm]], axis=1)   # (32, 176)
    b_out = jnp.concatenate([p['birs'], p['bch'][:, perm]], axis=1)   # (1, 176)
    return dict(
        w_in=p['wih_t'], w_hh=p['whh_t'], b_rnn=p['b'],
        w_out=w_out, b_out=b_out,
        bf0t_r=jnp.transpose(p['bf0r']), bf0t_i=jnp.transpose(p['bf0i']),
        lr_flat=p['lr'].reshape(-1),
    )


# --------------------------- pure-JAX reference (check) -----------------------
def reference_forward(x, p):
    B, T, _ = x.shape
    h = jnp.zeros((B, RNN_N_NEURONS), jnp.float32)
    for t in range(T):
        h = jnp.tanh(x[:, t, :] @ p['wih_t'] + h @ p['whh_t'] + p['b'][0])
    out_irs = h @ p['wirs'] + p['birs'][0]
    out_ch = h @ p['wch'] + p['bch'][0]

    re = out_irs[:, :NUM_REFL]
    im = out_irs[:, NUM_REFL:]
    factor = jnp.sqrt(re ** 2 + im ** 2)
    norm_irs = jnp.concatenate([re / factor, im / factor], axis=1)
    theta = (re / factor) + 1j * (im / factor)

    G_raw = out_ch[:, :2 * TMP1]
    D_raw = out_ch[:, 2 * TMP1:2 * (TMP1 + TMP2)]
    R_raw = out_ch[:, 2 * (TMP1 + TMP2):]
    G = (G_raw[:, :TMP1] + 1j * G_raw[:, TMP1:]).reshape(B, NUM_ANT, NUM_REFL)
    D = (D_raw[:, :TMP2] + 1j * D_raw[:, TMP2:]).reshape(B, NUM_ANT, NUM_USERS)
    R = (R_raw[:, :TMP3] + 1j * R_raw[:, TMP3:]).reshape(B, NUM_REFL, NUM_USERS)

    diag_theta = theta[:, :, None] * jnp.eye(NUM_REFL, dtype=theta.dtype)
    H = D + G @ diag_theta @ R
    H = jnp.transpose(H, (0, 2, 1))
    Hconj = jnp.conj(H)
    H_T = jnp.transpose(H, (0, 2, 1))

    BF = p['bf0r'] + 1j * p['bf0i']
    for i in range(NUM_ITS_WMMSE):
        prod = Hconj @ BF
        prod_diag = jnp.diagonal(prod, axis1=1, axis2=2)
        abs_sq = jnp.abs(prod) ** 2
        abs_sq_diag = jnp.diagonal(abs_sq, axis1=1, axis2=2)
        sum1 = jnp.sum(abs_sq, axis=2)
        Ui = prod_diag / (sum1 + SIGMA2)
        Wi = (sum1 + SIGMA2) / (sum1 - abs_sq_diag + SIGMA2)
        temp = (jnp.abs(Ui) ** 2 * Wi)[:, None, :]
        A = (H_T * temp) @ Hconj
        for j in range(NUM_ITS_PGD):
            grad = 2 * (A @ BF - H_T * (Ui * Wi)[:, None, :])
            BF = BF - p['lr'][i, j] * grad
            norm = jnp.linalg.norm(BF, axis=(1, 2))
            BF = SQRTP * BF / (SQRTP + jnp.maximum(0.0, norm - SQRTP))[:, None, None]

    BF = jnp.transpose(BF, (0, 2, 1)).reshape(B, NUM_USERS * NUM_ANT)
    norm_bs = jnp.concatenate([jnp.real(BF), jnp.imag(BF)], axis=1)
    out = jnp.concatenate([norm_bs, norm_irs], axis=1)
    return {'out_BS': norm_bs, 'out_IRS': norm_irs, 'out': out}


# ----------------------------- parameter creation -----------------------------
def init_params(key):
    ks = jax.random.split(key, 10)
    s = 0.1
    wih_t = s * jax.random.normal(ks[0], (RNN_N_INPUTS, RNN_N_NEURONS), jnp.float32)
    whh_t = s * jax.random.normal(ks[1], (RNN_N_NEURONS, RNN_N_NEURONS), jnp.float32)
    b = s * jax.random.normal(ks[2], (1, RNN_N_NEURONS), jnp.float32)   # b_ih + b_hh
    wirs = s * jax.random.normal(ks[3], (RNN_N_NEURONS, N_OUTPUTS_IRS), jnp.float32)
    birs = s * jax.random.normal(ks[4], (1, N_OUTPUTS_IRS), jnp.float32)
    wch = s * jax.random.normal(ks[5], (RNN_N_NEURONS, N_CH), jnp.float32)
    bch = s * jax.random.normal(ks[6], (1, N_CH), jnp.float32)
    # BF_init: complex gaussian, normalized to Frobenius norm, scaled by sqrt(P)
    bf_re = jax.random.normal(ks[7], (NUM_ANT, NUM_USERS), jnp.float32) / jnp.sqrt(2.0)
    bf_im = jax.random.normal(ks[8], (NUM_ANT, NUM_USERS), jnp.float32) / jnp.sqrt(2.0)
    fro = jnp.sqrt(jnp.sum(bf_re ** 2 + bf_im ** 2))
    bf0r = SQRTP * bf_re / fro
    bf0i = SQRTP * bf_im / fro
    lr = jnp.ones((NUM_ITS_WMMSE, NUM_ITS_PGD), jnp.float32)            # constant 1.0
    return dict(wih_t=wih_t, whh_t=whh_t, b=b, wirs=wirs, birs=birs,
                wch=wch, bch=bch, bf0r=bf0r, bf0i=bf0i, lr=lr)


# ------------------------------------ main ------------------------------------
if __name__ == "__main__":
    params = init_params(jax.random.PRNGKey(0))
    kparams = prepare_params(params)
    x = jax.random.normal(jax.random.PRNGKey(1), (BATCH, SEQ, RNN_N_INPUTS),
                          jnp.float32)

    result = jax.jit(forward)(x, kparams)
    jax.block_until_ready(result)

    ref = reference_forward(x, params)
    err = float(jnp.max(jnp.abs(result['out'] - ref['out'])))
    assert err < 5e-2, f"mismatch vs reference: {err}"
    print("KERNEL_OK")
</pallas_src>

<mosaic_0001>
module attributes {stable_mosaic.version = 11 : i64} {
  func.func @fused_kernel(%arg0: memref<2x128xf32, #tpu.memory_space<vmem>>, %arg1: memref<16x32xf32, #tpu.memory_space<vmem>>, %arg2: memref<32x32xf32, #tpu.memory_space<vmem>>, %arg3: memref<1x32xf32, #tpu.memory_space<vmem>>, %arg4: memref<32x176xf32, #tpu.memory_space<vmem>>, %arg5: memref<1x176xf32, #tpu.memory_space<vmem>>, %arg6: memref<4x4xf32, #tpu.memory_space<vmem>>, %arg7: memref<4x4xf32, #tpu.memory_space<vmem>>, %arg8: memref<4xf32, #tpu.memory_space<smem>>, %arg9: memref<2x48xf32, #tpu.memory_space<vmem>>, %arg10: memref<2x176xf32, #tpu.memory_space<vmem>>, %arg11: memref<2x12x16xf32, #tpu.memory_space<vmem>>, %arg12: memref<2x4x8xf32, #tpu.memory_space<vmem>>) attributes {dimension_semantics = [], scalar_prefetch = 0 : i64, scratch_operands = 3 : i64, tpu.core_type = #tpu.core_type<tc>} {
    %c0 = arith.constant 0 : index
    %c0_0 = arith.constant 0 : index
    %0 = vector.load %arg1[%c0, %c0_0] : memref<16x32xf32, #tpu.memory_space<vmem>>, vector<16x32xf32>
    %c0_1 = arith.constant 0 : index
    %c0_2 = arith.constant 0 : index
    %1 = vector.load %arg2[%c0_1, %c0_2] : memref<32x32xf32, #tpu.memory_space<vmem>>, vector<32x32xf32>
    %c0_3 = arith.constant 0 : index
    %c0_4 = arith.constant 0 : index
    %2 = vector.load %arg3[%c0_3, %c0_4] : memref<1x32xf32, #tpu.memory_space<vmem>>, vector<1x32xf32>
    %c0_5 = arith.constant 0 : index
    %c0_6 = arith.constant 0 : index
    %3 = vector.load %arg0[%c0_5, %c0_6] : memref<2x128xf32, #tpu.memory_space<vmem>>, vector<2x16xf32>
    %cst = arith.constant dense<0.000000e+00> : vector<2x32xf32>
    %4 = tpu.matmul %3, %0, %cst {dimension_numbers = #tpu.dot_dimension_numbers<[1], [0], [0], [1], [0, 0, 1, 1], [], []>} : vector<2x16xf32>, vector<16x32xf32>, vector<2x32xf32> -> vector<2x32xf32>
    %c0_7 = arith.constant 0 : index
    %c16 = arith.constant 16 : index
    %5 = vector.load %arg0[%c0_7, %c16] : memref<2x128xf32, #tpu.memory_space<vmem>>, vector<2x16xf32>
    %cst_8 = arith.constant dense<0.000000e+00> : vector<2x32xf32>
    %6 = tpu.matmul %5, %0, %cst_8 {dimension_numbers = #tpu.dot_dimension_numbers<[1], [0], [0], [1], [0, 0, 1, 1], [], []>} : vector<2x16xf32>, vector<16x32xf32>, vector<2x32xf32> -> vector<2x32xf32>
    %c0_9 = arith.constant 0 : index
    %c32 = arith.constant 32 : index
    %7 = vector.load %arg0[%c0_9, %c32] : memref<2x128xf32, #tpu.memory_space<vmem>>, vector<2x16xf32>
    %cst_10 = arith.constant dense<0.000000e+00> : vector<2x32xf32>
    %8 = tpu.matmul %7, %0, %cst_10 {dimension_numbers = #tpu.dot_dimension_numbers<[1], [0], [0], [1], [0, 0, 1, 1], [], []>} : vector<2x16xf32>, vector<16x32xf32>, vector<2x32xf32> -> vector<2x32xf32>
    %c0_11 = arith.constant 0 : index
    %c48 = arith.constant 48 : index
    %9 = vector.load %arg0[%c0_11, %c48] : memref<2x128xf32, #tpu.memory_space<vmem>>, vector<2x16xf32>
    %cst_12 = arith.constant dense<0.000000e+00> : vector<2x32xf32>
    %10 = tpu.matmul %9, %0, %cst_12 {dimension_numbers = #tpu.dot_dimension_numbers<[1], [0], [0], [1], [0, 0, 1, 1], [], []>} : vector<2x16xf32>, vector<16x32xf32>, vector<2x32xf32> -> vector<2x32xf32>
    %c0_13 = arith.constant 0 : index
    %c64 = arith.constant 64 : index
    %11 = vector.load %arg0[%c0_13, %c64] : memref<2x128xf32, #tpu.memory_space<vmem>>, vector<2x16xf32>
    %cst_14 = arith.constant dense<0.000000e+00> : vector<2x32xf32>
    %12 = tpu.matmul %11, %0, %cst_14 {dimension_numbers = #tpu.dot_dimension_numbers<[1], [0], [0], [1], [0, 0, 1, 1], [], []>} : vector<2x16xf32>, vector<16x32xf32>, vector<2x32xf32> -> vector<2x32xf32>
    %c0_15 = arith.constant 0 : index
    %c80 = arith.constant 80 : index
    %13 = vector.load %arg0[%c0_15, %c80] : memref<2x128xf32, #tpu.memory_space<vmem>>, vector<2x16xf32>
    %cst_16 = arith.constant dense<0.000000e+00> : vector<2x32xf32>
    %14 = tpu.matmul %13, %0, %cst_16 {dimension_numbers = #tpu.dot_dimension_numbers<[1], [0], [0], [1], [0, 0, 1, 1], [], []>} : vector<2x16xf32>, vector<16x32xf32>, vector<2x32xf32> -> vector<2x32xf32>
    %c0_17 = arith.constant 0 : index
    %c96 = arith.constant 96 : index
    %15 = vector.load %arg0[%c0_17, %c96] : memref<2x128xf32, #tpu.memory_space<vmem>>, vector<2x16xf32>
    %cst_18 = arith.constant dense<0.000000e+00> : vector<2x32xf32>
    %16 = tpu.matmul %15, %0, %cst_18 {dimension_numbers = #tpu.dot_dimension_numbers<[1], [0], [0], [1], [0, 0, 1, 1], [], []>} : vector<2x16xf32>, vector<16x32xf32>, vector<2x32xf32> -> vector<2x32xf32>
    %c0_19 = arith.constant 0 : index
    %c112 = arith.constant 112 : index
    %17 = vector.load %arg0[%c0_19, %c112] : memref<2x128xf32, #tpu.memory_space<vmem>>, vector<2x16xf32>
    %cst_20 = arith.constant dense<0.000000e+00> : vector<2x32xf32>
    %18 = tpu.matmul %17, %0, %cst_20 {dimension_numbers = #tpu.dot_dimension_numbers<[1], [0], [0], [1], [0, 0, 1, 1], [], []>} : vector<2x16xf32>, vector<16x32xf32>, vector<2x32xf32> -> vector<2x32xf32>
    %19 = vector.broadcast %2 : vector<1x32xf32> to vector<2x32xf32>
    %20 = arith.addf %4, %19 : vector<2x32xf32>
    %21 = math.tanh %20 : vector<2x32xf32>
    %cst_21 = arith.constant dense<0.000000e+00> : vector<2x32xf32>
    %22 = tpu.matmul %21, %1, %cst_21 {dimension_numbers = #tpu.dot_dimension_numbers<[1], [0], [0], [1], [0, 0, 1, 1], [], []>} : vector<2x32xf32>, vector<32x32xf32>, vector<2x32xf32> -> vector<2x32xf32>
    %23 = arith.addf %6, %22 : vector<2x32xf32>
    %24 = vector.broadcast %2 : vector<1x32xf32> to vector<2x32xf32>
    %25 = arith.addf %23, %24 : vector<2x32xf32>
    %26 = math.tanh %25 : vector<2x32xf32>
    %cst_22 = arith.constant dense<0.000000e+00> : vector<2x32xf32>
    %27 = tpu.matmul %26, %1, %cst_22 {dimension_numbers = #tpu.dot_dimension_numbers<[1], [0], [0], [1], [0, 0, 1, 1], [], []>} : vector<2x32xf32>, vector<32x32xf32>, vector<2x32xf32> -> vector<2x32xf32>
    %28 = arith.addf %8, %27 : vector<2x32xf32>
    %29 = vector.broadcast %2 : vector<1x32xf32> to vector<2x32xf32>
    %30 = arith.addf %28, %29 : vector<2x32xf32>
    %31 = math.tanh %30 : vector<2x32xf32>
    %cst_23 = arith.constant dense<0.000000e+00> : vector<2x32xf32>
    %32 = tpu.matmul %31, %1, %cst_23 {dimension_numbers = #tpu.dot_dimension_numbers<[1], [0], [0], [1], [0, 0, 1, 1], [], []>} : vector<2x32xf32>, vector<32x32xf32>, vector<2x32xf32> -> vector<2x32xf32>
    %33 = arith.addf %10, %32 : vector<2x32xf32>
    %34 = vector.broadcast %2 : vector<1x32xf32> to vector<2x32xf32>
    %35 = arith.addf %33, %34 : vector<2x32xf32>
    %36 = math.tanh %35 : vector<2x32xf32>
    %cst_24 = arith.constant dense<0.000000e+00> : vector<2x32xf32>
    %37 = tpu.matmul %36, %1, %cst_24 {dimension_numbers = #tpu.dot_dimension_numbers<[1], [0], [0], [1], [0, 0, 1, 1], [], []>} : vector<2x32xf32>, vector<32x32xf32>, vector<2x32xf32> -> vector<2x32xf32>
    %38 = arith.addf %12, %37 : vector<2x32xf32>
    %39 = vector.broadcast %2 : vector<1x32xf32> to vector<2x32xf32>
    %40 = arith.addf %38, %39 : vector<2x32xf32>
    %41 = math.tanh %40 : vector<2x32xf32>
    %cst_25 = arith.constant dense<0.000000e+00> : vector<2x32xf32>
    %42 = tpu.matmul %41, %1, %cst_25 {dimension_numbers = #tpu.dot_dimension_numbers<[1], [0], [0], [1], [0, 0, 1, 1], [], []>} : vector<2x32xf32>, vector<32x32xf32>, vector<2x32xf32> -> vector<2x32xf32>
    %43 = arith.addf %14, %42 : vector<2x32xf32>
    %44 = vector.broadcast %2 : vector<1x32xf32> to vector<2x32xf32>
    %45 = arith.addf %43, %44 : vector<2x32xf32>
    %46 = math.tanh %45 : vector<2x32xf32>
    %cst_26 = arith.constant dense<0.000000e+00> : vector<2x32xf32>
    %47 = tpu.matmul %46, %1, %cst_26 {dimension_numbers = #tpu.dot_dimension_numbers<[1], [0], [0], [1], [0, 0, 1, 1], [], []>} : vector<2x32xf32>, vector<32x32xf32>, vector<2x32xf32> -> vector<2x32xf32>
    %48 = arith.addf %16, %47 : vector<2x32xf32>
    %49 = vector.broadcast %2 : vector<1x32xf32> to vector<2x32xf32>
    %50 = arith.addf %48, %49 : vector<2x32xf32>
    %51 = math.tanh %50 : vector<2x32xf32>
    %cst_27 = arith.constant dense<0.000000e+00> : vector<2x32xf32>
    %52 = tpu.matmul %51, %1, %cst_27 {dimension_numbers = #tpu.dot_dimension_numbers<[1], [0], [0], [1], [0, 0, 1, 1], [], []>} : vector<2x32xf32>, vector<32x32xf32>, vector<2x32xf32> -> vector<2x32xf32>
    %53 = arith.addf %18, %52 : vector<2x32xf32>
    %54 = vector.broadcast %2 : vector<1x32xf32> to vector<2x32xf32>
    %55 = arith.addf %53, %54 : vector<2x32xf32>
    %56 = math.tanh %55 : vector<2x32xf32>
    %c0_28 = arith.constant 0 : index
    %c0_29 = arith.constant 0 : index
    %57 = vector.load %arg4[%c0_28, %c0_29] : memref<32x176xf32, #tpu.memory_space<vmem>>, vector<32x176xf32>
    %cst_30 = arith.constant dense<0.000000e+00> : vector<2x176xf32>
    %58 = tpu.matmul %56, %57, %cst_30 {dimension_numbers = #tpu.dot_dimension_numbers<[1], [0], [0], [1], [0, 0, 1, 1], [], []>} : vector<2x32xf32>, vector<32x176xf32>, vector<2x176xf32> -> vector<2x176xf32>
    %c0_31 = arith.constant 0 : index
    %c0_32 = arith.constant 0 : index
    %59 = vector.load %arg5[%c0_31, %c0_32] : memref<1x176xf32, #tpu.memory_space<vmem>>, vector<1x176xf32>
    %60 = vector.broadcast %59 : vector<1x176xf32> to vector<2x176xf32>
    %61 = arith.addf %58, %60 : vector<2x176xf32>
    %c0_33 = arith.constant 0 : index
    %c0_34 = arith.constant 0 : index
    %62 = vector.load %arg10[%c0_33, %c0_34] : memref<2x176xf32, #tpu.memory_space<vmem>>, vector<2x176xf32>
    tpu.vector_store %arg10[%c0_33, %c0_34], %61 {strides = array<i32>} : memref<2x176xf32, #tpu.memory_space<vmem>>, vector<2x176xf32>,
    %c0_35 = arith.constant 0 : index
    %c0_36 = arith.constant 0 : index
    %63 = vector.load %arg10[%c0_35, %c0_36] : memref<2x176xf32, #tpu.memory_space<vmem>>, vector<2x8xf32>
    %c0_37 = arith.constant 0 : index
    %c8 = arith.constant 8 : index
    %64 = vector.load %arg10[%c0_37, %c8] : memref<2x176xf32, #tpu.memory_space<vmem>>, vector<2x8xf32>
    %65 = arith.mulf %63, %63 : vector<2x8xf32>
    %66 = arith.mulf %64, %64 : vector<2x8xf32>
    %67 = arith.addf %65, %66 : vector<2x8xf32>
    %68 = math.rsqrt %67 : vector<2x8xf32>
    %69 = arith.mulf %63, %68 : vector<2x8xf32>
    %70 = arith.mulf %64, %68 : vector<2x8xf32>
    %c0_38 = arith.constant 0 : index
    %c32_39 = arith.constant 32 : index
    %71 = vector.load %arg9[%c0_38, %c32_39] : memref<2x48xf32, #tpu.memory_space<vmem>>, vector<2x8xf32>
    tpu.vector_store %arg9[%c0_38, %c32_39], %69 {strides = array<i32>} : memref<2x48xf32, #tpu.memory_space<vmem>>, vector<2x8xf32>,
    %c0_40 = arith.constant 0 : index
    %c40 = arith.constant 40 : index
    %72 = vector.load %arg9[%c0_40, %c40] : memref<2x48xf32, #tpu.memory_space<vmem>>, vector<2x8xf32>
    tpu.vector_store %arg9[%c0_40, %c40], %70 {strides = array<i32>} : memref<2x48xf32, #tpu.memory_space<vmem>>, vector<2x8xf32>,
    %73 = tpu.iota {dimensions = array<i32: 0>} : vector<4x4xi32>
    %74 = tpu.iota {dimensions = array<i32: 1>} : vector<4x4xi32>
    %75 = arith.cmpi eq, %73, %74 : vector<4x4xi32>
    %76 = arith.extui %75 : vector<4x4xi1> to vector<4x4xi32>
    %77 = arith.sitofp %76 : vector<4x4xi32> to vector<4x4xf32>
    %c0_41 = arith.constant 0 : index
    %c16_42 = arith.constant 16 : index
    %78 = vector.load %arg10[%c0_41, %c16_42] : memref<2x176xf32, #tpu.memory_space<vmem>>, vector<1x16xf32>
    %c0_43 = arith.constant 0 : index
    %c0_44 = arith.constant 0 : index
    %c0_45 = arith.constant 0 : index
    %79 = vector.load %arg11[%c0_43, %c0_44, %c0_45] : memref<2x12x16xf32, #tpu.memory_space<vmem>>, vector<1x1x16xf32>
    %80 = vector.shape_cast %79 : vector<1x1x16xf32> to vector<1x16xf32>
    %81 = vector.shape_cast %78 : vector<1x16xf32> to vector<1x1x16xf32>
    tpu.vector_store %arg11[%c0_43, %c0_44, %c0_45], %81 {strides = array<i32>} : memref<2x12x16xf32, #tpu.memory_space<vmem>>, vector<1x1x16xf32>,
    %c0_46 = arith.constant 0 : index
    %c32_47 = arith.constant 32 : index
    %82 = vector.load %arg10[%c0_46, %c32_47] : memref<2x176xf32, #tpu.memory_space<vmem>>, vector<1x16xf32>
    %c0_48 = arith.constant 0 : index
    %c1 = arith.constant 1 : index
    %c0_49 = arith.constant 0 : index
    %83 = vector.load %arg11[%c0_48, %c1, %c0_49] : memref<2x12x16xf32, #tpu.memory_space<vmem>>, vector<1x1x16xf32>
    %84 = vector.shape_cast %83 : vector<1x1x16xf32> to vector<1x16xf32>
    %85 = vector.shape_cast %82 : vector<1x16xf32> to vector<1x1x16xf32>
    tpu.vector_store %arg11[%c0_48, %c1, %c0_49], %85 {strides = array<i32>} : memref<2x12x16xf32, #tpu.memory_space<vmem>>, vector<1x1x16xf32>,
    %c0_50 = arith.constant 0 : index
    %c48_51 = arith.constant 48 : index
    %86 = vector.load %arg10[%c0_50, %c48_51] : memref<2x176xf32, #tpu.memory_space<vmem>>, vector<1x16xf32>
    %c0_52 = arith.constant 0 : index
    %c2 = arith.constant 2 : index
    %c0_53 = arith.constant 0 : index
    %87 = vector.load %arg11[%c0_52, %c2, %c0_53] : memref<2x12x16xf32, #tpu.memory_space<vmem>>, vector<1x1x16xf32>
    %88 = vector.shape_cast %87 : vector<1x1x16xf32> to vector<1x16xf32>
    %89 = vector.shape_cast %86 : vector<1x16xf32> to vector<1x1x16xf32>
    tpu.vector_store %arg11[%c0_52, %c2, %c0_53], %89 {strides = array<i32>} : memref<2x12x16xf32, #tpu.memory_space<vmem>>, vector<1x1x16xf32>,
    %c0_54 = arith.constant 0 : index
    %c64_55 = arith.constant 64 : index
    %90 = vector.load %arg10[%c0_54, %c64_55] : memref<2x176xf32, #tpu.memory_space<vmem>>, vector<1x16xf32>
    %c0_56 = arith.constant 0 : index
    %c3 = arith.constant 3 : index
    %c0_57 = arith.constant 0 : index
    %91 = vector.load %arg11[%c0_56, %c3, %c0_57] : memref<2x12x16xf32, #tpu.memory_space<vmem>>, vector<1x1x16xf32>
    %92 = vector.shape_cast %91 : vector<1x1x16xf32> to vector<1x16xf32>
    %93 = vector.shape_cast %90 : vector<1x16xf32> to vector<1x1x16xf32>
    tpu.vector_store %arg11[%c0_56, %c3, %c0_57], %93 {strides = array<i32>} : memref<2x12x16xf32, #tpu.memory_space<vmem>>, vector<1x1x16xf32>,
    %c0_58 = arith.constant 0 : index
    %c80_59 = arith.constant 80 : index
    %94 = vector.load %arg10[%c0_58, %c80_59] : memref<2x176xf32, #tpu.memory_space<vmem>>, vector<1x16xf32>
    %c0_60 = arith.constant 0 : index
    %c4 = arith.constant 4 : index
    %c0_61 = arith.constant 0 : index
    %95 = vector.load %arg11[%c0_60, %c4, %c0_61] : memref<2x12x16xf32, #tpu.memory_space<vmem>>, vector<1x1x16xf32>
    %96 = vector.shape_cast %95 : vector<1x1x16xf32> to vector<1x16xf32>
    %97 = vector.shape_cast %94 : vector<1x16xf32> to vector<1x1x16xf32>
    tpu.vector_store %arg11[%c0_60, %c4, %c0_61], %97 {strides = array<i32>} : memref<2x12x16xf32, #tpu.memory_space<vmem>>, vector<1x1x16xf32>,
    %c0_62 = arith.constant 0 : index
    %c96_63 = arith.constant 96 : index
    %98 = vector.load %arg10[%c0_62, %c96_63] : memref<2x176xf32, #tpu.memory_space<vmem>>, vector<1x16xf32>
    %c0_64 = arith.constant 0 : index
    %c5 = arith.constant 5 : index
    %c0_65 = arith.constant 0 : index
    %99 = vector.load %arg11[%c0_64, %c5, %c0_65] : memref<2x12x16xf32, #tpu.memory_space<vmem>>, vector<1x1x16xf32>
    %100 = vector.shape_cast %99 : vector<1x1x16xf32> to vector<1x16xf32>
    %101 = vector.shape_cast %98 : vector<1x16xf32> to vector<1x1x16xf32>
    tpu.vector_store %arg11[%c0_64, %c5, %c0_65], %101 {strides = array<i32>} : memref<2x12x16xf32, #tpu.memory_space<vmem>>, vector<1x1x16xf32>,
    %c0_66 = arith.constant 0 : index
    %c112_67 = arith.constant 112 : index
    %102 = vector.load %arg10[%c0_66, %c112_67] : memref<2x176xf32, #tpu.memory_space<vmem>>, vector<1x16xf32>
    %c0_68 = arith.constant 0 : index
    %c6 = arith.constant 6 : index
    %c0_69 = arith.constant 0 : index
    %103 = vector.load %arg11[%c0_68, %c6, %c0_69] : memref<2x12x16xf32, #tpu.memory_space<vmem>>, vector<1x1x16xf32>
    %104 = vector.shape_cast %103 : vector<1x1x16xf32> to vector<1x16xf32>
    %105 = vector.shape_cast %102 : vector<1x16xf32> to vector<1x1x16xf32>
    tpu.vector_store %arg11[%c0_68, %c6, %c0_69], %105 {strides = array<i32>} : memref<2x12x16xf32, #tpu.memory_space<vmem>>, vector<1x1x16xf32>,
    %c0_70 = arith.constant 0 : index
    %c128 = arith.constant 128 : index
    %106 = vector.load %arg10[%c0_70, %c128] : memref<2x176xf32, #tpu.memory_space<vmem>>, vector<1x16xf32>
    %c0_71 = arith.constant 0 : index
    %c7 = arith.constant 7 : index
    %c0_72 = arith.constant 0 : index
    %107 = vector.load %arg11[%c0_71, %c7, %c0_72] : memref<2x12x16xf32, #tpu.memory_space<vmem>>, vector<1x1x16xf32>
    %108 = vector.shape_cast %107 : vector<1x1x16xf32> to vector<1x16xf32>
    %109 = vector.shape_cast %106 : vector<1x16xf32> to vector<1x1x16xf32>
    tpu.vector_store %arg11[%c0_71, %c7, %c0_72], %109 {strides = array<i32>} : memref<2x12x16xf32, #tpu.memory_space<vmem>>, vector<1x1x16xf32>,
    %c0_73 = arith.constant 0 : index
    %c144 = arith.constant 144 : index
    %110 = vector.load %arg10[%c0_73, %c144] : memref<2x176xf32, #tpu.memory_space<vmem>>, vector<1x8xf32>
    %c0_74 = arith.constant 0 : index
    %c8_75 = arith.constant 8 : index
    %c0_76 = arith.constant 0 : index
    %111 = vector.load %arg11[%c0_74, %c8_75, %c0_76] : memref<2x12x16xf32, #tpu.memory_space<vmem>>, vector<1x1x8xf32>
    %112 = vector.shape_cast %111 : vector<1x1x8xf32> to vector<1x8xf32>
    %113 = vector.shape_cast %110 : vector<1x8xf32> to vector<1x1x8xf32>
    tpu.vector_store %arg11[%c0_74, %c8_75, %c0_76], %113 {strides = array<i32>} : memref<2x12x16xf32, #tpu.memory_space<vmem>>, vector<1x1x8xf32>,
    %c0_77 = arith.constant 0 : index
    %c152 = arith.constant 152 : index
    %114 = vector.load %arg10[%c0_77, %c152] : memref<2x176xf32, #tpu.memory_space<vmem>>, vector<1x8xf32>
    %c0_78 = arith.constant 0 : index
    %c9 = arith.constant 9 : index
    %c0_79 = arith.constant 0 : index
    %115 = vector.load %arg11[%c0_78, %c9, %c0_79] : memref<2x12x16xf32, #tpu.memory_space<vmem>>, vector<1x1x8xf32>
    %116 = vector.shape_cast %115 : vector<1x1x8xf32> to vector<1x8xf32>
    %117 = vector.shape_cast %114 : vector<1x8xf32> to vector<1x1x8xf32>
    tpu.vector_store %arg11[%c0_78, %c9, %c0_79], %117 {strides = array<i32>} : memref<2x12x16xf32, #tpu.memory_space<vmem>>, vector<1x1x8xf32>,
    %c0_80 = arith.constant 0 : index
    %c160 = arith.constant 160 : index
    %118 = vector.load %arg10[%c0_80, %c160] : memref<2x176xf32, #tpu.memory_space<vmem>>, vector<1x8xf32>
    %c0_81 = arith.constant 0 : index
    %c10 = arith.constant 10 : index
    %c0_82 = arith.constant 0 : index
    %119 = vector.load %arg11[%c0_81, %c10, %c0_82] : memref<2x12x16xf32, #tpu.memory_space<vmem>>, vector<1x1x8xf32>
    %120 = vector.shape_cast %119 : vector<1x1x8xf32> to vector<1x8xf32>
    %121 = vector.shape_cast %118 : vector<1x8xf32> to vector<1x1x8xf32>
    tpu.vector_store %arg11[%c0_81, %c10, %c0_82], %121 {strides = array<i32>} : memref<2x12x16xf32, #tpu.memory_space<vmem>>, vector<1x1x8xf32>,
    %c0_83 = arith.constant 0 : index
    %c168 = arith.constant 168 : index
    %122 = vector.load %arg10[%c0_83, %c168] : memref<2x176xf32, #tpu.memory_space<vmem>>, vector<1x8xf32>
    %c0_84 = arith.constant 0 : index
    %c11 = arith.constant 11 : index
    %c0_85 = arith.constant 0 : index
    %123 = vector.load %arg11[%c0_84, %c11, %c0_85] : memref<2x12x16xf32, #tpu.memory_space<vmem>>, vector<1x1x8xf32>
    %124 = vector.shape_cast %123 : vector<1x1x8xf32> to vector<1x8xf32>
    %125 = vector.shape_cast %122 : vector<1x8xf32> to vector<1x1x8xf32>
    tpu.vector_store %arg11[%c0_84, %c11, %c0_85], %125 {strides = array<i32>} : memref<2x12x16xf32, #tpu.memory_space<vmem>>, vector<1x1x8xf32>,
    %c0_86 = arith.constant 0 : index
    %c0_87 = arith.constant 0 : index
    %c0_88 = arith.constant 0 : index
    %126 = vector.load %arg11[%c0_86, %c0_87, %c0_88] : memref<2x12x16xf32, #tpu.memory_space<vmem>>, vector<1x4x8xf32>
    %127 = vector.shape_cast %126 : vector<1x4x8xf32> to vector<4x8xf32>
    %c0_89 = arith.constant 0 : index
    %c0_90 = arith.constant 0 : index
    %c8_91 = arith.constant 8 : index
    %128 = vector.load %arg11[%c0_89, %c0_90, %c8_91] : memref<2x12x16xf32, #tpu.memory_space<vmem>>, vector<1x4x8xf32>
    %129 = vector.shape_cast %128 : vector<1x4x8xf32> to vector<4x8xf32>
    %c0_92 = arith.constant 0 : index
    %c4_93 = arith.constant 4 : index
    %c0_94 = arith.constant 0 : index
    %130 = vector.load %arg11[%c0_92, %c4_93, %c0_94] : memref<2x12x16xf32, #tpu.memory_space<vmem>>, vector<1x4x8xf32>
    %131 = vector.shape_cast %130 : vector<1x4x8xf32> to vector<4x8xf32>
    %c0_95 = arith.constant 0 : index
    %c4_96 = arith.constant 4 : index
    %c8_97 = arith.constant 8 : index
    %132 = vector.load %arg11[%c0_95, %c4_96, %c8_97] : memref<2x12x16xf32, #tpu.memory_space<vmem>>, vector<1x4x8xf32>
    %133 = vector.shape_cast %132 : vector<1x4x8xf32> to vector<4x8xf32>
    %c0_98 = arith.constant 0 : index
    %c8_99 = arith.constant 8 : index
    %c0_100 = arith.constant 0 : index
    %134 = vector.load %arg11[%c0_98, %c8_99, %c0_100] : memref<2x12x16xf32, #tpu.memory_space<vmem>>, vector<1x4x4xf32>
    %135 = vector.shape_cast %134 : vector<1x4x4xf32> to vector<4x4xf32>
    %c0_101 = arith.constant 0 : index
    %c8_102 = arith.constant 8 : index
    %c4_103 = arith.constant 4 : index
    %136 = vector.load %arg11[%c0_101, %c8_102, %c4_103] : memref<2x12x16xf32, #tpu.memory_space<vmem>>, vector<1x4x4xf32>
    %137 = vector.shape_cast %136 : vector<1x4x4xf32> to vector<4x4xf32>
    %c0_104 = arith.constant 0 : index
    %c32_105 = arith.constant 32 : index
    %138 = vector.load %arg9[%c0_104, %c32_105] : memref<2x48xf32, #tpu.memory_space<vmem>>, vector<1x8xf32>
    %c0_106 = arith.constant 0 : index
    %c40_107 = arith.constant 40 : index
    %139 = vector.load %arg9[%c0_106, %c40_107] : memref<2x48xf32, #tpu.memory_space<vmem>>, vector<1x8xf32>
    %140 = vector.broadcast %138 : vector<1x8xf32> to vector<4x8xf32>
    %141 = arith.mulf %131, %140 : vector<4x8xf32>
    %142 = vector.broadcast %139 : vector<1x8xf32> to vector<4x8xf32>
    %143 = arith.mulf %133, %142 : vector<4x8xf32>
    %144 = arith.subf %141, %143 : vector<4x8xf32>
    %145 = vector.broadcast %139 : vector<1x8xf32> to vector<4x8xf32>
    %146 = arith.mulf %131, %145 : vector<4x8xf32>
    %147 = vector.broadcast %138 : vector<1x8xf32> to vector<4x8xf32>
    %148 = arith.mulf %133, %147 : vector<4x8xf32>
    %149 = arith.addf %146, %148 : vector<4x8xf32>
    %cst_108 = arith.constant dense<0.000000e+00> : vector<4x4xf32>
    %150 = tpu.matmul %144, %127, %cst_108 {dimension_numbers = #tpu.dot_dimension_numbers<[1], [1], [0], [0], [0, 0, 1, 0], [], []>} : vector<4x8xf32>, vector<4x8xf32>, vector<4x4xf32> -> vector<4x4xf32>
    %151 = arith.addf %135, %150 : vector<4x4xf32>
    %cst_109 = arith.constant dense<0.000000e+00> : vector<4x4xf32>
    %152 = tpu.matmul %149, %129, %cst_109 {dimension_numbers = #tpu.dot_dimension_numbers<[1], [1], [0], [0], [0, 0, 1, 0], [], []>} : vector<4x8xf32>, vector<4x8xf32>, vector<4x4xf32> -> vector<4x4xf32>
    %153 = arith.subf %151, %152 : vector<4x4xf32>
    %cst_110 = arith.constant dense<0.000000e+00> : vector<4x4xf32>
    %154 = tpu.matmul %144, %129, %cst_110 {dimension_numbers = #tpu.dot_dimension_numbers<[1], [1], [0], [0], [0, 0, 1, 0], [], []>} : vector<4x8xf32>, vector<4x8xf32>, vector<4x4xf32> -> vector<4x4xf32>
    %155 = arith.addf %137, %154 : vector<4x4xf32>
    %cst_111 = arith.constant dense<0.000000e+00> : vector<4x4xf32>
    %156 = tpu.matmul %149, %127, %cst_111 {dimension_numbers = #tpu.dot_dimension_numbers<[1], [1], [0], [0], [0, 0, 1, 0], [], []>} : vector<4x8xf32>, vector<4x8xf32>, vector<4x4xf32> -> vector<4x4xf32>
    %157 = arith.addf %155, %156 : vector<4x4xf32>
    %c0_112 = arith.constant 0 : index
    %c0_113 = arith.constant 0 : index
    %158 = vector.load %arg6[%c0_112, %c0_113] : memref<4x4xf32, #tpu.memory_space<vmem>>, vector<4x4xf32>
    %c0_114 = arith.constant 0 : index
    %c0_115 = arith.constant 0 : index
    %159 = vector.load %arg7[%c0_114, %c0_115] : memref<4x4xf32, #tpu.memory_space<vmem>>, vector<4x4xf32>
    %cst_116 = arith.constant dense<0.000000e+00> : vector<4x4xf32>
    %160 = tpu.matmul %153, %158, %cst_116 {dimension_numbers = #tpu.dot_dimension_numbers<[1], [1], [0], [0], [0, 0, 1, 0], [], []>} : vector<4x4xf32>, vector<4x4xf32>, vector<4x4xf32> -> vector<4x4xf32>
    %cst_117 = arith.constant dense<0.000000e+00> : vector<4x4xf32>
    %161 = tpu.matmul %157, %159, %cst_117 {dimension_numbers = #tpu.dot_dimension_numbers<[1], [1], [0], [0], [0, 0, 1, 0], [], []>} : vector<4x4xf32>, vector<4x4xf32>, vector<4x4xf32> -> vector<4x4xf32>
    %162 = arith.addf %160, %161 : vector<4x4xf32>
    %cst_118 = arith.constant dense<0.000000e+00> : vector<4x4xf32>
    %163 = tpu.matmul %153, %159, %cst_118 {dimension_numbers = #tpu.dot_dimension_numbers<[1], [1], [0], [0], [0, 0, 1, 0], [], []>} : vector<4x4xf32>, vector<4x4xf32>, vector<4x4xf32> -> vector<4x4xf32>
    %cst_119 = arith.constant dense<0.000000e+00> : vector<4x4xf32>
    %164 = tpu.matmul %157, %158, %cst_119 {dimension_numbers = #tpu.dot_dimension_numbers<[1], [1], [0], [0], [0, 0, 1, 0], [], []>} : vector<4x4xf32>, vector<4x4xf32>, vector<4x4xf32> -> vector<4x4xf32>
    %165 = arith.subf %163, %164 : vector<4x4xf32>
    %166 = arith.mulf %162, %162 : vector<4x4xf32>
    %167 = arith.mulf %165, %165 : vector<4x4xf32>
    %168 = arith.addf %166, %167 : vector<4x4xf32>
    %169 = arith.mulf %162, %77 : vector<4x4xf32>
    %cst_120 = arith.constant dense<0.000000e+00> : vector<4xf32>
    %170 = vector.multi_reduction <add>, %169, %cst_120 [1] : vector<4x4xf32> to vector<4xf32>
    %171 = vector.shape_cast %170 : vector<4xf32> to vector<4x1xf32>
    %172 = arith.mulf %165, %77 : vector<4x4xf32>
    %cst_121 = arith.constant dense<0.000000e+00> : vector<4xf32>
    %173 = vector.multi_reduction <add>, %172, %cst_121 [1] : vector<4x4xf32> to vector<4xf32>
    %174 = vector.shape_cast %173 : vector<4xf32> to vector<4x1xf32>
    %175 = arith.mulf %168, %77 : vector<4x4xf32>
    %cst_122 = arith.constant dense<0.000000e+00> : vector<4xf32>
    %176 = vector.multi_reduction <add>, %175, %cst_122 [1] : vector<4x4xf32> to vector<4xf32>
    %177 = vector.shape_cast %176 : vector<4xf32> to vector<4x1xf32>
    %cst_123 = arith.constant dense<0.000000e+00> : vector<4xf32>
    %178 = vector.multi_reduction <add>, %168, %cst_123 [1] : vector<4x4xf32> to vector<4xf32>
    %179 = vector.shape_cast %178 : vector<4xf32> to vector<4x1xf32>
    %cst_124 = arith.constant 1.000000e+00 : f32
    %180 = vector.broadcast %cst_124 : f32 to vector<4x1xf32>
    %181 = arith.addf %179, %180 : vector<4x1xf32>
    %182 = tpu.reciprocal %181 {approx = true} : vector<4x1xf32> -> vector<4x1xf32>
    %183 = arith.mulf %171, %182 : vector<4x1xf32>
    %184 = arith.mulf %174, %182 : vector<4x1xf32>
    %185 = arith.subf %179, %177 : vector<4x1xf32>
    %cst_125 = arith.constant 1.000000e+00 : f32
    %186 = vector.broadcast %cst_125 : f32 to vector<4x1xf32>
    %187 = arith.addf %185, %186 : vector<4x1xf32>
    %188 = tpu.reciprocal %187 {approx = true} : vector<4x1xf32> -> vector<4x1xf32>
    %189 = arith.mulf %181, %188 : vector<4x1xf32>
    %190 = arith.mulf %183, %183 : vector<4x1xf32>
    %191 = arith.mulf %184, %184 : vector<4x1xf32>
    %192 = arith.addf %190, %191 : vector<4x1xf32>
    %193 = arith.mulf %192, %189 : vector<4x1xf32>
    %194 = vector.broadcast %193 : vector<4x1xf32> to vector<4x4xf32>
    %195 = arith.mulf %153, %194 : vector<4x4xf32>
    %196 = vector.broadcast %193 : vector<4x1xf32> to vector<4x4xf32>
    %197 = arith.mulf %157, %196 : vector<4x4xf32>
    %cst_126 = arith.constant dense<0.000000e+00> : vector<4x4xf32>
    %198 = tpu.matmul %153, %195, %cst_126 {dimension_numbers = #tpu.dot_dimension_numbers<[0], [0], [1], [1], [0, 1, 1, 1], [], []>} : vector<4x4xf32>, vector<4x4xf32>, vector<4x4xf32> -> vector<4x4xf32>
    %cst_127 = arith.constant dense<0.000000e+00> : vector<4x4xf32>
    %199 = tpu.matmul %157, %197, %cst_127 {dimension_numbers = #tpu.dot_dimension_numbers<[0], [0], [1], [1], [0, 1, 1, 1], [], []>} : vector<4x4xf32>, vector<4x4xf32>, vector<4x4xf32> -> vector<4x4xf32>
    %200 = arith.addf %198, %199 : vector<4x4xf32>
    %cst_128 = arith.constant dense<0.000000e+00> : vector<4x4xf32>
    %201 = tpu.matmul %153, %197, %cst_128 {dimension_numbers = #tpu.dot_dimension_numbers<[0], [0], [1], [1], [0, 1, 1, 1], [], []>} : vector<4x4xf32>, vector<4x4xf32>, vector<4x4xf32> -> vector<4x4xf32>
    %cst_129 = arith.constant dense<0.000000e+00> : vector<4x4xf32>
    %202 = tpu.matmul %157, %195, %cst_129 {dimension_numbers = #tpu.dot_dimension_numbers<[0], [0], [1], [1], [0, 1, 1, 1], [], []>} : vector<4x4xf32>, vector<4x4xf32>, vector<4x4xf32> -> vector<4x4xf32>
    %203 = arith.subf %201, %202 : vector<4x4xf32>
    %204 = arith.mulf %183, %189 : vector<4x1xf32>
    %205 = arith.mulf %184, %189 : vector<4x1xf32>
    %206 = vector.broadcast %204 : vector<4x1xf32> to vector<4x4xf32>
    %207 = arith.mulf %153, %206 : vector<4x4xf32>
    %208 = vector.broadcast %205 : vector<4x1xf32> to vector<4x4xf32>
    %209 = arith.mulf %157, %208 : vector<4x4xf32>
    %210 = arith.subf %207, %209 : vector<4x4xf32>
    %211 = vector.broadcast %205 : vector<4x1xf32> to vector<4x4xf32>
    %212 = arith.mulf %153, %211 : vector<4x4xf32>
    %213 = vector.broadcast %204 : vector<4x1xf32> to vector<4x4xf32>
    %214 = arith.mulf %157, %213 : vector<4x4xf32>
    %215 = arith.addf %212, %214 : vector<4x4xf32>
    %cst_130 = arith.constant dense<0.000000e+00> : vector<4x4xf32>
    %216 = tpu.matmul %158, %200, %cst_130 {dimension_numbers = #tpu.dot_dimension_numbers<[1], [0], [0], [1], [0, 0, 1, 1], [], []>} : vector<4x4xf32>, vector<4x4xf32>, vector<4x4xf32> -> vector<4x4xf32>
    %cst_131 = arith.constant dense<0.000000e+00> : vector<4x4xf32>
    %217 = tpu.matmul %159, %203, %cst_131 {dimension_numbers = #tpu.dot_dimension_numbers<[1], [0], [0], [1], [0, 0, 1, 1], [], []>} : vector<4x4xf32>, vector<4x4xf32>, vector<4x4xf32> -> vector<4x4xf32>
    %218 = arith.subf %216, %217 : vector<4x4xf32>
    %cst_132 = arith.constant dense<0.000000e+00> : vector<4x4xf32>
    %219 = tpu.matmul %158, %203, %cst_132 {dimension_numbers = #tpu.dot_dimension_numbers<[1], [0], [0], [1], [0, 0, 1, 1], [], []>} : vector<4x4xf32>, vector<4x4xf32>, vector<4x4xf32> -> vector<4x4xf32>
    %cst_133 = arith.constant dense<0.000000e+00> : vector<4x4xf32>
    %220 = tpu.matmul %159, %200, %cst_133 {dimension_numbers = #tpu.dot_dimension_numbers<[1], [0], [0], [1], [0, 0, 1, 1], [], []>} : vector<4x4xf32>, vector<4x4xf32>, vector<4x4xf32> -> vector<4x4xf32>
    %221 = arith.addf %219, %220 : vector<4x4xf32>
    %222 = arith.subf %218, %210 : vector<4x4xf32>
    %cst_134 = arith.constant 2.000000e+00 : f32
    %223 = vector.broadcast %cst_134 : f32 to vector<4x4xf32>
    %224 = arith.mulf %223, %222 : vector<4x4xf32>
    %225 = arith.subf %221, %215 : vector<4x4xf32>
    %cst_135 = arith.constant 2.000000e+00 : f32
    %226 = vector.broadcast %cst_135 : f32 to vector<4x4xf32>
    %227 = arith.mulf %226, %225 : vector<4x4xf32>
    %c0_136 = arith.constant 0 : index
    %228 = memref.load %arg8[%c0_136] : memref<4xf32, #tpu.memory_space<smem>>
    %229 = vector.broadcast %228 : f32 to vector<4x4xf32>
    %230 = arith.mulf %229, %224 : vector<4x4xf32>
    %231 = arith.subf %158, %230 : vector<4x4xf32>
    %232 = vector.broadcast %228 : f32 to vector<4x4xf32>
    %233 = arith.mulf %232, %227 : vector<4x4xf32>
    %234 = arith.subf %159, %233 : vector<4x4xf32>
    %235 = arith.mulf %231, %231 : vector<4x4xf32>
    %236 = arith.mulf %234, %234 : vector<4x4xf32>
    %237 = arith.addf %235, %236 : vector<4x4xf32>
    %238 = vector.shape_cast %237 : vector<4x4xf32> to vector<1x4x4xf32>
    %cst_137 = arith.constant dense<0.000000e+00> : vector<1xf32>
    %239 = vector.multi_reduction <add>, %238, %cst_137 [1, 2] : vector<1x4x4xf32> to vector<1xf32>
    %240 = vector.shape_cast %239 : vector<1xf32> to vector<1x1x1xf32>
    %241 = vector.extract %240[0, 0, 0] : f32 from vector<1x1x1xf32>
    %242 = math.sqrt %241 : f32
    %cst_138 = arith.constant 1.000000e+00 : f32
    %243 = arith.subf %242, %cst_138 : f32
    %cst_139 = arith.constant 0.000000e+00 : f32
    %244 = arith.maximumf %cst_139, %243 : f32
    %cst_140 = arith.constant 1.000000e+00 : f32
    %245 = arith.addf %cst_140, %244 : f32
    %cst_141 = arith.constant 1.000000e+00 : f32
    %246 = arith.divf %cst_141, %245 : f32
    %247 = vector.broadcast %246 : f32 to vector<4x4xf32>
    %248 = arith.mulf %231, %247 : vector<4x4xf32>
    %249 = vector.broadcast %246 : f32 to vector<4x4xf32>
    %250 = arith.mulf %234, %249 : vector<4x4xf32>
    %cst_142 = arith.constant dense<0.000000e+00> : vector<4x4xf32>
    %251 = tpu.matmul %248, %200, %cst_142 {dimension_numbers = #tpu.dot_dimension_numbers<[1], [0], [0], [1], [0, 0, 1, 1], [], []>} : vector<4x4xf32>, vector<4x4xf32>, vector<4x4xf32> -> vector<4x4xf32>
    %cst_143 = arith.constant dense<0.000000e+00> : vector<4x4xf32>
    %252 = tpu.matmul %250, %203, %cst_143 {dimension_numbers = #tpu.dot_dimension_numbers<[1], [0], [0], [1], [0, 0, 1, 1], [], []>} : vector<4x4xf32>, vector<4x4xf32>, vector<4x4xf32> -> vector<4x4xf32>
    %253 = arith.subf %251, %252 : vector<4x4xf32>
    %cst_144 = arith.constant dense<0.000000e+00> : vector<4x4xf32>
    %254 = tpu.matmul %248, %203, %cst_144 {dimension_numbers = #tpu.dot_dimension_numbers<[1], [0], [0], [1], [0, 0, 1, 1], [], []>} : vector<4x4xf32>, vector<4x4xf32>, vector<4x4xf32> -> vector<4x4xf32>
    %cst_145 = arith.constant dense<0.000000e+00> : vector<4x4xf32>
    %255 = tpu.matmul %250, %200, %cst_145 {dimension_numbers = #tpu.dot_dimension_numbers<[1], [0], [0], [1], [0, 0, 1, 1], [], []>} : vector<4x4xf32>, vector<4x4xf32>, vector<4x4xf32> -> vector<4x4xf32>
    %256 = arith.addf %254, %255 : vector<4x4xf32>
    %257 = arith.subf %253, %210 : vector<4x4xf32>
    %cst_146 = arith.constant 2.000000e+00 : f32
    %258 = vector.broadcast %cst_146 : f32 to vector<4x4xf32>
    %259 = arith.mulf %258, %257 : vector<4x4xf32>
    %260 = arith.subf %256, %215 : vector<4x4xf32>
    %cst_147 = arith.constant 2.000000e+00 : f32
    %261 = vector.broadcast %cst_147 : f32 to vector<4x4xf32>
    %262 = arith.mulf %261, %260 : vector<4x4xf32>
    %c1_148 = arith.constant 1 : index
    %263 = memref.load %arg8[%c1_148] : memref<4xf32, #tpu.memory_space<smem>>
    %264 = vector.broadcast %263 : f32 to vector<4x4xf32>
    %265 = arith.mulf %264, %259 : vector<4x4xf32>
    %266 = arith.subf %248, %265 : vector<4x4xf32>
    %267 = vector.broadcast %263 : f32 to vector<4x4xf32>
    %268 = arith.mulf %267, %262 : vector<4x4xf32>
    %269 = arith.subf %250, %268 : vector<4x4xf32>
    %270 = arith.mulf %266, %266 : vector<4x4xf32>
    %271 = arith.mulf %269, %269 : vector<4x4xf32>
    %272 = arith.addf %270, %271 : vector<4x4xf32>
    %273 = vector.shape_cast %272 : vector<4x4xf32> to vector<1x4x4xf32>
    %cst_149 = arith.constant dense<0.000000e+00> : vector<1xf32>
    %274 = vector.multi_reduction <add>, %273, %cst_149 [1, 2] : vector<1x4x4xf32> to vector<1xf32>
    %275 = vector.shape_cast %274 : vector<1xf32> to vector<1x1x1xf32>
    %276 = vector.extract %275[0, 0, 0] : f32 from vector<1x1x1xf32>
    %277 = math.sqrt %276 : f32
    %cst_150 = arith.constant 1.000000e+00 : f32
    %278 = arith.subf %277, %cst_150 : f32
    %cst_151 = arith.constant 0.000000e+00 : f32
    %279 = arith.maximumf %cst_151, %278 : f32
    %cst_152 = arith.constant 1.000000e+00 : f32
    %280 = arith.addf %cst_152, %279 : f32
    %cst_153 = arith.constant 1.000000e+00 : f32
    %281 = arith.divf %cst_153, %280 : f32
    %282 = vector.broadcast %281 : f32 to vector<4x4xf32>
    %283 = arith.mulf %266, %282 : vector<4x4xf32>
    %284 = vector.broadcast %281 : f32 to vector<4x4xf32>
    %285 = arith.mulf %269, %284 : vector<4x4xf32>
    %cst_154 = arith.constant dense<0.000000e+00> : vector<4x4xf32>
    %286 = tpu.matmul %153, %283, %cst_154 {dimension_numbers = #tpu.dot_dimension_numbers<[1], [1], [0], [0], [0, 0, 1, 0], [], []>} : vector<4x4xf32>, vector<4x4xf32>, vector<4x4xf32> -> vector<4x4xf32>
    %cst_155 = arith.constant dense<0.000000e+00> : vector<4x4xf32>
    %287 = tpu.matmul %157, %285, %cst_155 {dimension_numbers = #tpu.dot_dimension_numbers<[1], [1], [0], [0], [0, 0, 1, 0], [], []>} : vector<4x4xf32>, vector<4x4xf32>, vector<4x4xf32> -> vector<4x4xf32>
    %288 = arith.addf %286, %287 : vector<4x4xf32>
    %cst_156 = arith.constant dense<0.000000e+00> : vector<4x4xf32>
    %289 = tpu.matmul %153, %285, %cst_156 {dimension_numbers = #tpu.dot_dimension_numbers<[1], [1], [0], [0], [0, 0, 1, 0], [], []>} : vector<4x4xf32>, vector<4x4xf32>, vector<4x4xf32> -> vector<4x4xf32>
    %cst_157 = arith.constant dense<0.000000e+00> : vector<4x4xf32>
    %290 = tpu.matmul %157, %283, %cst_157 {dimension_numbers = #tpu.dot_dimension_numbers<[1], [1], [0], [0], [0, 0, 1, 0], [], []>} : vector<4x4xf32>, vector<4x4xf32>, vector<4x4xf32> -> vector<4x4xf32>
    %291 = arith.subf %289, %290 : vector<4x4xf32>
    %292 = arith.mulf %288, %288 : vector<4x4xf32>
    %293 = arith.mulf %291, %291 : vector<4x4xf32>
    %294 = arith.addf %292, %293 : vector<4x4xf32>
    %295 = arith.mulf %288, %77 : vector<4x4xf32>
    %cst_158 = arith.constant dense<0.000000e+00> : vector<4xf32>
    %296 = vector.multi_reduction <add>, %295, %cst_158 [1] : vector<4x4xf32> to vector<4xf32>
    %297 = vector.shape_cast %296 : vector<4xf32> to vector<4x1xf32>
    %298 = arith.mulf %291, %77 : vector<4x4xf32>
    %cst_159 = arith.constant dense<0.000000e+00> : vector<4xf32>
    %299 = vector.multi_reduction <add>, %298, %cst_159 [1] : vector<4x4xf32> to vector<4xf32>
    %300 = vector.shape_cast %299 : vector<4xf32> to vector<4x1xf32>
    %301 = arith.mulf %294, %77 : vector<4x4xf32>
    %cst_160 = arith.constant dense<0.000000e+00> : vector<4xf32>
    %302 = vector.multi_reduction <add>, %301, %cst_160 [1] : vector<4x4xf32> to vector<4xf32>
    %303 = vector.shape_cast %302 : vector<4xf32> to vector<4x1xf32>
    %cst_161 = arith.constant dense<0.000000e+00> : vector<4xf32>
    %304 = vector.multi_reduction <add>, %294, %cst_161 [1] : vector<4x4xf32> to vector<4xf32>
    %305 = vector.shape_cast %304 : vector<4xf32> to vector<4x1xf32>
    %cst_162 = arith.constant 1.000000e+00 : f32
    %306 = vector.broadcast %cst_162 : f32 to vector<4x1xf32>
    %307 = arith.addf %305, %306 : vector<4x1xf32>
    %308 = tpu.reciprocal %307 {approx = true} : vector<4x1xf32> -> vector<4x1xf32>
    %309 = arith.mulf %297, %308 : vector<4x1xf32>
    %310 = arith.mulf %300, %308 : vector<4x1xf32>
    %311 = arith.subf %305, %303 : vector<4x1xf32>
    %cst_163 = arith.constant 1.000000e+00 : f32
    %312 = vector.broadcast %cst_163 : f32 to vector<4x1xf32>
    %313 = arith.addf %311, %312 : vector<4x1xf32>
    %314 = tpu.reciprocal %313 {approx = true} : vector<4x1xf32> -> vector<4x1xf32>
    %315 = arith.mulf %307, %314 : vector<4x1xf32>
    %316 = arith.mulf %309, %309 : vector<4x1xf32>
    %317 = arith.mulf %310, %310 : vector<4x1xf32>
    %318 = arith.addf %316, %317 : vector<4x1xf32>
    %319 = arith.mulf %318, %315 : vector<4x1xf32>
    %320 = vector.broadcast %319 : vector<4x1xf32> to vector<4x4xf32>
    %321 = arith.mulf %153, %320 : vector<4x4xf32>
    %322 = vector.broadcast %319 : vector<4x1xf32> to vector<4x4xf32>
    %323 = arith.mulf %157, %322 : vector<4x4xf32>
    %cst_164 = arith.constant dense<0.000000e+00> : vector<4x4xf32>
    %324 = tpu.matmul %153, %321, %cst_164 {dimension_numbers = #tpu.dot_dimension_numbers<[0], [0], [1], [1], [0, 1, 1, 1], [], []>} : vector<4x4xf32>, vector<4x4xf32>, vector<4x4xf32> -> vector<4x4xf32>
    %cst_165 = arith.constant dense<0.000000e+00> : vector<4x4xf32>
    %325 = tpu.matmul %157, %323, %cst_165 {dimension_numbers = #tpu.dot_dimension_numbers<[0], [0], [1], [1], [0, 1, 1, 1], [], []>} : vector<4x4xf32>, vector<4x4xf32>, vector<4x4xf32> -> vector<4x4xf32>
    %326 = arith.addf %324, %325 : vector<4x4xf32>
    %cst_166 = arith.constant dense<0.000000e+00> : vector<4x4xf32>
    %327 = tpu.matmul %153, %323, %cst_166 {dimension_numbers = #tpu.dot_dimension_numbers<[0], [0], [1], [1], [0, 1, 1, 1], [], []>} : vector<4x4xf32>, vector<4x4xf32>, vector<4x4xf32> -> vector<4x4xf32>
    %cst_167 = arith.constant dense<0.000000e+00> : vector<4x4xf32>
    %328 = tpu.matmul %157, %321, %cst_167 {dimension_numbers = #tpu.dot_dimension_numbers<[0], [0], [1], [1], [0, 1, 1, 1], [], []>} : vector<4x4xf32>, vector<4x4xf32>, vector<4x4xf32> -> vector<4x4xf32>
    %329 = arith.subf %327, %328 : vector<4x4xf32>
    %330 = arith.mulf %309, %315 : vector<4x1xf32>
    %331 = arith.mulf %310, %315 : vector<4x1xf32>
    %332 = vector.broadcast %330 : vector<4x1xf32> to vector<4x4xf32>
    %333 = arith.mulf %153, %332 : vector<4x4xf32>
    %334 = vector.broadcast %331 : vector<4x1xf32> to vector<4x4xf32>
    %335 = arith.mulf %157, %334 : vector<4x4xf32>
    %336 = arith.subf %333, %335 : vector<4x4xf32>
    %337 = vector.broadcast %331 : vector<4x1xf32> to vector<4x4xf32>
    %338 = arith.mulf %153, %337 : vector<4x4xf32>
    %339 = vector.broadcast %330 : vector<4x1xf32> to vector<4x4xf32>
    %340 = arith.mulf %157, %339 : vector<4x4xf32>
    %341 = arith.addf %338, %340 : vector<4x4xf32>
    %cst_168 = arith.constant dense<0.000000e+00> : vector<4x4xf32>
    %342 = tpu.matmul %283, %326, %cst_168 {dimension_numbers = #tpu.dot_dimension_numbers<[1], [0], [0], [1], [0, 0, 1, 1], [], []>} : vector<4x4xf32>, vector<4x4xf32>, vector<4x4xf32> -> vector<4x4xf32>
    %cst_169 = arith.constant dense<0.000000e+00> : vector<4x4xf32>
    %343 = tpu.matmul %285, %329, %cst_169 {dimension_numbers = #tpu.dot_dimension_numbers<[1], [0], [0], [1], [0, 0, 1, 1], [], []>} : vector<4x4xf32>, vector<4x4xf32>, vector<4x4xf32> -> vector<4x4xf32>
    %344 = arith.subf %342, %343 : vector<4x4xf32>
    %cst_170 = arith.constant dense<0.000000e+00> : vector<4x4xf32>
    %345 = tpu.matmul %283, %329, %cst_170 {dimension_numbers = #tpu.dot_dimension_numbers<[1], [0], [0], [1], [0, 0, 1, 1], [], []>} : vector<4x4xf32>, vector<4x4xf32>, vector<4x4xf32> -> vector<4x4xf32>
    %cst_171 = arith.constant dense<0.000000e+00> : vector<4x4xf32>
    %346 = tpu.matmul %285, %326, %cst_171 {dimension_numbers = #tpu.dot_dimension_numbers<[1], [0], [0], [1], [0, 0, 1, 1], [], []>} : vector<4x4xf32>, vector<4x4xf32>, vector<4x4xf32> -> vector<4x4xf32>
    %347 = arith.addf %345, %346 : vector<4x4xf32>
    %348 = arith.subf %344, %336 : vector<4x4xf32>
    %cst_172 = arith.constant 2.000000e+00 : f32
    %349 = vector.broadcast %cst_172 : f32 to vector<4x4xf32>
    %350 = arith.mulf %349, %348 : vector<4x4xf32>
    %351 = arith.subf %347, %341 : vector<4x4xf32>
    %cst_173 = arith.constant 2.000000e+00 : f32
    %352 = vector.broadcast %cst_173 : f32 to vector<4x4xf32>
    %353 = arith.mulf %352, %351 : vector<4x4xf32>
    %c2_174 = arith.constant 2 : index
    %354 = memref.load %arg8[%c2_174] : memref<4xf32, #tpu.memory_space<smem>>
    %355 = vector.broadcast %354 : f32 to vector<4x4xf32>
    %356 = arith.mulf %355, %350 : vector<4x4xf32>
    %357 = arith.subf %283, %356 : vector<4x4xf32>
    %358 = vector.broadcast %354 : f32 to vector<4x4xf32>
    %359 = arith.mulf %358, %353 : vector<4x4xf32>
    %360 = arith.subf %285, %359 : vector<4x4xf32>
    %361 = arith.mulf %357, %357 : vector<4x4xf32>
    %362 = arith.mulf %360, %360 : vector<4x4xf32>
    %363 = arith.addf %361, %362 : vector<4x4xf32>
    %364 = vector.shape_cast %363 : vector<4x4xf32> to vector<1x4x4xf32>
    %cst_175 = arith.constant dense<0.000000e+00> : vector<1xf32>
    %365 = vector.multi_reduction <add>, %364, %cst_175 [1, 2] : vector<1x4x4xf32> to vector<1xf32>
    %366 = vector.shape_cast %365 : vector<1xf32> to vector<1x1x1xf32>
    %367 = vector.extract %366[0, 0, 0] : f32 from vector<1x1x1xf32>
    %368 = math.sqrt %367 : f32
    %cst_176 = arith.constant 1.000000e+00 : f32
    %369 = arith.subf %368, %cst_176 : f32
    %cst_177 = arith.constant 0.000000e+00 : f32
    %370 = arith.maximumf %cst_177, %369 : f32
    %cst_178 = arith.constant 1.000000e+00 : f32
    %371 = arith.addf %cst_178, %370 : f32
    %cst_179 = arith.constant 1.000000e+00 : f32
    %372 = arith.divf %cst_179, %371 : f32
    %373 = vector.broadcast %372 : f32 to vector<4x4xf32>
    %374 = arith.mulf %357, %373 : vector<4x4xf32>
    %375 = vector.broadcast %372 : f32 to vector<4x4xf32>
    %376 = arith.mulf %360, %375 : vector<4x4xf32>
    %cst_180 = arith.constant dense<0.000000e+00> : vector<4x4xf32>
    %377 = tpu.matmul %374, %326, %cst_180 {dimension_numbers = #tpu.dot_dimension_numbers<[1], [0], [0], [1], [0, 0, 1, 1], [], []>} : vector<4x4xf32>, vector<4x4xf32>, vector<4x4xf32> -> vector<4x4xf32>
    %cst_181 = arith.constant dense<0.000000e+00> : vector<4x4xf32>
    %378 = tpu.matmul %376, %329, %cst_181 {dimension_numbers = #tpu.dot_dimension_numbers<[1], [0], [0], [1], [0, 0, 1, 1], [], []>} : vector<4x4xf32>, vector<4x4xf32>, vector<4x4xf32> -> vector<4x4xf32>
    %379 = arith.subf %377, %378 : vector<4x4xf32>
    %cst_182 = arith.constant dense<0.000000e+00> : vector<4x4xf32>
    %380 = tpu.matmul %374, %329, %cst_182 {dimension_numbers = #tpu.dot_dimension_numbers<[1], [0], [0], [1], [0, 0, 1, 1], [], []>} : vector<4x4xf32>, vector<4x4xf32>, vector<4x4xf32> -> vector<4x4xf32>
    %cst_183 = arith.constant dense<0.000000e+00> : vector<4x4xf32>
    %381 = tpu.matmul %376, %326, %cst_183 {dimension_numbers = #tpu.dot_dimension_numbers<[1], [0], [0], [1], [0, 0, 1, 1], [], []>} : vector<4x4xf32>, vector<4x4xf32>, vector<4x4xf32> -> vector<4x4xf32>
    %382 = arith.addf %380, %381 : vector<4x4xf32>
    %383 = arith.subf %379, %336 : vector<4x4xf32>
    %cst_184 = arith.constant 2.000000e+00 : f32
    %384 = vector.broadcast %cst_184 : f32 to vector<4x4xf32>
    %385 = arith.mulf %384, %383 : vector<4x4xf32>
    %386 = arith.subf %382, %341 : vector<4x4xf32>
    %cst_185 = arith.constant 2.000000e+00 : f32
    %387 = vector.broadcast %cst_185 : f32 to vector<4x4xf32>
    %388 = arith.mulf %387, %386 : vector<4x4xf32>
    %c3_186 = arith.constant 3 : index
    %389 = memref.load %arg8[%c3_186] : memref<4xf32, #tpu.memory_space<smem>>
    %390 = vector.broadcast %389 : f32 to vector<4x4xf32>
    %391 = arith.mulf %390, %385 : vector<4x4xf32>
    %392 = arith.subf %374, %391 : vector<4x4xf32>
    %393 = vector.broadcast %389 : f32 to vector<4x4xf32>
    %394 = arith.mulf %393, %388 : vector<4x4xf32>
    %395 = arith.subf %376, %394 : vector<4x4xf32>
    %396 = arith.mulf %392, %392 : vector<4x4xf32>
    %397 = arith.mulf %395, %395 : vector<4x4xf32>
    %398 = arith.addf %396, %397 : vector<4x4xf32>
    %399 = vector.shape_cast %398 : vector<4x4xf32> to vector<1x4x4xf32>
    %cst_187 = arith.constant dense<0.000000e+00> : vector<1xf32>
    %400 = vector.multi_reduction <add>, %399, %cst_187 [1, 2] : vector<1x4x4xf32> to vector<1xf32>
    %401 = vector.shape_cast %400 : vector<1xf32> to vector<1x1x1xf32>
    %402 = vector.extract %401[0, 0, 0] : f32 from vector<1x1x1xf32>
    %403 = math.sqrt %402 : f32
    %cst_188 = arith.constant 1.000000e+00 : f32
    %404 = arith.subf %403, %cst_188 : f32
    %cst_189 = arith.constant 0.000000e+00 : f32
    %405 = arith.maximumf %cst_189, %404 : f32
    %cst_190 = arith.constant 1.000000e+00 : f32
    %406 = arith.addf %cst_190, %405 : f32
    %cst_191 = arith.constant 1.000000e+00 : f32
    %407 = arith.divf %cst_191, %406 : f32
    %408 = vector.broadcast %407 : f32 to vector<4x4xf32>
    %409 = arith.mulf %392, %408 : vector<4x4xf32>
    %410 = vector.broadcast %407 : f32 to vector<4x4xf32>
    %411 = arith.mulf %395, %410 : vector<4x4xf32>
    %c0_192 = arith.constant 0 : index
    %c0_193 = arith.constant 0 : index
    %c0_194 = arith.constant 0 : index
    %412 = vector.load %arg12[%c0_192, %c0_193, %c0_194] : memref<2x4x8xf32, #tpu.memory_space<vmem>>, vector<1x4x4xf32>
    %413 = vector.shape_cast %412 : vector<1x4x4xf32> to vector<4x4xf32>
    %414 = vector.shape_cast %409 : vector<4x4xf32> to vector<1x4x4xf32>
    tpu.vector_store %arg12[%c0_192, %c0_193, %c0_194], %414 {strides = array<i32>} : memref<2x4x8xf32, #tpu.memory_space<vmem>>, vector<1x4x4xf32>,
    %c0_195 = arith.constant 0 : index
    %c0_196 = arith.constant 0 : index
    %c4_197 = arith.constant 4 : index
    %415 = vector.load %arg12[%c0_195, %c0_196, %c4_197] : memref<2x4x8xf32, #tpu.memory_space<vmem>>, vector<1x4x4xf32>
    %416 = vector.shape_cast %415 : vector<1x4x4xf32> to vector<4x4xf32>
    %417 = vector.shape_cast %411 : vector<4x4xf32> to vector<1x4x4xf32>
    tpu.vector_store %arg12[%c0_195, %c0_196, %c4_197], %417 {strides = array<i32>} : memref<2x4x8xf32, #tpu.memory_space<vmem>>, vector<1x4x4xf32>,
    %c0_198 = arith.constant 0 : index
    %c0_199 = arith.constant 0 : index
    %c0_200 = arith.constant 0 : index
    %418 = vector.load %arg12[%c0_198, %c0_199, %c0_200] : memref<2x4x8xf32, #tpu.memory_space<vmem>>, vector<1x1x4xf32>
    %419 = vector.shape_cast %418 : vector<1x1x4xf32> to vector<1x4xf32>
    %c0_201 = arith.constant 0 : index
    %c0_202 = arith.constant 0 : index
    %420 = vector.load %arg9[%c0_201, %c0_202] : memref<2x48xf32, #tpu.memory_space<vmem>>, vector<1x4xf32>
    tpu.vector_store %arg9[%c0_201, %c0_202], %419 {strides = array<i32>} : memref<2x48xf32, #tpu.memory_space<vmem>>, vector<1x4xf32>,
    %c0_203 = arith.constant 0 : index
    %c0_204 = arith.constant 0 : index
    %c4_205 = arith.constant 4 : index
    %421 = vector.load %arg12[%c0_203, %c0_204, %c4_205] : memref<2x4x8xf32, #tpu.memory_space<vmem>>, vector<1x1x4xf32>
    %422 = vector.shape_cast %421 : vector<1x1x4xf32> to vector<1x4xf32>
    %c0_206 = arith.constant 0 : index
    %c16_207 = arith.constant 16 : index
    %423 = vector.load %arg9[%c0_206, %c16_207] : memref<2x48xf32, #tpu.memory_space<vmem>>, vector<1x4xf32>
    tpu.vector_store %arg9[%c0_206, %c16_207], %422 {strides = array<i32>} : memref<2x48xf32, #tpu.memory_space<vmem>>, vector<1x4xf32>,
    %c0_208 = arith.constant 0 : index
    %c1_209 = arith.constant 1 : index
    %c0_210 = arith.constant 0 : index
    %424 = vector.load %arg12[%c0_208, %c1_209, %c0_210] : memref<2x4x8xf32, #tpu.memory_space<vmem>>, vector<1x1x4xf32>
    %425 = vector.shape_cast %424 : vector<1x1x4xf32> to vector<1x4xf32>
    %c0_211 = arith.constant 0 : index
    %c4_212 = arith.constant 4 : index
    %426 = vector.load %arg9[%c0_211, %c4_212] : memref<2x48xf32, #tpu.memory_space<vmem>>, vector<1x4xf32>
    tpu.vector_store %arg9[%c0_211, %c4_212], %425 {strides = array<i32>} : memref<2x48xf32, #tpu.memory_space<vmem>>, vector<1x4xf32>,
    %c0_213 = arith.constant 0 : index
    %c1_214 = arith.constant 1 : index
    %c4_215 = arith.constant 4 : index
    %427 = vector.load %arg12[%c0_213, %c1_214, %c4_215] : memref<2x4x8xf32, #tpu.memory_space<vmem>>, vector<1x1x4xf32>
    %428 = vector.shape_cast %427 : vector<1x1x4xf32> to vector<1x4xf32>
    %c0_216 = arith.constant 0 : index
    %c20 = arith.constant 20 : index
    %429 = vector.load %arg9[%c0_216, %c20] : memref<2x48xf32, #tpu.memory_space<vmem>>, vector<1x4xf32>
    tpu.vector_store %arg9[%c0_216, %c20], %428 {strides = array<i32>} : memref<2x48xf32, #tpu.memory_space<vmem>>, vector<1x4xf32>,
    %c0_217 = arith.constant 0 : index
    %c2_218 = arith.constant 2 : index
    %c0_219 = arith.constant 0 : index
    %430 = vector.load %arg12[%c0_217, %c2_218, %c0_219] : memref<2x4x8xf32, #tpu.memory_space<vmem>>, vector<1x1x4xf32>
    %431 = vector.shape_cast %430 : vector<1x1x4xf32> to vector<1x4xf32>
    %c0_220 = arith.constant 0 : index
    %c8_221 = arith.constant 8 : index
    %432 = vector.load %arg9[%c0_220, %c8_221] : memref<2x48xf32, #tpu.memory_space<vmem>>, vector<1x4xf32>
    tpu.vector_store %arg9[%c0_220, %c8_221], %431 {strides = array<i32>} : memref<2x48xf32, #tpu.memory_space<vmem>>, vector<1x4xf32>,
    %c0_222 = arith.constant 0 : index
    %c2_223 = arith.constant 2 : index
    %c4_224 = arith.constant 4 : index
    %433 = vector.load %arg12[%c0_222, %c2_223, %c4_224] : memref<2x4x8xf32, #tpu.memory_space<vmem>>, vector<1x1x4xf32>
    %434 = vector.shape_cast %433 : vector<1x1x4xf32> to vector<1x4xf32>
    %c0_225 = arith.constant 0 : index
    %c24 = arith.constant 24 : index
    %435 = vector.load %arg9[%c0_225, %c24] : memref<2x48xf32, #tpu.memory_space<vmem>>, vector<1x4xf32>
    tpu.vector_store %arg9[%c0_225, %c24], %434 {strides = array<i32>} : memref<2x48xf32, #tpu.memory_space<vmem>>, vector<1x4xf32>,
    %c0_226 = arith.constant 0 : index
    %c3_227 = arith.constant 3 : index
    %c0_228 = arith.constant 0 : index
    %436 = vector.load %arg12[%c0_226, %c3_227, %c0_228] : memref<2x4x8xf32, #tpu.memory_space<vmem>>, vector<1x1x4xf32>
    %437 = vector.shape_cast %436 : vector<1x1x4xf32> to vector<1x4xf32>
    %c0_229 = arith.constant 0 : index
    %c12 = arith.constant 12 : index
    %438 = vector.load %arg9[%c0_229, %c12] : memref<2x48xf32, #tpu.memory_space<vmem>>, vector<1x4xf32>
    tpu.vector_store %arg9[%c0_229, %c12], %437 {strides = array<i32>} : memref<2x48xf32, #tpu.memory_space<vmem>>, vector<1x4xf32>,
    %c0_230 = arith.constant 0 : index
    %c3_231 = arith.constant 3 : index
    %c4_232 = arith.constant 4 : index
    %439 = vector.load %arg12[%c0_230, %c3_231, %c4_232] : memref<2x4x8xf32, #tpu.memory_space<vmem>>, vector<1x1x4xf32>
    %440 = vector.shape_cast %439 : vector<1x1x4xf32> to vector<1x4xf32>
    %c0_233 = arith.constant 0 : index
    %c28 = arith.constant 28 : index
    %441 = vector.load %arg9[%c0_233, %c28] : memref<2x48xf32, #tpu.memory_space<vmem>>, vector<1x4xf32>
    tpu.vector_store %arg9[%c0_233, %c28], %440 {strides = array<i32>} : memref<2x48xf32, #tpu.memory_space<vmem>>, vector<1x4xf32>,
    %c1_234 = arith.constant 1 : index
    %c16_235 = arith.constant 16 : index
    %442 = vector.load %arg10[%c1_234, %c16_235] : memref<2x176xf32, #tpu.memory_space<vmem>>, vector<1x16xf32>
    %c1_236 = arith.constant 1 : index
    %c0_237 = arith.constant 0 : index
    %c0_238 = arith.constant 0 : index
    %443 = vector.load %arg11[%c1_236, %c0_237, %c0_238] : memref<2x12x16xf32, #tpu.memory_space<vmem>>, vector<1x1x16xf32>
    %444 = vector.shape_cast %443 : vector<1x1x16xf32> to vector<1x16xf32>
    %445 = vector.shape_cast %442 : vector<1x16xf32> to vector<1x1x16xf32>
    tpu.vector_store %arg11[%c1_236, %c0_237, %c0_238], %445 {strides = array<i32>} : memref<2x12x16xf32, #tpu.memory_space<vmem>>, vector<1x1x16xf32>,
    %c1_239 = arith.constant 1 : index
    %c32_240 = arith.constant 32 : index
    %446 = vector.load %arg10[%c1_239, %c32_240] : memref<2x176xf32, #tpu.memory_space<vmem>>, vector<1x16xf32>
    %c1_241 = arith.constant 1 : index
    %c1_242 = arith.constant 1 : index
    %c0_243 = arith.constant 0 : index
    %447 = vector.load %arg11[%c1_241, %c1_242, %c0_243] : memref<2x12x16xf32, #tpu.memory_space<vmem>>, vector<1x1x16xf32>
    %448 = vector.shape_cast %447 : vector<1x1x16xf32> to vector<1x16xf32>
    %449 = vector.shape_cast %446 : vector<1x16xf32> to vector<1x1x16xf32>
    tpu.vector_store %arg11[%c1_241, %c1_242, %c0_243], %449 {strides = array<i32>} : memref<2x12x16xf32, #tpu.memory_space<vmem>>, vector<1x1x16xf32>,
    %c1_244 = arith.constant 1 : index
    %c48_245 = arith.constant 48 : index
    %450 = vector.load %arg10[%c1_244, %c48_245] : memref<2x176xf32, #tpu.memory_space<vmem>>, vector<1x16xf32>
    %c1_246 = arith.constant 1 : index
    %c2_247 = arith.constant 2 : index
    %c0_248 = arith.constant 0 : index
    %451 = vector.load %arg11[%c1_246, %c2_247, %c0_248] : memref<2x12x16xf32, #tpu.memory_space<vmem>>, vector<1x1x16xf32>
    %452 = vector.shape_cast %451 : vector<1x1x16xf32> to vector<1x16xf32>
    %453 = vector.shape_cast %450 : vector<1x16xf32> to vector<1x1x16xf32>
    tpu.vector_store %arg11[%c1_246, %c2_247, %c0_248], %453 {strides = array<i32>} : memref<2x12x16xf32, #tpu.memory_space<vmem>>, vector<1x1x16xf32>,
    %c1_249 = arith.constant 1 : index
    %c64_250 = arith.constant 64 : index
    %454 = vector.load %arg10[%c1_249, %c64_250] : memref<2x176xf32, #tpu.memory_space<vmem>>, vector<1x16xf32>
    %c1_251 = arith.constant 1 : index
    %c3_252 = arith.constant 3 : index
    %c0_253 = arith.constant 0 : index
    %455 = vector.load %arg11[%c1_251, %c3_252, %c0_253] : memref<2x12x16xf32, #tpu.memory_space<vmem>>, vector<1x1x16xf32>
    %456 = vector.shape_cast %455 : vector<1x1x16xf32> to vector<1x16xf32>
    %457 = vector.shape_cast %454 : vector<1x16xf32> to vector<1x1x16xf32>
    tpu.vector_store %arg11[%c1_251, %c3_252, %c0_253], %457 {strides = array<i32>} : memref<2x12x16xf32, #tpu.memory_space<vmem>>, vector<1x1x16xf32>,
    %c1_254 = arith.constant 1 : index
    %c80_255 = arith.constant 80 : index
    %458 = vector.load %arg10[%c1_254, %c80_255] : memref<2x176xf32, #tpu.memory_space<vmem>>, vector<1x16xf32>
    %c1_256 = arith.constant 1 : index
    %c4_257 = arith.constant 4 : index
    %c0_258 = arith.constant 0 : index
    %459 = vector.load %arg11[%c1_256, %c4_257, %c0_258] : memref<2x12x16xf32, #tpu.memory_space<vmem>>, vector<1x1x16xf32>
    %460 = vector.shape_cast %459 : vector<1x1x16xf32> to vector<1x16xf32>
    %461 = vector.shape_cast %458 : vector<1x16xf32> to vector<1x1x16xf32>
    tpu.vector_store %arg11[%c1_256, %c4_257, %c0_258], %461 {strides = array<i32>} : memref<2x12x16xf32, #tpu.memory_space<vmem>>, vector<1x1x16xf32>,
    %c1_259 = arith.constant 1 : index
    %c96_260 = arith.constant 96 : index
    %462 = vector.load %arg10[%c1_259, %c96_260] : memref<2x176xf32, #tpu.memory_space<vmem>>, vector<1x16xf32>
    %c1_261 = arith.constant 1 : index
    %c5_262 = arith.constant 5 : index
    %c0_263 = arith.constant 0 : index
    %463 = vector.load %arg11[%c1_261, %c5_262, %c0_263] : memref<2x12x16xf32, #tpu.memory_space<vmem>>, vector<1x1x16xf32>
    %464 = vector.shape_cast %463 : vector<1x1x16xf32> to vector<1x16xf32>
    %465 = vector.shape_cast %462 : vector<1x16xf32> to vector<1x1x16xf32>
    tpu.vector_store %arg11[%c1_261, %c5_262, %c0_263], %465 {strides = array<i32>} : memref<2x12x16xf32, #tpu.memory_space<vmem>>, vector<1x1x16xf32>,
    %c1_264 = arith.constant 1 : index
    %c112_265 = arith.constant 112 : index
    %466 = vector.load %arg10[%c1_264, %c112_265] : memref<2x176xf32, #tpu.memory_space<vmem>>, vector<1x16xf32>
    %c1_266 = arith.constant 1 : index
    %c6_267 = arith.constant 6 : index
    %c0_268 = arith.constant 0 : index
    %467 = vector.load %arg11[%c1_266, %c6_267, %c0_268] : memref<2x12x16xf32, #tpu.memory_space<vmem>>, vector<1x1x16xf32>
    %468 = vector.shape_cast %467 : vector<1x1x16xf32> to vector<1x16xf32>
    %469 = vector.shape_cast %466 : vector<1x16xf32> to vector<1x1x16xf32>
    tpu.vector_store %arg11[%c1_266, %c6_267, %c0_268], %469 {strides = array<i32>} : memref<2x12x16xf32, #tpu.memory_space<vmem>>, vector<1x1x16xf32>,
    %c1_269 = arith.constant 1 : index
    %c128_270 = arith.constant 128 : index
    %470 = vector.load %arg10[%c1_269, %c128_270] : memref<2x176xf32, #tpu.memory_space<vmem>>, vector<1x16xf32>
    %c1_271 = arith.constant 1 : index
    %c7_272 = arith.constant 7 : index
    %c0_273 = arith.constant 0 : index
    %471 = vector.load %arg11[%c1_271, %c7_272, %c0_273] : memref<2x12x16xf32, #tpu.memory_space<vmem>>, vector<1x1x16xf32>
    %472 = vector.shape_cast %471 : vector<1x1x16xf32> to vector<1x16xf32>
    %473 = vector.shape_cast %470 : vector<1x16xf32> to vector<1x1x16xf32>
    tpu.vector_store %arg11[%c1_271, %c7_272, %c0_273], %473 {strides = array<i32>} : memref<2x12x16xf32, #tpu.memory_space<vmem>>, vector<1x1x16xf32>,
    %c1_274 = arith.constant 1 : index
    %c144_275 = arith.constant 144 : index
    %474 = vector.load %arg10[%c1_274, %c144_275] : memref<2x176xf32, #tpu.memory_space<vmem>>, vector<1x8xf32>
    %c1_276 = arith.constant 1 : index
    %c8_277 = arith.constant 8 : index
    %c0_278 = arith.constant 0 : index
    %475 = vector.load %arg11[%c1_276, %c8_277, %c0_278] : memref<2x12x16xf32, #tpu.memory_space<vmem>>, vector<1x1x8xf32>
    %476 = vector.shape_cast %475 : vector<1x1x8xf32> to vector<1x8xf32>
    %477 = vector.shape_cast %474 : vector<1x8xf32> to vector<1x1x8xf32>
    tpu.vector_store %arg11[%c1_276, %c8_277, %c0_278], %477 {strides = array<i32>} : memref<2x12x16xf32, #tpu.memory_space<vmem>>, vector<1x1x8xf32>,
    %c1_279 = arith.constant 1 : index
    %c152_280 = arith.constant 152 : index
    %478 = vector.load %arg10[%c1_279, %c152_280] : memref<2x176xf32, #tpu.memory_space<vmem>>, vector<1x8xf32>
    %c1_281 = arith.constant 1 : index
    %c9_282 = arith.constant 9 : index
    %c0_283 = arith.constant 0 : index
    %479 = vector.load %arg11[%c1_281, %c9_282, %c0_283] : memref<2x12x16xf32, #tpu.memory_space<vmem>>, vector<1x1x8xf32>
    %480 = vector.shape_cast %479 : vector<1x1x8xf32> to vector<1x8xf32>
    %481 = vector.shape_cast %478 : vector<1x8xf32> to vector<1x1x8xf32>
    tpu.vector_store %arg11[%c1_281, %c9_282, %c0_283], %481 {strides = array<i32>} : memref<2x12x16xf32, #tpu.memory_space<vmem>>, vector<1x1x8xf32>,
    %c1_284 = arith.constant 1 : index
    %c160_285 = arith.constant 160 : index
    %482 = vector.load %arg10[%c1_284, %c160_285] : memref<2x176xf32, #tpu.memory_space<vmem>>, vector<1x8xf32>
    %c1_286 = arith.constant 1 : index
    %c10_287 = arith.constant 10 : index
    %c0_288 = arith.constant 0 : index
    %483 = vector.load %arg11[%c1_286, %c10_287, %c0_288] : memref<2x12x16xf32, #tpu.memory_space<vmem>>, vector<1x1x8xf32>
    %484 = vector.shape_cast %483 : vector<1x1x8xf32> to vector<1x8xf32>
    %485 = vector.shape_cast %482 : vector<1x8xf32> to vector<1x1x8xf32>
    tpu.vector_store %arg11[%c1_286, %c10_287, %c0_288], %485 {strides = array<i32>} : memref<2x12x16xf32, #tpu.memory_space<vmem>>, vector<1x1x8xf32>,
    %c1_289 = arith.constant 1 : index
    %c168_290 = arith.constant 168 : index
    %486 = vector.load %arg10[%c1_289, %c168_290] : memref<2x176xf32, #tpu.memory_space<vmem>>, vector<1x8xf32>
    %c1_291 = arith.constant 1 : index
    %c11_292 = arith.constant 11 : index
    %c0_293 = arith.constant 0 : index
    %487 = vector.load %arg11[%c1_291, %c11_292, %c0_293] : memref<2x12x16xf32, #tpu.memory_space<vmem>>, vector<1x1x8xf32>
    %488 = vector.shape_cast %487 : vector<1x1x8xf32> to vector<1x8xf32>
    %489 = vector.shape_cast %486 : vector<1x8xf32> to vector<1x1x8xf32>
    tpu.vector_store %arg11[%c1_291, %c11_292, %c0_293], %489 {strides = array<i32>} : memref<2x12x16xf32, #tpu.memory_space<vmem>>, vector<1x1x8xf32>,
    %c1_294 = arith.constant 1 : index
    %c0_295 = arith.constant 0 : index
    %c0_296 = arith.constant 0 : index
    %490 = vector.load %arg11[%c1_294, %c0_295, %c0_296] : memref<2x12x16xf32, #tpu.memory_space<vmem>>, vector<1x4x8xf32>
    %491 = vector.shape_cast %490 : vector<1x4x8xf32> to vector<4x8xf32>
    %c1_297 = arith.constant 1 : index
    %c0_298 = arith.constant 0 : index
    %c8_299 = arith.constant 8 : index
    %492 = vector.load %arg11[%c1_297, %c0_298, %c8_299] : memref<2x12x16xf32, #tpu.memory_space<vmem>>, vector<1x4x8xf32>
    %493 = vector.shape_cast %492 : vector<1x4x8xf32> to vector<4x8xf32>
    %c1_300 = arith.constant 1 : index
    %c4_301 = arith.constant 4 : index
    %c0_302 = arith.constant 0 : index
    %494 = vector.load %arg11[%c1_300, %c4_301, %c0_302] : memref<2x12x16xf32, #tpu.memory_space<vmem>>, vector<1x4x8xf32>
    %495 = vector.shape_cast %494 : vector<1x4x8xf32> to vector<4x8xf32>
    %c1_303 = arith.constant 1 : index
    %c4_304 = arith.constant 4 : index
    %c8_305 = arith.constant 8 : index
    %496 = vector.load %arg11[%c1_303, %c4_304, %c8_305] : memref<2x12x16xf32, #tpu.memory_space<vmem>>, vector<1x4x8xf32>
    %497 = vector.shape_cast %496 : vector<1x4x8xf32> to vector<4x8xf32>
    %c1_306 = arith.constant 1 : index
    %c8_307 = arith.constant 8 : index
    %c0_308 = arith.constant 0 : index
    %498 = vector.load %arg11[%c1_306, %c8_307, %c0_308] : memref<2x12x16xf32, #tpu.memory_space<vmem>>, vector<1x4x4xf32>
    %499 = vector.shape_cast %498 : vector<1x4x4xf32> to vector<4x4xf32>
    %c1_309 = arith.constant 1 : index
    %c8_310 = arith.constant 8 : index
    %c4_311 = arith.constant 4 : index
    %500 = vector.load %arg11[%c1_309, %c8_310, %c4_311] : memref<2x12x16xf32, #tpu.memory_space<vmem>>, vector<1x4x4xf32>
    %501 = vector.shape_cast %500 : vector<1x4x4xf32> to vector<4x4xf32>
    %c1_312 = arith.constant 1 : index
    %c32_313 = arith.constant 32 : index
    %502 = vector.load %arg9[%c1_312, %c32_313] : memref<2x48xf32, #tpu.memory_space<vmem>>, vector<1x8xf32>
    %c1_314 = arith.constant 1 : index
    %c40_315 = arith.constant 40 : index
    %503 = vector.load %arg9[%c1_314, %c40_315] : memref<2x48xf32, #tpu.memory_space<vmem>>, vector<1x8xf32>
    %504 = vector.broadcast %502 : vector<1x8xf32> to vector<4x8xf32>
    %505 = arith.mulf %495, %504 : vector<4x8xf32>
    %506 = vector.broadcast %503 : vector<1x8xf32> to vector<4x8xf32>
    %507 = arith.mulf %497, %506 : vector<4x8xf32>
    %508 = arith.subf %505, %507 : vector<4x8xf32>
    %509 = vector.broadcast %503 : vector<1x8xf32> to vector<4x8xf32>
    %510 = arith.mulf %495, %509 : vector<4x8xf32>
    %511 = vector.broadcast %502 : vector<1x8xf32> to vector<4x8xf32>
    %512 = arith.mulf %497, %511 : vector<4x8xf32>
    %513 = arith.addf %510, %512 : vector<4x8xf32>
    %cst_316 = arith.constant dense<0.000000e+00> : vector<4x4xf32>
    %514 = tpu.matmul %508, %491, %cst_316 {dimension_numbers = #tpu.dot_dimension_numbers<[1], [1], [0], [0], [0, 0, 1, 0], [], []>} : vector<4x8xf32>, vector<4x8xf32>, vector<4x4xf32> -> vector<4x4xf32>
    %515 = arith.addf %499, %514 : vector<4x4xf32>
    %cst_317 = arith.constant dense<0.000000e+00> : vector<4x4xf32>
    %516 = tpu.matmul %513, %493, %cst_317 {dimension_numbers = #tpu.dot_dimension_numbers<[1], [1], [0], [0], [0, 0, 1, 0], [], []>} : vector<4x8xf32>, vector<4x8xf32>, vector<4x4xf32> -> vector<4x4xf32>
    %517 = arith.subf %515, %516 : vector<4x4xf32>
    %cst_318 = arith.constant dense<0.000000e+00> : vector<4x4xf32>
    %518 = tpu.matmul %508, %493, %cst_318 {dimension_numbers = #tpu.dot_dimension_numbers<[1], [1], [0], [0], [0, 0, 1, 0], [], []>} : vector<4x8xf32>, vector<4x8xf32>, vector<4x4xf32> -> vector<4x4xf32>
    %519 = arith.addf %501, %518 : vector<4x4xf32>
    %cst_319 = arith.constant dense<0.000000e+00> : vector<4x4xf32>
    %520 = tpu.matmul %513, %491, %cst_319 {dimension_numbers = #tpu.dot_dimension_numbers<[1], [1], [0], [0], [0, 0, 1, 0], [], []>} : vector<4x8xf32>, vector<4x8xf32>, vector<4x4xf32> -> vector<4x4xf32>
    %521 = arith.addf %519, %520 : vector<4x4xf32>
    %c0_320 = arith.constant 0 : index
    %c0_321 = arith.constant 0 : index
    %522 = vector.load %arg6[%c0_320, %c0_321] : memref<4x4xf32, #tpu.memory_space<vmem>>, vector<4x4xf32>
    %c0_322 = arith.constant 0 : index
    %c0_323 = arith.constant 0 : index
    %523 = vector.load %arg7[%c0_322, %c0_323] : memref<4x4xf32, #tpu.memory_space<vmem>>, vector<4x4xf32>
    %cst_324 = arith.constant dense<0.000000e+00> : vector<4x4xf32>
    %524 = tpu.matmul %517, %522, %cst_324 {dimension_numbers = #tpu.dot_dimension_numbers<[1], [1], [0], [0], [0, 0, 1, 0], [], []>} : vector<4x4xf32>, vector<4x4xf32>, vector<4x4xf32> -> vector<4x4xf32>
    %cst_325 = arith.constant dense<0.000000e+00> : vector<4x4xf32>
    %525 = tpu.matmul %521, %523, %cst_325 {dimension_numbers = #tpu.dot_dimension_numbers<[1], [1], [0], [0], [0, 0, 1, 0], [], []>} : vector<4x4xf32>, vector<4x4xf32>, vector<4x4xf32> -> vector<4x4xf32>
    %526 = arith.addf %524, %525 : vector<4x4xf32>
    %cst_326 = arith.constant dense<0.000000e+00> : vector<4x4xf32>
    %527 = tpu.matmul %517, %523, %cst_326 {dimension_numbers = #tpu.dot_dimension_numbers<[1], [1], [0], [0], [0, 0, 1, 0], [], []>} : vector<4x4xf32>, vector<4x4xf32>, vector<4x4xf32> -> vector<4x4xf32>
    %cst_327 = arith.constant dense<0.000000e+00> : vector<4x4xf32>
    %528 = tpu.matmul %521, %522, %cst_327 {dimension_numbers = #tpu.dot_dimension_numbers<[1], [1], [0], [0], [0, 0, 1, 0], [], []>} : vector<4x4xf32>, vector<4x4xf32>, vector<4x4xf32> -> vector<4x4xf32>
    %529 = arith.subf %527, %528 : vector<4x4xf32>
    %530 = arith.mulf %526, %526 : vector<4x4xf32>
    %531 = arith.mulf %529, %529 : vector<4x4xf32>
    %532 = arith.addf %530, %531 : vector<4x4xf32>
    %533 = arith.mulf %526, %77 : vector<4x4xf32>
    %cst_328 = arith.constant dense<0.000000e+00> : vector<4xf32>
    %534 = vector.multi_reduction <add>, %533, %cst_328 [1] : vector<4x4xf32> to vector<4xf32>
    %535 = vector.shape_cast %534 : vector<4xf32> to vector<4x1xf32>
    %536 = arith.mulf %529, %77 : vector<4x4xf32>
    %cst_329 = arith.constant dense<0.000000e+00> : vector<4xf32>
    %537 = vector.multi_reduction <add>, %536, %cst_329 [1] : vector<4x4xf32> to vector<4xf32>
    %538 = vector.shape_cast %537 : vector<4xf32> to vector<4x1xf32>
    %539 = arith.mulf %532, %77 : vector<4x4xf32>
    %cst_330 = arith.constant dense<0.000000e+00> : vector<4xf32>
    %540 = vector.multi_reduction <add>, %539, %cst_330 [1] : vector<4x4xf32> to vector<4xf32>
    %541 = vector.shape_cast %540 : vector<4xf32> to vector<4x1xf32>
    %cst_331 = arith.constant dense<0.000000e+00> : vector<4xf32>
    %542 = vector.multi_reduction <add>, %532, %cst_331 [1] : vector<4x4xf32> to vector<4xf32>
    %543 = vector.shape_cast %542 : vector<4xf32> to vector<4x1xf32>
    %cst_332 = arith.constant 1.000000e+00 : f32
    %544 = vector.broadcast %cst_332 : f32 to vector<4x1xf32>
    %545 = arith.addf %543, %544 : vector<4x1xf32>
    %546 = tpu.reciprocal %545 {approx = true} : vector<4x1xf32> -> vector<4x1xf32>
    %547 = arith.mulf %535, %546 : vector<4x1xf32>
    %548 = arith.mulf %538, %546 : vector<4x1xf32>
    %549 = arith.subf %543, %541 : vector<4x1xf32>
    %cst_333 = arith.constant 1.000000e+00 : f32
    %550 = vector.broadcast %cst_333 : f32 to vector<4x1xf32>
    %551 = arith.addf %549, %550 : vector<4x1xf32>
    %552 = tpu.reciprocal %551 {approx = true} : vector<4x1xf32> -> vector<4x1xf32>
    %553 = arith.mulf %545, %552 : vector<4x1xf32>
    %554 = arith.mulf %547, %547 : vector<4x1xf32>
    %555 = arith.mulf %548, %548 : vector<4x1xf32>
    %556 = arith.addf %554, %555 : vector<4x1xf32>
    %557 = arith.mulf %556, %553 : vector<4x1xf32>
    %558 = vector.broadcast %557 : vector<4x1xf32> to vector<4x4xf32>
    %559 = arith.mulf %517, %558 : vector<4x4xf32>
    %560 = vector.broadcast %557 : vector<4x1xf32> to vector<4x4xf32>
    %561 = arith.mulf %521, %560 : vector<4x4xf32>
    %cst_334 = arith.constant dense<0.000000e+00> : vector<4x4xf32>
    %562 = tpu.matmul %517, %559, %cst_334 {dimension_numbers = #tpu.dot_dimension_numbers<[0], [0], [1], [1], [0, 1, 1, 1], [], []>} : vector<4x4xf32>, vector<4x4xf32>, vector<4x4xf32> -> vector<4x4xf32>
    %cst_335 = arith.constant dense<0.000000e+00> : vector<4x4xf32>
    %563 = tpu.matmul %521, %561, %cst_335 {dimension_numbers = #tpu.dot_dimension_numbers<[0], [0], [1], [1], [0, 1, 1, 1], [], []>} : vector<4x4xf32>, vector<4x4xf32>, vector<4x4xf32> -> vector<4x4xf32>
    %564 = arith.addf %562, %563 : vector<4x4xf32>
    %cst_336 = arith.constant dense<0.000000e+00> : vector<4x4xf32>
    %565 = tpu.matmul %517, %561, %cst_336 {dimension_numbers = #tpu.dot_dimension_numbers<[0], [0], [1], [1], [0, 1, 1, 1], [], []>} : vector<4x4xf32>, vector<4x4xf32>, vector<4x4xf32> -> vector<4x4xf32>
    %cst_337 = arith.constant dense<0.000000e+00> : vector<4x4xf32>
    %566 = tpu.matmul %521, %559, %cst_337 {dimension_numbers = #tpu.dot_dimension_numbers<[0], [0], [1], [1], [0, 1, 1, 1], [], []>} : vector<4x4xf32>, vector<4x4xf32>, vector<4x4xf32> -> vector<4x4xf32>
    %567 = arith.subf %565, %566 : vector<4x4xf32>
    %568 = arith.mulf %547, %553 : vector<4x1xf32>
    %569 = arith.mulf %548, %553 : vector<4x1xf32>
    %570 = vector.broadcast %568 : vector<4x1xf32> to vector<4x4xf32>
    %571 = arith.mulf %517, %570 : vector<4x4xf32>
    %572 = vector.broadcast %569 : vector<4x1xf32> to vector<4x4xf32>
    %573 = arith.mulf %521, %572 : vector<4x4xf32>
    %574 = arith.subf %571, %573 : vector<4x4xf32>
    %575 = vector.broadcast %569 : vector<4x1xf32> to vector<4x4xf32>
    %576 = arith.mulf %517, %575 : vector<4x4xf32>
    %577 = vector.broadcast %568 : vector<4x1xf32> to vector<4x4xf32>
    %578 = arith.mulf %521, %577 : vector<4x4xf32>
    %579 = arith.addf %576, %578 : vector<4x4xf32>
    %cst_338 = arith.constant dense<0.000000e+00> : vector<4x4xf32>
    %580 = tpu.matmul %522, %564, %cst_338 {dimension_numbers = #tpu.dot_dimension_numbers<[1], [0], [0], [1], [0, 0, 1, 1], [], []>} : vector<4x4xf32>, vector<4x4xf32>, vector<4x4xf32> -> vector<4x4xf32>
    %cst_339 = arith.constant dense<0.000000e+00> : vector<4x4xf32>
    %581 = tpu.matmul %523, %567, %cst_339 {dimension_numbers = #tpu.dot_dimension_numbers<[1], [0], [0], [1], [0, 0, 1, 1], [], []>} : vector<4x4xf32>, vector<4x4xf32>, vector<4x4xf32> -> vector<4x4xf32>
    %582 = arith.subf %580, %581 : vector<4x4xf32>
    %cst_340 = arith.constant dense<0.000000e+00> : vector<4x4xf32>
    %583 = tpu.matmul %522, %567, %cst_340 {dimension_numbers = #tpu.dot_dimension_numbers<[1], [0], [0], [1], [0, 0, 1, 1], [], []>} : vector<4x4xf32>, vector<4x4xf32>, vector<4x4xf32> -> vector<4x4xf32>
    %cst_341 = arith.constant dense<0.000000e+00> : vector<4x4xf32>
    %584 = tpu.matmul %523, %564, %cst_341 {dimension_numbers = #tpu.dot_dimension_numbers<[1], [0], [0], [1], [0, 0, 1, 1], [], []>} : vector<4x4xf32>, vector<4x4xf32>, vector<4x4xf32> -> vector<4x4xf32>
    %585 = arith.addf %583, %584 : vector<4x4xf32>
    %586 = arith.subf %582, %574 : vector<4x4xf32>
    %cst_342 = arith.constant 2.000000e+00 : f32
    %587 = vector.broadcast %cst_342 : f32 to vector<4x4xf32>
    %588 = arith.mulf %587, %586 : vector<4x4xf32>
    %589 = arith.subf %585, %579 : vector<4x4xf32>
    %cst_343 = arith.constant 2.000000e+00 : f32
    %590 = vector.broadcast %cst_343 : f32 to vector<4x4xf32>
    %591 = arith.mulf %590, %589 : vector<4x4xf32>
    %c0_344 = arith.constant 0 : index
    %592 = memref.load %arg8[%c0_344] : memref<4xf32, #tpu.memory_space<smem>>
    %593 = vector.broadcast %592 : f32 to vector<4x4xf32>
    %594 = arith.mulf %593, %588 : vector<4x4xf32>
    %595 = arith.subf %522, %594 : vector<4x4xf32>
    %596 = vector.broadcast %592 : f32 to vector<4x4xf32>
    %597 = arith.mulf %596, %591 : vector<4x4xf32>
    %598 = arith.subf %523, %597 : vector<4x4xf32>
    %599 = arith.mulf %595, %595 : vector<4x4xf32>
    %600 = arith.mulf %598, %598 : vector<4x4xf32>
    %601 = arith.addf %599, %600 : vector<4x4xf32>
    %602 = vector.shape_cast %601 : vector<4x4xf32> to vector<1x4x4xf32>
    %cst_345 = arith.constant dense<0.000000e+00> : vector<1xf32>
    %603 = vector.multi_reduction <add>, %602, %cst_345 [1, 2] : vector<1x4x4xf32> to vector<1xf32>
    %604 = vector.shape_cast %603 : vector<1xf32> to vector<1x1x1xf32>
    %605 = vector.extract %604[0, 0, 0] : f32 from vector<1x1x1xf32>
    %606 = math.sqrt %605 : f32
    %cst_346 = arith.constant 1.000000e+00 : f32
    %607 = arith.subf %606, %cst_346 : f32
    %cst_347 = arith.constant 0.000000e+00 : f32
    %608 = arith.maximumf %cst_347, %607 : f32
    %cst_348 = arith.constant 1.000000e+00 : f32
    %609 = arith.addf %cst_348, %608 : f32
    %cst_349 = arith.constant 1.000000e+00 : f32
    %610 = arith.divf %cst_349, %609 : f32
    %611 = vector.broadcast %610 : f32 to vector<4x4xf32>
    %612 = arith.mulf %595, %611 : vector<4x4xf32>
    %613 = vector.broadcast %610 : f32 to vector<4x4xf32>
    %614 = arith.mulf %598, %613 : vector<4x4xf32>
    %cst_350 = arith.constant dense<0.000000e+00> : vector<4x4xf32>
    %615 = tpu.matmul %612, %564, %cst_350 {dimension_numbers = #tpu.dot_dimension_numbers<[1], [0], [0], [1], [0, 0, 1, 1], [], []>} : vector<4x4xf32>, vector<4x4xf32>, vector<4x4xf32> -> vector<4x4xf32>
    %cst_351 = arith.constant dense<0.000000e+00> : vector<4x4xf32>
    %616 = tpu.matmul %614, %567, %cst_351 {dimension_numbers = #tpu.dot_dimension_numbers<[1], [0], [0], [1], [0, 0, 1, 1], [], []>} : vector<4x4xf32>, vector<4x4xf32>, vector<4x4xf32> -> vector<4x4xf32>
    %617 = arith.subf %615, %616 : vector<4x4xf32>
    %cst_352 = arith.constant dense<0.000000e+00> : vector<4x4xf32>
    %618 = tpu.matmul %612, %567, %cst_352 {dimension_numbers = #tpu.dot_dimension_numbers<[1], [0], [0], [1], [0, 0, 1, 1], [], []>} : vector<4x4xf32>, vector<4x4xf32>, vector<4x4xf32> -> vector<4x4xf32>
    %cst_353 = arith.constant dense<0.000000e+00> : vector<4x4xf32>
    %619 = tpu.matmul %614, %564, %cst_353 {dimension_numbers = #tpu.dot_dimension_numbers<[1], [0], [0], [1], [0, 0, 1, 1], [], []>} : vector<4x4xf32>, vector<4x4xf32>, vector<4x4xf32> -> vector<4x4xf32>
    %620 = arith.addf %618, %619 : vector<4x4xf32>
    %621 = arith.subf %617, %574 : vector<4x4xf32>
    %cst_354 = arith.constant 2.000000e+00 : f32
    %622 = vector.broadcast %cst_354 : f32 to vector<4x4xf32>
    %623 = arith.mulf %622, %621 : vector<4x4xf32>
    %624 = arith.subf %620, %579 : vector<4x4xf32>
    %cst_355 = arith.constant 2.000000e+00 : f32
    %625 = vector.broadcast %cst_355 : f32 to vector<4x4xf32>
    %626 = arith.mulf %625, %624 : vector<4x4xf32>
    %c1_356 = arith.constant 1 : index
    %627 = memref.load %arg8[%c1_356] : memref<4xf32, #tpu.memory_space<smem>>
    %628 = vector.broadcast %627 : f32 to vector<4x4xf32>
    %629 = arith.mulf %628, %623 : vector<4x4xf32>
    %630 = arith.subf %612, %629 : vector<4x4xf32>
    %631 = vector.broadcast %627 : f32 to vector<4x4xf32>
    %632 = arith.mulf %631, %626 : vector<4x4xf32>
    %633 = arith.subf %614, %632 : vector<4x4xf32>
    %634 = arith.mulf %630, %630 : vector<4x4xf32>
    %635 = arith.mulf %633, %633 : vector<4x4xf32>
    %636 = arith.addf %634, %635 : vector<4x4xf32>
    %637 = vector.shape_cast %636 : vector<4x4xf32> to vector<1x4x4xf32>
    %cst_357 = arith.constant dense<0.000000e+00> : vector<1xf32>
    %638 = vector.multi_reduction <add>, %637, %cst_357 [1, 2] : vector<1x4x4xf32> to vector<1xf32>
    %639 = vector.shape_cast %638 : vector<1xf32> to vector<1x1x1xf32>
    %640 = vector.extract %639[0, 0, 0] : f32 from vector<1x1x1xf32>
    %641 = math.sqrt %640 : f32
    %cst_358 = arith.constant 1.000000e+00 : f32
    %642 = arith.subf %641, %cst_358 : f32
    %cst_359 = arith.constant 0.000000e+00 : f32
    %643 = arith.maximumf %cst_359, %642 : f32
    %cst_360 = arith.constant 1.000000e+00 : f32
    %644 = arith.addf %cst_360, %643 : f32
    %cst_361 = arith.constant 1.000000e+00 : f32
    %645 = arith.divf %cst_361, %644 : f32
    %646 = vector.broadcast %645 : f32 to vector<4x4xf32>
    %647 = arith.mulf %630, %646 : vector<4x4xf32>
    %648 = vector.broadcast %645 : f32 to vector<4x4xf32>
    %649 = arith.mulf %633, %648 : vector<4x4xf32>
    %cst_362 = arith.constant dense<0.000000e+00> : vector<4x4xf32>
    %650 = tpu.matmul %517, %647, %cst_362 {dimension_numbers = #tpu.dot_dimension_numbers<[1], [1], [0], [0], [0, 0, 1, 0], [], []>} : vector<4x4xf32>, vector<4x4xf32>, vector<4x4xf32> -> vector<4x4xf32>
    %cst_363 = arith.constant dense<0.000000e+00> : vector<4x4xf32>
    %651 = tpu.matmul %521, %649, %cst_363 {dimension_numbers = #tpu.dot_dimension_numbers<[1], [1], [0], [0], [0, 0, 1, 0], [], []>} : vector<4x4xf32>, vector<4x4xf32>, vector<4x4xf32> -> vector<4x4xf32>
    %652 = arith.addf %650, %651 : vector<4x4xf32>
    %cst_364 = arith.constant dense<0.000000e+00> : vector<4x4xf32>
    %653 = tpu.matmul %517, %649, %cst_364 {dimension_numbers = #tpu.dot_dimension_numbers<[1], [1], [0], [0], [0, 0, 1, 0], [], []>} : vector<4x4xf32>, vector<4x4xf32>, vector<4x4xf32> -> vector<4x4xf32>
    %cst_365 = arith.constant dense<0.000000e+00> : vector<4x4xf32>
    %654 = tpu.matmul %521, %647, %cst_365 {dimension_numbers = #tpu.dot_dimension_numbers<[1], [1], [0], [0], [0, 0, 1, 0], [], []>} : vector<4x4xf32>, vector<4x4xf32>, vector<4x4xf32> -> vector<4x4xf32>
    %655 = arith.subf %653, %654 : vector<4x4xf32>
    %656 = arith.mulf %652, %652 : vector<4x4xf32>
    %657 = arith.mulf %655, %655 : vector<4x4xf32>
    %658 = arith.addf %656, %657 : vector<4x4xf32>
    %659 = arith.mulf %652, %77 : vector<4x4xf32>
    %cst_366 = arith.constant dense<0.000000e+00> : vector<4xf32>
    %660 = vector.multi_reduction <add>, %659, %cst_366 [1] : vector<4x4xf32> to vector<4xf32>
    %661 = vector.shape_cast %660 : vector<4xf32> to vector<4x1xf32>
    %662 = arith.mulf %655, %77 : vector<4x4xf32>
    %cst_367 = arith.constant dense<0.000000e+00> : vector<4xf32>
    %663 = vector.multi_reduction <add>, %662, %cst_367 [1] : vector<4x4xf32> to vector<4xf32>
    %664 = vector.shape_cast %663 : vector<4xf32> to vector<4x1xf32>
    %665 = arith.mulf %658, %77 : vector<4x4xf32>
    %cst_368 = arith.constant dense<0.000000e+00> : vector<4xf32>
    %666 = vector.multi_reduction <add>, %665, %cst_368 [1] : vector<4x4xf32> to vector<4xf32>
    %667 = vector.shape_cast %666 : vector<4xf32> to vector<4x1xf32>
    %cst_369 = arith.constant dense<0.000000e+00> : vector<4xf32>
    %668 = vector.multi_reduction <add>, %658, %cst_369 [1] : vector<4x4xf32> to vector<4xf32>
    %669 = vector.shape_cast %668 : vector<4xf32> to vector<4x1xf32>
    %cst_370 = arith.constant 1.000000e+00 : f32
    %670 = vector.broadcast %cst_370 : f32 to vector<4x1xf32>
    %671 = arith.addf %669, %670 : vector<4x1xf32>
    %672 = tpu.reciprocal %671 {approx = true} : vector<4x1xf32> -> vector<4x1xf32>
    %673 = arith.mulf %661, %672 : vector<4x1xf32>
    %674 = arith.mulf %664, %672 : vector<4x1xf32>
    %675 = arith.subf %669, %667 : vector<4x1xf32>
    %cst_371 = arith.constant 1.000000e+00 : f32
    %676 = vector.broadcast %cst_371 : f32 to vector<4x1xf32>
    %677 = arith.addf %675, %676 : vector<4x1xf32>
    %678 = tpu.reciprocal %677 {approx = true} : vector<4x1xf32> -> vector<4x1xf32>
    %679 = arith.mulf %671, %678 : vector<4x1xf32>
    %680 = arith.mulf %673, %673 : vector<4x1xf32>
    %681 = arith.mulf %674, %674 : vector<4x1xf32>
    %682 = arith.addf %680, %681 : vector<4x1xf32>
    %683 = arith.mulf %682, %679 : vector<4x1xf32>
    %684 = vector.broadcast %683 : vector<4x1xf32> to vector<4x4xf32>
    %685 = arith.mulf %517, %684 : vector<4x4xf32>
    %686 = vector.broadcast %683 : vector<4x1xf32> to vector<4x4xf32>
    %687 = arith.mulf %521, %686 : vector<4x4xf32>
    %cst_372 = arith.constant dense<0.000000e+00> : vector<4x4xf32>
    %688 = tpu.matmul %517, %685, %cst_372 {dimension_numbers = #tpu.dot_dimension_numbers<[0], [0], [1], [1], [0, 1, 1, 1], [], []>} : vector<4x4xf32>, vector<4x4xf32>, vector<4x4xf32> -> vector<4x4xf32>
    %cst_373 = arith.constant dense<0.000000e+00> : vector<4x4xf32>
    %689 = tpu.matmul %521, %687, %cst_373 {dimension_numbers = #tpu.dot_dimension_numbers<[0], [0], [1], [1], [0, 1, 1, 1], [], []>} : vector<4x4xf32>, vector<4x4xf32>, vector<4x4xf32> -> vector<4x4xf32>
    %690 = arith.addf %688, %689 : vector<4x4xf32>
    %cst_374 = arith.constant dense<0.000000e+00> : vector<4x4xf32>
    %691 = tpu.matmul %517, %687, %cst_374 {dimension_numbers = #tpu.dot_dimension_numbers<[0], [0], [1], [1], [0, 1, 1, 1], [], []>} : vector<4x4xf32>, vector<4x4xf32>, vector<4x4xf32> -> vector<4x4xf32>
    %cst_375 = arith.constant dense<0.000000e+00> : vector<4x4xf32>
    %692 = tpu.matmul %521, %685, %cst_375 {dimension_numbers = #tpu.dot_dimension_numbers<[0], [0], [1], [1], [0, 1, 1, 1], [], []>} : vector<4x4xf32>, vector<4x4xf32>, vector<4x4xf32> -> vector<4x4xf32>
    %693 = arith.subf %691, %692 : vector<4x4xf32>
    %694 = arith.mulf %673, %679 : vector<4x1xf32>
    %695 = arith.mulf %674, %679 : vector<4x1xf32>
    %696 = vector.broadcast %694 : vector<4x1xf32> to vector<4x4xf32>
    %697 = arith.mulf %517, %696 : vector<4x4xf32>
    %698 = vector.broadcast %695 : vector<4x1xf32> to vector<4x4xf32>
    %699 = arith.mulf %521, %698 : vector<4x4xf32>
    %700 = arith.subf %697, %699 : vector<4x4xf32>
    %701 = vector.broadcast %695 : vector<4x1xf32> to vector<4x4xf32>
    %702 = arith.mulf %517, %701 : vector<4x4xf32>
    %703 = vector.broadcast %694 : vector<4x1xf32> to vector<4x4xf32>
    %704 = arith.mulf %521, %703 : vector<4x4xf32>
    %705 = arith.addf %702, %704 : vector<4x4xf32>
    %cst_376 = arith.constant dense<0.000000e+00> : vector<4x4xf32>
    %706 = tpu.matmul %647, %690, %cst_376 {dimension_numbers = #tpu.dot_dimension_numbers<[1], [0], [0], [1], [0, 0, 1, 1], [], []>} : vector<4x4xf32>, vector<4x4xf32>, vector<4x4xf32> -> vector<4x4xf32>
    %cst_377 = arith.constant dense<0.000000e+00> : vector<4x4xf32>
    %707 = tpu.matmul %649, %693, %cst_377 {dimension_numbers = #tpu.dot_dimension_numbers<[1], [0], [0], [1], [0, 0, 1, 1], [], []>} : vector<4x4xf32>, vector<4x4xf32>, vector<4x4xf32> -> vector<4x4xf32>
    %708 = arith.subf %706, %707 : vector<4x4xf32>
    %cst_378 = arith.constant dense<0.000000e+00> : vector<4x4xf32>
    %709 = tpu.matmul %647, %693, %cst_378 {dimension_numbers = #tpu.dot_dimension_numbers<[1], [0], [0], [1], [0, 0, 1, 1], [], []>} : vector<4x4xf32>, vector<4x4xf32>, vector<4x4xf32> -> vector<4x4xf32>
    %cst_379 = arith.constant dense<0.000000e+00> : vector<4x4xf32>
    %710 = tpu.matmul %649, %690, %cst_379 {dimension_numbers = #tpu.dot_dimension_numbers<[1], [0], [0], [1], [0, 0, 1, 1], [], []>} : vector<4x4xf32>, vector<4x4xf32>, vector<4x4xf32> -> vector<4x4xf32>
    %711 = arith.addf %709, %710 : vector<4x4xf32>
    %712 = arith.subf %708, %700 : vector<4x4xf32>
    %cst_380 = arith.constant 2.000000e+00 : f32
    %713 = vector.broadcast %cst_380 : f32 to vector<4x4xf32>
    %714 = arith.mulf %713, %712 : vector<4x4xf32>
    %715 = arith.subf %711, %705 : vector<4x4xf32>
    %cst_381 = arith.constant 2.000000e+00 : f32
    %716 = vector.broadcast %cst_381 : f32 to vector<4x4xf32>
    %717 = arith.mulf %716, %715 : vector<4x4xf32>
    %c2_382 = arith.constant 2 : index
    %718 = memref.load %arg8[%c2_382] : memref<4xf32, #tpu.memory_space<smem>>
    %719 = vector.broadcast %718 : f32 to vector<4x4xf32>
    %720 = arith.mulf %719, %714 : vector<4x4xf32>
    %721 = arith.subf %647, %720 : vector<4x4xf32>
    %722 = vector.broadcast %718 : f32 to vector<4x4xf32>
    %723 = arith.mulf %722, %717 : vector<4x4xf32>
    %724 = arith.subf %649, %723 : vector<4x4xf32>
    %725 = arith.mulf %721, %721 : vector<4x4xf32>
    %726 = arith.mulf %724, %724 : vector<4x4xf32>
    %727 = arith.addf %725, %726 : vector<4x4xf32>
    %728 = vector.shape_cast %727 : vector<4x4xf32> to vector<1x4x4xf32>
    %cst_383 = arith.constant dense<0.000000e+00> : vector<1xf32>
    %729 = vector.multi_reduction <add>, %728, %cst_383 [1, 2] : vector<1x4x4xf32> to vector<1xf32>
    %730 = vector.shape_cast %729 : vector<1xf32> to vector<1x1x1xf32>
    %731 = vector.extract %730[0, 0, 0] : f32 from vector<1x1x1xf32>
    %732 = math.sqrt %731 : f32
    %cst_384 = arith.constant 1.000000e+00 : f32
    %733 = arith.subf %732, %cst_384 : f32
    %cst_385 = arith.constant 0.000000e+00 : f32
    %734 = arith.maximumf %cst_385, %733 : f32
    %cst_386 = arith.constant 1.000000e+00 : f32
    %735 = arith.addf %cst_386, %734 : f32
    %cst_387 = arith.constant 1.000000e+00 : f32
    %736 = arith.divf %cst_387, %735 : f32
    %737 = vector.broadcast %736 : f32 to vector<4x4xf32>
    %738 = arith.mulf %721, %737 : vector<4x4xf32>
    %739 = vector.broadcast %736 : f32 to vector<4x4xf32>
    %740 = arith.mulf %724, %739 : vector<4x4xf32>
    %cst_388 = arith.constant dense<0.000000e+00> : vector<4x4xf32>
    %741 = tpu.matmul %738, %690, %cst_388 {dimension_numbers = #tpu.dot_dimension_numbers<[1], [0], [0], [1], [0, 0, 1, 1], [], []>} : vector<4x4xf32>, vector<4x4xf32>, vector<4x4xf32> -> vector<4x4xf32>
    %cst_389 = arith.constant dense<0.000000e+00> : vector<4x4xf32>
    %742 = tpu.matmul %740, %693, %cst_389 {dimension_numbers = #tpu.dot_dimension_numbers<[1], [0], [0], [1], [0, 0, 1, 1], [], []>} : vector<4x4xf32>, vector<4x4xf32>, vector<4x4xf32> -> vector<4x4xf32>
    %743 = arith.subf %741, %742 : vector<4x4xf32>
    %cst_390 = arith.constant dense<0.000000e+00> : vector<4x4xf32>
    %744 = tpu.matmul %738, %693, %cst_390 {dimension_numbers = #tpu.dot_dimension_numbers<[1], [0], [0], [1], [0, 0, 1, 1], [], []>} : vector<4x4xf32>, vector<4x4xf32>, vector<4x4xf32> -> vector<4x4xf32>
    %cst_391 = arith.constant dense<0.000000e+00> : vector<4x4xf32>
    %745 = tpu.matmul %740, %690, %cst_391 {dimension_numbers = #tpu.dot_dimension_numbers<[1], [0], [0], [1], [0, 0, 1, 1], [], []>} : vector<4x4xf32>, vector<4x4xf32>, vector<4x4xf32> -> vector<4x4xf32>
    %746 = arith.addf %744, %745 : vector<4x4xf32>
    %747 = arith.subf %743, %700 : vector<4x4xf32>
    %cst_392 = arith.constant 2.000000e+00 : f32
    %748 = vector.broadcast %cst_392 : f32 to vector<4x4xf32>
    %749 = arith.mulf %748, %747 : vector<4x4xf32>
    %750 = arith.subf %746, %705 : vector<4x4xf32>
    %cst_393 = arith.constant 2.000000e+00 : f32
    %751 = vector.broadcast %cst_393 : f32 to vector<4x4xf32>
    %752 = arith.mulf %751, %750 : vector<4x4xf32>
    %c3_394 = arith.constant 3 : index
    %753 = memref.load %arg8[%c3_394] : memref<4xf32, #tpu.memory_space<smem>>
    %754 = vector.broadcast %753 : f32 to vector<4x4xf32>
    %755 = arith.mulf %754, %749 : vector<4x4xf32>
    %756 = arith.subf %738, %755 : vector<4x4xf32>
    %757 = vector.broadcast %753 : f32 to vector<4x4xf32>
    %758 = arith.mulf %757, %752 : vector<4x4xf32>
    %759 = arith.subf %740, %758 : vector<4x4xf32>
    %760 = arith.mulf %756, %756 : vector<4x4xf32>
    %761 = arith.mulf %759, %759 : vector<4x4xf32>
    %762 = arith.addf %760, %761 : vector<4x4xf32>
    %763 = vector.shape_cast %762 : vector<4x4xf32> to vector<1x4x4xf32>
    %cst_395 = arith.constant dense<0.000000e+00> : vector<1xf32>
    %764 = vector.multi_reduction <add>, %763, %cst_395 [1, 2] : vector<1x4x4xf32> to vector<1xf32>
    %765 = vector.shape_cast %764 : vector<1xf32> to vector<1x1x1xf32>
    %766 = vector.extract %765[0, 0, 0] : f32 from vector<1x1x1xf32>
    %767 = math.sqrt %766 : f32
    %cst_396 = arith.constant 1.000000e+00 : f32
    %768 = arith.subf %767, %cst_396 : f32
    %cst_397 = arith.constant 0.000000e+00 : f32
    %769 = arith.maximumf %cst_397, %768 : f32
    %cst_398 = arith.constant 1.000000e+00 : f32
    %770 = arith.addf %cst_398, %769 : f32
    %cst_399 = arith.constant 1.000000e+00 : f32
    %771 = arith.divf %cst_399, %770 : f32
    %772 = vector.broadcast %771 : f32 to vector<4x4xf32>
    %773 = arith.mulf %756, %772 : vector<4x4xf32>
    %774 = vector.broadcast %771 : f32 to vector<4x4xf32>
    %775 = arith.mulf %759, %774 : vector<4x4xf32>
    %c1_400 = arith.constant 1 : index
    %c0_401 = arith.constant 0 : index
    %c0_402 = arith.constant 0 : index
    %776 = vector.load %arg12[%c1_400, %c0_401, %c0_402] : memref<2x4x8xf32, #tpu.memory_space<vmem>>, vector<1x4x4xf32>
    %777 = vector.shape_cast %776 : vector<1x4x4xf32> to vector<4x4xf32>
    %778 = vector.shape_cast %773 : vector<4x4xf32> to vector<1x4x4xf32>
    tpu.vector_store %arg12[%c1_400, %c0_401, %c0_402], %778 {strides = array<i32>} : memref<2x4x8xf32, #tpu.memory_space<vmem>>, vector<1x4x4xf32>,
    %c1_403 = arith.constant 1 : index
    %c0_404 = arith.constant 0 : index
    %c4_405 = arith.constant 4 : index
    %779 = vector.load %arg12[%c1_403, %c0_404, %c4_405] : memref<2x4x8xf32, #tpu.memory_space<vmem>>, vector<1x4x4xf32>
    %780 = vector.shape_cast %779 : vector<1x4x4xf32> to vector<4x4xf32>
    %781 = vector.shape_cast %775 : vector<4x4xf32> to vector<1x4x4xf32>
    tpu.vector_store %arg12[%c1_403, %c0_404, %c4_405], %781 {strides = array<i32>} : memref<2x4x8xf32, #tpu.memory_space<vmem>>, vector<1x4x4xf32>,
    %c1_406 = arith.constant 1 : index
    %c0_407 = arith.constant 0 : index
    %c0_408 = arith.constant 0 : index
    %782 = vector.load %arg12[%c1_406, %c0_407, %c0_408] : memref<2x4x8xf32, #tpu.memory_space<vmem>>, vector<1x1x4xf32>
    %783 = vector.shape_cast %782 : vector<1x1x4xf32> to vector<1x4xf32>
    %c1_409 = arith.constant 1 : index
    %c0_410 = arith.constant 0 : index
    %784 = vector.load %arg9[%c1_409, %c0_410] : memref<2x48xf32, #tpu.memory_space<vmem>>, vector<1x4xf32>
    tpu.vector_store %arg9[%c1_409, %c0_410], %783 {strides = array<i32>} : memref<2x48xf32, #tpu.memory_space<vmem>>, vector<1x4xf32>,
    %c1_411 = arith.constant 1 : index
    %c0_412 = arith.constant 0 : index
    %c4_413 = arith.constant 4 : index
    %785 = vector.load %arg12[%c1_411, %c0_412, %c4_413] : memref<2x4x8xf32, #tpu.memory_space<vmem>>, vector<1x1x4xf32>
    %786 = vector.shape_cast %785 : vector<1x1x4xf32> to vector<1x4xf32>
    %c1_414 = arith.constant 1 : index
    %c16_415 = arith.constant 16 : index
    %787 = vector.load %arg9[%c1_414, %c16_415] : memref<2x48xf32, #tpu.memory_space<vmem>>, vector<1x4xf32>
    tpu.vector_store %arg9[%c1_414, %c16_415], %786 {strides = array<i32>} : memref<2x48xf32, #tpu.memory_space<vmem>>, vector<1x4xf32>,
    %c1_416 = arith.constant 1 : index
    %c1_417 = arith.constant 1 : index
    %c0_418 = arith.constant 0 : index
    %788 = vector.load %arg12[%c1_416, %c1_417, %c0_418] : memref<2x4x8xf32, #tpu.memory_space<vmem>>, vector<1x1x4xf32>
    %789 = vector.shape_cast %788 : vector<1x1x4xf32> to vector<1x4xf32>
    %c1_419 = arith.constant 1 : index
    %c4_420 = arith.constant 4 : index
    %790 = vector.load %arg9[%c1_419, %c4_420] : memref<2x48xf32, #tpu.memory_space<vmem>>, vector<1x4xf32>
    tpu.vector_store %arg9[%c1_419, %c4_420], %789 {strides = array<i32>} : memref<2x48xf32, #tpu.memory_space<vmem>>, vector<1x4xf32>,
    %c1_421 = arith.constant 1 : index
    %c1_422 = arith.constant 1 : index
    %c4_423 = arith.constant 4 : index
    %791 = vector.load %arg12[%c1_421, %c1_422, %c4_423] : memref<2x4x8xf32, #tpu.memory_space<vmem>>, vector<1x1x4xf32>
    %792 = vector.shape_cast %791 : vector<1x1x4xf32> to vector<1x4xf32>
    %c1_424 = arith.constant 1 : index
    %c20_425 = arith.constant 20 : index
    %793 = vector.load %arg9[%c1_424, %c20_425] : memref<2x48xf32, #tpu.memory_space<vmem>>, vector<1x4xf32>
    tpu.vector_store %arg9[%c1_424, %c20_425], %792 {strides = array<i32>} : memref<2x48xf32, #tpu.memory_space<vmem>>, vector<1x4xf32>,
    %c1_426 = arith.constant 1 : index
    %c2_427 = arith.constant 2 : index
    %c0_428 = arith.constant 0 : index
    %794 = vector.load %arg12[%c1_426, %c2_427, %c0_428] : memref<2x4x8xf32, #tpu.memory_space<vmem>>, vector<1x1x4xf32>
    %795 = vector.shape_cast %794 : vector<1x1x4xf32> to vector<1x4xf32>
    %c1_429 = arith.constant 1 : index
    %c8_430 = arith.constant 8 : index
    %796 = vector.load %arg9[%c1_429, %c8_430] : memref<2x48xf32, #tpu.memory_space<vmem>>, vector<1x4xf32>
    tpu.vector_store %arg9[%c1_429, %c8_430], %795 {strides = array<i32>} : memref<2x48xf32, #tpu.memory_space<vmem>>, vector<1x4xf32>,
    %c1_431 = arith.constant 1 : index
    %c2_432 = arith.constant 2 : index
    %c4_433 = arith.constant 4 : index
    %797 = vector.load %arg12[%c1_431, %c2_432, %c4_433] : memref<2x4x8xf32, #tpu.memory_space<vmem>>, vector<1x1x4xf32>
    %798 = vector.shape_cast %797 : vector<1x1x4xf32> to vector<1x4xf32>
    %c1_434 = arith.constant 1 : index
    %c24_435 = arith.constant 24 : index
    %799 = vector.load %arg9[%c1_434, %c24_435] : memref<2x48xf32, #tpu.memory_space<vmem>>, vector<1x4xf32>
    tpu.vector_store %arg9[%c1_434, %c24_435], %798 {strides = array<i32>} : memref<2x48xf32, #tpu.memory_space<vmem>>, vector<1x4xf32>,
    %c1_436 = arith.constant 1 : index
    %c3_437 = arith.constant 3 : index
    %c0_438 = arith.constant 0 : index
    %800 = vector.load %arg12[%c1_436, %c3_437, %c0_438] : memref<2x4x8xf32, #tpu.memory_space<vmem>>, vector<1x1x4xf32>
    %801 = vector.shape_cast %800 : vector<1x1x4xf32> to vector<1x4xf32>
    %c1_439 = arith.constant 1 : index
    %c12_440 = arith.constant 12 : index
    %802 = vector.load %arg9[%c1_439, %c12_440] : memref<2x48xf32, #tpu.memory_space<vmem>>, vector<1x4xf32>
    tpu.vector_store %arg9[%c1_439, %c12_440], %801 {strides = array<i32>} : memref<2x48xf32, #tpu.memory_space<vmem>>, vector<1x4xf32>,
    %c1_441 = arith.constant 1 : index
    %c3_442 = arith.constant 3 : index
    %c4_443 = arith.constant 4 : index
    %803 = vector.load %arg12[%c1_441, %c3_442, %c4_443] : memref<2x4x8xf32, #tpu.memory_space<vmem>>, vector<1x1x4xf32>
    %804 = vector.shape_cast %803 : vector<1x1x4xf32> to vector<1x4xf32>
    %c1_444 = arith.constant 1 : index
    %c28_445 = arith.constant 28 : index
    %805 = vector.load %arg9[%c1_444, %c28_445] : memref<2x48xf32, #tpu.memory_space<vmem>>, vector<1x4xf32>
    tpu.vector_store %arg9[%c1_444, %c28_445], %804 {strides = array<i32>} : memref<2x48xf32, #tpu.memory_space<vmem>>, vector<1x4xf32>,
    return
  }
}

</mosaic_0001>

<bundles_post_ra>
// kernel: forward.1
= control target key start
LH: loop header
LB: loop body
LE: loop exit
PB: predicated region body
PF: predicated region fallthrough
CT: control target
= control target key end

     0   :  { %14 = vsyncpa [#allocation6], 0  ;;  %s10169_s0 = inlined_call_operand.vmem [shape: f32[2,128], index: 0, kind: input, shape index: {}]   ;;  %s10170_s1 = inlined_call_operand.hbm [shape: f32[16,32], index: 1, kind: input, shape index: {}]   ;;  %s10171_s2 = inlined_call_operand.vmem [shape: f32[32,32], index: 2, kind: input, shape index: {}]   ;;  %s10172_s3 = inlined_call_operand.hbm [shape: f32[1,32], index: 3, kind: input, shape index: {}]   ;;  %s10173_s4 = inlined_call_operand.hbm [shape: f32[32,176], index: 4, kind: input, shape index: {}]   ;;  %s10174_s5 = inlined_call_operand.hbm [shape: f32[1,176], index: 5, kind: input, shape index: {}]   ;;  %s10175_s6 = inlined_call_operand.hbm [shape: f32[4,4], index: 6, kind: input, shape index: {}]   ;;  %s10176_s7 = inlined_call_operand.hbm [shape: f32[4,4], index: 7, kind: input, shape index: {}]   ;;  %s10177_s8 = inlined_call_operand.hbm [shape: f32[4], index: 8, kind: input, shape index: {}]   ;;  %s10178_s9 = inlined_call_operand.vmem [shape: f32[2,48], index: 9, kind: output, shape index: {}]  }
   0x1   :  { %15 = vsyncpa [#allocation9], 0 }
   0x2   :  { %16 = vsyncpa [#allocation12], 0 }
   0x3   :  { %17 = vsyncpa [#allocation15], 0 }
   0x4   :  { %18 = vsyncpa [#allocation7], 0  ;;  %s9008_s30 = smov [#allocation8]   ;;  %s9009_s11 = smov [#allocation11]  }
   0x5   :  { %s41_s10 = sshll.u32 %s9008_s30, 4  ;;  %s63_s12 = sshll.u32 %s9009_s11, 4  ;;  %s42_s10 = int_to_ptr.vmem [resolvable:$true] %s41_s10  ;;  %s64_s12 = int_to_ptr.vmem [resolvable:$true] %s63_s12 }
   0x6   :  { %s8856_s15 = scalar_lea.hbm %s10172_s3, 16 }
   0x7   :  { %p8857_p0 = scmp.ne.s32.totalorder %s10172_s3, %s8856_s15  ;;  %p8860_p1 = scmp.lt.u32.totalorder %s8856_s15, %s10172_s3 }
   0x9   :  { %p8862_p2 = pnand %p8860_p1, %p8857_p0 }
   0xb   :  { %8865 = shalt.err (!%p8862_p2)
}
   0xc   :  { %s8866_s20 = scalar_lea.vmem %s42_s10, 16  ;;  %s8870_s21 = scalar_lea.vmem %s42_s10, 32 }
   0xd   :  { %p8867_p3 = scmp.ne.s32.totalorder %s42_s10, %s8866_s20  ;;  %p8871_p4 = scmp.lt.s32.totalorder %s42_s10, %s42_s10 }
   0xe   :  { %p8872_p5 = scmp.lt.s32.totalorder %s8870_s21, %s8866_s20 }
  0x10   :  { %p8873_p6 = por %p8872_p5, %p8871_p4 }
  0x12   :  { %p8874_p7 = pnand %p8873_p6, %p8867_p3 }
  0x14   :  { %8877 = shalt.err (!%p8874_p7)
}
  0x15   :  { %44 = dma.hbm_to_vmem [thread:$0]  %s10172_s3, 16, %s42_s10, [#allocation9]  }
  0x16   :  { %s8878_s26 = scalar_lea.hbm %s10174_s5, 32 }
  0x17   :  { %p8879_p8 = scmp.ne.s32.totalorder %s10174_s5, %s8878_s26  ;;  %p8882_p9 = scmp.lt.u32.totalorder %s8878_s26, %s10174_s5 }
  0x19   :  { %p8884_p10 = pnand %p8882_p9, %p8879_p8 }
  0x1b   :  { %8887 = shalt.err (!%p8884_p10)
}
  0x1c   :  { %s8888_s11 = scalar_lea.vmem %s64_s12, 32  ;;  %p8893_p12 = scmp.lt.s32.totalorder %s64_s12, %s64_s12 }
  0x1d   :  { %p8889_p11 = scmp.ne.s32.totalorder %s64_s12, %s8888_s11  ;;  %p8894_p13 = scmp.lt.s32.totalorder %s8888_s11, %s8888_s11 }
  0x1f   :  { %p8895_p0 = por %p8894_p13, %p8893_p12 }
  0x21   :  { %p8896_p1 = pnand %p8895_p0, %p8889_p11 }
  0x23   :  { %8899 = shalt.err (!%p8896_p1)
}
  0x24   :  { %66 = dma.hbm_to_vmem [thread:$0]  %s10174_s5, 32, %s64_s12, [#allocation12]  }
  0x25   :  { %s9010_s13 = smov [#allocation5]   ;;  %s8900_s17 = scalar_lea.hbm %s10170_s1, 256 }
  0x26   :  { %s26_s14 = sshll.u32 %s9010_s13, 4  ;;  %p8901_p2 = scmp.ne.s32.totalorder %s10170_s1, %s8900_s17  ;;  %s27_s14 = int_to_ptr.vmem [resolvable:$true] %s26_s14 }
  0x27   :  { %p8904_p3 = scmp.lt.u32.totalorder %s8900_s17, %s10170_s1 }
  0x29   :  { %p8906_p4 = pnand %p8904_p3, %p8901_p2 }
  0x2b   :  { %8909 = shalt.err (!%p8906_p4)
}
  0x2c   :  { %s8910_s22 = scalar_lea.vmem %s27_s14, 256  ;;  %p8915_p6 = scmp.lt.s32.totalorder %s27_s14, %s27_s14 }
  0x2d   :  { %p8911_p5 = scmp.ne.s32.totalorder %s27_s14, %s8910_s22  ;;  %p8916_p7 = scmp.lt.s32.totalorder %s8910_s22, %s8910_s22 }
  0x2f   :  { %p8917_p8 = por %p8916_p7, %p8915_p6 }
  0x31   :  { %p8918_p9 = pnand %p8917_p8, %p8911_p5 }
  0x33   :  { %8921 = shalt.err (!%p8918_p9)
}
  0x34   :  { %s9011_s5 = smov 128   ;;  %s9012_s12 = smov 8  }
  0x35   :  { %32 = dma.hbm_to_vmem [thread:$0]  %s10170_s1, 256, %s27_s14, [#allocation6], %s9011_s5, %s9011_s5, %s9012_s12  }
  0x36   :  { %s9013_s25 = smov [#allocation10]   ;;  %s8922_s29 = scalar_lea.hbm %s10173_s4, 1024 }
  0x37   :  { %s50_s26 = sshll.u32 %s9013_s25, 4  ;;  %p8923_p10 = scmp.ne.s32.totalorder %s10173_s4, %s8922_s29  ;;  %s51_s26 = int_to_ptr.vmem [resolvable:$true] %s50_s26 }
  0x38   :  { %p8926_p11 = scmp.lt.u32.totalorder %s8922_s29, %s10173_s4 }
  0x3a   :  { %p8928_p12 = pnand %p8926_p11, %p8923_p10 }
  0x3c   :  { %8931 = shalt.err (!%p8928_p12)
}
  0x3d   :  { %s8932_s13 = scalar_lea.vmem %s51_s26, 1024  ;;  %p8937_p0 = scmp.lt.s32.totalorder %s51_s26, %s51_s26 }
  0x3e   :  { %p8933_p13 = scmp.ne.s32.totalorder %s51_s26, %s8932_s13  ;;  %p8938_p1 = scmp.lt.s32.totalorder %s8932_s13, %s8932_s13 }
  0x40   :  { %p8939_p2 = por %p8938_p1, %p8937_p0 }
  0x42   :  { %p8940_p3 = pnand %p8939_p2, %p8933_p13 }
  0x44   :  { %8943 = shalt.err (!%p8940_p3)
}
  0x45   :  { %s9014_s1 = smov 256   ;;  %s9015_s14 = smov 16  }
  0x46   :  { %56 = dma.hbm_to_vmem [thread:$0]  %s10173_s4, 1024, %s51_s26, [#allocation9], %s9014_s1, %s9014_s1, %s9015_s14  }
  0x47   :  { %s9016_s17 = smov [#allocation13]   ;;  %s9017_s19 = smov [#allocation14]  }
  0x48   :  { %s73_s18 = sshll.u32 %s9016_s17, 4  ;;  %s83_s20 = sshll.u32 %s9017_s19, 4  ;;  %s74_s18 = int_to_ptr.vmem [resolvable:$true] %s73_s18  ;;  %s84_s20 = int_to_ptr.vmem [resolvable:$true] %s83_s20 }
  0x49   :  { %s8944_s5 = scalar_lea.hbm %s10175_s6, 64 }
  0x4a   :  { %p8945_p4 = scmp.ne.s32.totalorder %s10175_s6, %s8944_s5  ;;  %p8948_p5 = scmp.lt.u32.totalorder %s8944_s5, %s10175_s6 }
  0x4c   :  { %p8950_p6 = pnand %p8948_p5, %p8945_p4 }
  0x4e   :  { %8953 = shalt.err (!%p8950_p6)
}
  0x4f   :  { %s8954_s4 = scalar_lea.vmem %s74_s18, 64  ;;  %p8959_p8 = scmp.lt.s32.totalorder %s74_s18, %s74_s18 }
  0x50   :  { %p8955_p7 = scmp.ne.s32.totalorder %s74_s18, %s8954_s4  ;;  %p8960_p9 = scmp.lt.s32.totalorder %s8954_s4, %s8954_s4 }
  0x52   :  { %p8961_p10 = por %p8960_p9, %p8959_p8 }
  0x54   :  { %p8962_p11 = pnand %p8961_p10, %p8955_p7 }
  0x56   :  { %8965 = shalt.err (!%p8962_p11)
}
  0x57   :  { %76 = dma.hbm_to_vmem [thread:$0]  %s10175_s6, 64, %s74_s18, [#allocation12]  }
  0x58   :  { %s8966_s11 = scalar_lea.hbm %s10176_s7, 64 }
  0x59   :  { %p8967_p12 = scmp.ne.s32.totalorder %s10176_s7, %s8966_s11  ;;  %p8970_p13 = scmp.lt.u32.totalorder %s8966_s11, %s10176_s7 }
  0x5b   :  { %p8972_p0 = pnand %p8970_p13, %p8967_p12 }
  0x5d   :  { %8975 = shalt.err (!%p8972_p0)
}
  0x5e   :  { %s8976_s15 = scalar_lea.vmem %s84_s20, 64  ;;  %p8981_p2 = scmp.lt.s32.totalorder %s84_s20, %s84_s20 }
  0x5f   :  { %p8977_p1 = scmp.ne.s32.totalorder %s84_s20, %s8976_s15  ;;  %p8982_p3 = scmp.lt.s32.totalorder %s8976_s15, %s8976_s15 }
  0x61   :  { %p8983_p4 = por %p8982_p3, %p8981_p2 }
  0x63   :  { %p8984_p5 = pnand %p8983_p4, %p8977_p1 }
  0x65   :  { %8987 = shalt.err (!%p8984_p5)
}
  0x66   :  { %86 = dma.hbm_to_vmem [thread:$0]  %s10176_s7, 64, %s84_s20, [#allocation15]  }
  0x67   :  { %s8988_s19 = scalar_lea.hbm %s10177_s8, 16 }
  0x68   :  { %p8989_p6 = scmp.ne.s32.totalorder %s10177_s8, %s8988_s19  ;;  %p8992_p7 = scmp.lt.u32.totalorder %s8988_s19, %s10177_s8 }
  0x6a   :  { %p8994_p8 = pnand %p8992_p7, %p8989_p6 }
  0x6c   :  { %8997 = shalt.err (!%p8994_p8)
}
  0x6d   :  { %s9018_s24 = smov [#allocation16]  }
  0x6e   :  { %94 = dma.hbm_to_smem %s10177_s8, 16, %s9018_s24, [#allocation7]  }
  0x6f   :  { %8998 = dma.done.wait [#allocation6], 256  }
  0x70   :  { %8999 = vsyncadd [#allocation6], 4294967040 }
  0x71   :  { %9000 = dma.done.wait [#allocation9], 1040  }
  0x72   :  { %9001 = vsyncadd [#allocation9], 4294966256 }
  0x73   :  { %9002 = dma.done.wait [#allocation12], 96  }
  0x74   :  { %9003 = vsyncadd [#allocation12], 4294967200 }
  0x75   :  { %9004 = dma.done.wait [#allocation15], 64  }
  0x76   :  { %9005 = vsyncadd [#allocation15], 4294967232 }
  0x77   :  { %9006 = dma.done.wait [#allocation7], 16  }
  0x78   :  { %9007 = vsyncadd [#allocation7], 4294967280 }
  0x79   :  { %116 = sfence }
  0x7a   :  { %v117_v0 = vld [vmem:[#allocation5] sm:$0xff]  ;;  %v118_v1 = vld [vmem:[#allocation5 + $0x8] sm:$0xff]  ;;  %v9019_v2 = vmov 0.0|0.0   ;;  %vm9020_vm0 = vmmov 0   ;;  %v9021_v4 = vmov 0.0   ;;  %s9022_s20 = smov 112  }
  0x7b   :  { %8606 = vmatprep.subr.bf16.mxu1 %v9019_v2  ;;  %v9175_v3 = vpack.c.bf16 %v118_v1, %v117_v0  ;;  %8117 = vmatprep.mubr.msk.f32.mxu1 %vm9020_vm0, %v9021_v4  ;;  %v9182_v5 = vld [vmem:[%s10169_s0] sm:$0x3]  ;;  %vm131_vm1 = vcmask 130048   ;;  %v120_v7 = vld [vmem:[%s10171_s2 + $0x8] sm:$0xff]  ;;  %v121_v8 = vld [vmem:[%s10171_s2 + $0x10] sm:$0xff]  ;;  %s9023_s10 = smov 96  }
  0x7c   :  { %280 = vrot.lane.b32.xlu0 %v9182_v5, %s9022_s20  ;;  %8615 = vmatprep.subr.bf16.mxu0 %v9019_v2  ;;  %v119_v6 = vld [vmem:[%s10171_s2] sm:$0xff]  ;;  %v122_v10 = vld [vmem:[%s10171_s2 + $0x18] sm:$0xff]  ;;  %vm206_vm2 = vcmask 261120   ;;  %s9024_s2 = smov 80   ;;  %s9025_s13 = smov 64   ;;  %vm1355_vm3 = vcmask 1041408  }
  0x7d   :  { %8608 = vmatpush3.bf16.msra.mxu1 %v9175_v3  ;;  %8617 = vmatpush3.bf16.msra.mxu0 %v9175_v3  ;;  %v9206_v9 = vpack.c.bf16 %v120_v7, %v119_v6  ;;  %v9212_v11 = vpack.c.bf16 %v122_v10, %v121_v8  ;;  %v9226_v13 = vld [vmem:[#allocation8] ss:$0 sm:$0xff]  ;;  %s9026_s1 = smov 48   ;;  %s9027_s15 = smov 32   ;;  %v1250_v7 = vld [vmem:[#allocation10] sm:$0xff]  ;;  %v1255_v10 = vld [vmem:[#allocation10 + $0x28] sm:$0xff] }
  0x7e   :  { %8609 = vmatprep.subr.bf16.mxu1 %v9019_v2  ;;  %8135 = vmatprep.mubr.msk.f32.mxu0 %vm9020_vm0, %v9021_v4  ;;  %v1253_v6 = vld [vmem:[#allocation10 + $0x18] sm:$0xff]  ;;  %vm1356_vm4 = vcmask 388098   ;;  %vm1415_vm6 = vcmask 122880   ;;  %s9029_s6 = smov 120   ;;  %vm1384_vm7 = vcmask 320768   ;;  %vm1397_vm8 = vcmask 386368  }
  0x7f   :  { %8618 = vmatprep.subr.bf16.mxu0 %v9019_v2  ;;  %578 = vrot.lane.b32.xlu1 %v9182_v5, %s9024_s2  ;;  %vm1357_vm5 = vmor %vm1356_vm4, %vm1355_vm3  ;;  %s9030_s5 = smov 104   ;;  %s9031_s23 = smov 88   ;;  %vm1551_vm9 = vcmask 64512   ;;  %vm1488_vm10 = vcmask 57344   ;;  %vm1862_vm11 = vcmask 31744   ;;  %vm2159_vm13 = vcmask 27648  }
  0x80   :  { %8118 = vmatmul.mubr.msk.f32.vlgmr.msra.gmra.mrb[0].mxu1 %vm131_vm1, %v9182_v5  ;;  %429 = vrot.lane.b32.xlu0 %v9182_v5, %s9023_s10  ;;  %s9032_s24 = smov 4   ;;  %s9033_s25 = smov 124   ;;  %vm2227_vm14 = vcmask 1043456  }
  0x81   :  { %8128 = vmatprep.mubr.msk.f32.mxu1 %vm9020_vm0, %v9021_v4  ;;  %8611 = vmatpush3.bf16.msra.mxu1 %v9206_v9  ;;  %s2856_s27 = sld [smem:[#allocation16]]  ;;  %s9034_s4 = smov 0.0  }
  0x82   :  { %8612 = vmatprep.subr.bf16.mxu1 %v9019_v2  ;;  %s7781_s30 = sld [smem:[#allocation16 + $0x1]] }
  0x83   :  { %727 = vrot.lane.b32.xlu1 %v9182_v5, %s9025_s13 }
  0x84   :  { %876 = vrot.lane.b32.xlu0 %v9182_v5, %s9026_s1 }
  0x85   :  { %8614 = vmatpush3.bf16.msra.mxu1 %v9212_v11 }
  0x86   :  { %8624 = vmatprep.subr.bf16.mxu1 %v9019_v2 }
  0x87   :  { %1025 = vrot.lane.b32.xlu1 %v9182_v5, %s9027_s15 }
  0x88   :  { %1174 = vrot.lane.b32.xlu0 %v9182_v5, %s9015_s14  ;;  %v1251_v5 = vld [vmem:[#allocation10 + $0x8] sm:$0xff] }
  0x89   :  { %v8672_v8 = vpack.c.bf16 %v1253_v6, %v1251_v5 }
  0xee   :  { %v281_v12 = vpop.permute.xlu0 %280 }
  0xef   :  { %8136 = vmatmul.mubr.msk.f32.vlgmr.msra.gmra.mrb[0].mxu0 %vm131_vm1, %v281_v12 }
  0xf0   :  { %8620 = vmatpush3.bf16.msra.mxu0 %v9206_v9  ;;  %8146 = vmatprep.mubr.msk.f32.mxu0 %vm9020_vm0, %v9021_v4 }
  0xf1   :  { %8621 = vmatprep.subr.bf16.mxu0 %v9019_v2  ;;  %v579_v28 = vpop.permute.xlu1 %578 }
  0xf2   :  { %v430_v18 = vpop.permute.xlu0 %429 }
  0xf4   :  { %8623 = vmatpush3.bf16.msra.mxu0 %v9212_v11 }
  0xf5   :  { %8633 = vmatprep.subr.bf16.mxu0 %v9019_v2  ;;  %v728_v36 = vpop.permute.xlu1 %727 }
  0xf6   :  { %v877_v44 = vpop.permute.xlu0 %876 }
  0xf9   :  { %v1026_v52 = vpop.permute.xlu1 %1025 }
  0xfa   :  { %v1175_v60 = vpop.permute.xlu0 %1174 }
 0x153   :  { %v201_v14 = vpop.f32.mrb[0].mxu1 }
 0x154   :  { %v202_v15 = vadd.f32 %v9226_v13, %v201_v14  ;;  %v8119_v16 = vpop.f32.mrb[1].mxu1 }
 0x155   :  { %v1256_v16 = vld [vmem:[#allocation10 + $0x30] sm:$0xff] }
 0x156   :  { %8790 = vtanh.f32 %v202_v15  ;;  %v1254_v15 = vld [vmem:[#allocation10 + $0x20] sm:$0xff] }
 0x160   :  { %v8791_v17 = vpop.eup %8790 }
 0x161   :  { %8129 = vmatmul.mubr.msk.f32.vlgmr.msra.gmra.mrb[2].mxu1 %vm206_vm2, %v8791_v17  ;;  %v8678_v17 = vpack.c.bf16 %v1256_v16, %v1254_v15 }
 0x162   :  { %8626 = vmatpush3.bf16.msra.mxu1 %v9175_v3  ;;  %8153 = vmatprep.mubr.msk.f32.mxu1 %vm9020_vm0, %v9021_v4 }
 0x163   :  { %8627 = vmatprep.subr.bf16.mxu1 %v9019_v2 }
 0x165   :  { %8154 = vmatmul.mubr.msk.f32.vlgmr.msra.gmra.mrb[4].mxu1 %vm131_vm1, %v430_v18 }
 0x166   :  { %8629 = vmatpush3.bf16.msra.mxu1 %v9206_v9  ;;  %8164 = vmatprep.mubr.msk.f32.mxu1 %vm9020_vm0, %v9021_v4 }
 0x167   :  { %8630 = vmatprep.subr.bf16.mxu1 %v9019_v2 }
 0x16a   :  { %8632 = vmatpush3.bf16.msra.mxu1 %v9212_v11 }
 0x16b   :  { %8642 = vmatprep.subr.bf16.mxu1 %v9019_v2 }
 0x1c2   :  { %v350_v19 = vpop.f32.mrb[0].mxu0 }
 0x1c3   :  { %v8137_v20 = vpop.f32.mrb[1].mxu0 }
 0x234   :  { %v276_v21 = vpop.f32.mrb[2].mxu1 }
 0x235   :  { %v351_v22 = vadd.f32 %v350_v19, %v276_v21  ;;  %v8130_v23 = vpop.f32.mrb[3].mxu1 }
 0x236   :  { %v1260_v23 = vlaneseq }
 0x237   :  { %v354_v24 = vadd.f32 %v9226_v13, %v351_v22 }
 0x238   :  { %v499_v26 = vpop.f32.mrb[4].mxu1 }
 0x239   :  { %8792 = vtanh.f32 %v354_v24  ;;  %v8155_v27 = vpop.f32.mrb[5].mxu1  ;;  %v9320_v24 = vshrl.u32 %v1260_v23, 7 }
 0x23b   :  { %v1266_v27 = vsub.s32 1, %v9320_v24 }
 0x243   :  { %v8793_v25 = vpop.eup %8792 }
 0x244   :  { %8147 = vmatmul.mubr.msk.f32.vlgmr.msra.gmra.mrb[2].mxu0 %vm206_vm2, %v8793_v25  ;;  %v1262_v25 = vsub.s32 0, %v9320_v24 }
 0x245   :  { %8635 = vmatpush3.bf16.msra.mxu0 %v9175_v3  ;;  %8171 = vmatprep.mubr.msk.f32.mxu0 %vm9020_vm0, %v9021_v4 }
 0x246   :  { %8636 = vmatprep.subr.bf16.mxu0 %v9019_v2 }
 0x248   :  { %8172 = vmatmul.mubr.msk.f32.vlgmr.msra.gmra.mrb[4].mxu0 %vm131_vm1, %v579_v28  ;;  %v9028_v28 = vmov 1983009808  }
 0x249   :  { %8638 = vmatpush3.bf16.msra.mxu0 %v9206_v9  ;;  %8182 = vmatprep.mubr.msk.f32.mxu0 %vm9020_vm0, %v9021_v4 }
 0x24a   :  { %8639 = vmatprep.subr.bf16.mxu0 %v9019_v2 }
 0x24d   :  { %8641 = vmatpush3.bf16.msra.mxu0 %v9212_v11 }
 0x24e   :  { %8651 = vmatprep.subr.bf16.mxu0 %v9019_v2 }
 0x317   :  { %v425_v29 = vpop.f32.mrb[2].mxu0 }
 0x318   :  { %v500_v30 = vadd.f32 %v499_v26, %v425_v29  ;;  %v8148_v31 = vpop.f32.mrb[3].mxu0  ;;  %v1258_v26 = vld [vmem:[#allocation11] sm:$0x3]  ;;  %v1348_v29 = vunpack.c.l.s4 %v9028_v28 }
 0x31a   :  { %v503_v32 = vadd.f32 %v9226_v13, %v500_v30  ;;  %v1263_v30 = vrot.slane %v1258_v26, %v1262_v25  ;;  %v1349_v31 = vunpack.c.0.s8 %v1348_v29 }
 0x31b   :  { %v648_v34 = vpop.f32.mrb[4].mxu0 }
 0x31c   :  { %8794 = vtanh.f32 %v503_v32  ;;  %v8173_v35 = vpop.f32.mrb[5].mxu0 }
 0x326   :  { %v8795_v33 = vpop.eup %8794 }
 0x327   :  { %8165 = vmatmul.mubr.msk.f32.vlgmr.msra.gmra.mrb[6].mxu1 %vm206_vm2, %v8795_v33 }
 0x328   :  { %8644 = vmatpush3.bf16.msra.mxu1 %v9175_v3  ;;  %8189 = vmatprep.mubr.msk.f32.mxu1 %vm9020_vm0, %v9021_v4 }
 0x329   :  { %8645 = vmatprep.subr.bf16.mxu1 %v9019_v2 }
 0x32b   :  { %8190 = vmatmul.mubr.msk.f32.vlgmr.msra.gmra.mrb[8].mxu1 %vm131_vm1, %v728_v36  ;;  %v1352_v36 = vsub.s32 %v1349_v31, %v9320_v24  ;;  %v9404_v31 = vld [vmem:[#allocation13] sm:$0xf] }
 0x32c   :  { %8647 = vmatpush3.bf16.msra.mxu1 %v9206_v9  ;;  %8200 = vmatprep.mubr.msk.f32.mxu1 %vm9020_vm0, %v9021_v4 }
 0x32d   :  { %8648 = vmatprep.subr.bf16.mxu1 %v9019_v2 }
 0x330   :  { %8650 = vmatpush3.bf16.msra.mxu1 %v9212_v11 }
 0x331   :  { %8660 = vmatprep.subr.bf16.mxu1 %v9019_v2 }
 0x3fa   :  { %v574_v37 = vpop.f32.mrb[6].mxu1 }
 0x3fb   :  { %v649_v38 = vadd.f32 %v648_v34, %v574_v37  ;;  %v8166_v39 = vpop.f32.mrb[7].mxu1 }
 0x3fd   :  { %v652_v40 = vadd.f32 %v9226_v13, %v649_v38 }
 0x3fe   :  { %v797_v42 = vpop.f32.mrb[8].mxu1 }
 0x3ff   :  { %8796 = vtanh.f32 %v652_v40  ;;  %v8191_v43 = vpop.f32.mrb[9].mxu1 }
 0x409   :  { %v8797_v41 = vpop.eup %8796 }
 0x40a   :  { %8183 = vmatmul.mubr.msk.f32.vlgmr.msra.gmra.mrb[6].mxu0 %vm206_vm2, %v8797_v41 }
 0x40b   :  { %8653 = vmatpush3.bf16.msra.mxu0 %v9175_v3  ;;  %8207 = vmatprep.mubr.msk.f32.mxu0 %vm9020_vm0, %v9021_v4 }
 0x40c   :  { %8654 = vmatprep.subr.bf16.mxu0 %v9019_v2 }
 0x40e   :  { %8208 = vmatmul.mubr.msk.f32.vlgmr.msra.gmra.mrb[8].mxu0 %vm131_vm1, %v877_v44 }
 0x40f   :  { %8656 = vmatpush3.bf16.msra.mxu0 %v9206_v9  ;;  %8218 = vmatprep.mubr.msk.f32.mxu0 %vm9020_vm0, %v9021_v4 }
 0x410   :  { %8657 = vmatprep.subr.bf16.mxu0 %v9019_v2 }
 0x413   :  { %8659 = vmatpush3.bf16.msra.mxu0 %v9212_v11 }
 0x414   :  { %8669 = vmatprep.subr.bf16.mxu0 %v9019_v2 }
 0x4dd   :  { %v723_v45 = vpop.f32.mrb[6].mxu0 }
 0x4de   :  { %v798_v46 = vadd.f32 %v797_v42, %v723_v45  ;;  %v8184_v47 = vpop.f32.mrb[7].mxu0 }
 0x4e0   :  { %v801_v48 = vadd.f32 %v9226_v13, %v798_v46 }
 0x4e1   :  { %v946_v50 = vpop.f32.mrb[8].mxu0 }
 0x4e2   :  { %8798 = vtanh.f32 %v801_v48  ;;  %v8209_v51 = vpop.f32.mrb[9].mxu0 }
 0x4ec   :  { %v8799_v49 = vpop.eup %8798 }
 0x4ed   :  { %8201 = vmatmul.mubr.msk.f32.vlgmr.msra.gmra.mrb[10].mxu1 %vm206_vm2, %v8799_v49 }
 0x4ee   :  { %8662 = vmatpush3.bf16.msra.mxu1 %v9175_v3  ;;  %8225 = vmatprep.mubr.msk.f32.mxu1 %vm9020_vm0, %v9021_v4 }
 0x4ef   :  { %8663 = vmatprep.subr.bf16.mxu1 %v9019_v2 }
 0x4f1   :  { %8226 = vmatmul.mubr.msk.f32.vlgmr.msra.gmra.mrb[12].mxu1 %vm131_vm1, %v1026_v52 }
 0x4f2   :  { %8665 = vmatpush3.bf16.msra.mxu1 %v9206_v9  ;;  %8236 = vmatprep.mubr.msk.f32.mxu1 %vm9020_vm0, %v9021_v4  ;;  %v1252_v9 = vld [vmem:[#allocation10 + $0x10] sm:$0xff] }
 0x4f3   :  { %8666 = vmatprep.subr.bf16.mxu1 %v9019_v2  ;;  %v8674_v12 = vpack.c.bf16 %v1252_v9, %v1250_v7 }
 0x4f6   :  { %8668 = vmatpush3.bf16.msra.mxu1 %v9212_v11  ;;  %v1257_v11 = vld [vmem:[#allocation10 + $0x38] sm:$0xff] }
 0x4f7   :  { %8246 = vmatprep.subr.mxu1 %v9021_v4  ;;  %v8676_v14 = vpack.c.bf16 %v1257_v11, %v1255_v10 }
 0x5c0   :  { %v872_v53 = vpop.f32.mrb[10].mxu1 }
 0x5c1   :  { %v947_v54 = vadd.f32 %v946_v50, %v872_v53  ;;  %v8202_v55 = vpop.f32.mrb[11].mxu1 }
 0x5c3   :  { %v950_v56 = vadd.f32 %v9226_v13, %v947_v54 }
 0x5c4   :  { %v1095_v58 = vpop.f32.mrb[12].mxu1 }
 0x5c5   :  { %8800 = vtanh.f32 %v950_v56  ;;  %v8227_v59 = vpop.f32.mrb[13].mxu1 }
 0x5cf   :  { %v8801_v57 = vpop.eup %8800 }
 0x5d0   :  { %8219 = vmatmul.mubr.msk.f32.vlgmr.msra.gmra.mrb[10].mxu0 %vm206_vm2, %v8801_v57 }
 0x5d1   :  { %8671 = vmatpush3.bf16.msra.mxu0 %v9175_v3  ;;  %8243 = vmatprep.mubr.msk.f32.mxu0 %vm9020_vm0, %v9021_v4 }
 0x5d2   :  { %8673 = vmatprep.subr.bf16.mxu0 %v8672_v8 }
 0x5d4   :  { %8244 = vmatmul.mubr.msk.f32.vlgmr.msra.gmra.mrb[12].mxu0 %vm131_vm1, %v1175_v60 }
 0x5d5   :  { %1337 = vmatprep.mubr.f32.mxu0 %v9021_v4  ;;  %8675 = vmatpush1.bf16.msra.mxu0 %v8674_v12 }
 0x5d6   :  { %8677 = vmatprep.subr.bf16.mxu0 %v8676_v14 }
 0x5d9   :  { %8679 = vmatpush1.bf16.msra.mxu0 %v8678_v17 }
 0x5da   :  { %8256 = vmatprep.subr.mxu0 %v9021_v4 }
 0x6a3   :  { %v1021_v61 = vpop.f32.mrb[10].mxu0 }
 0x6a4   :  { %v1096_v62 = vadd.f32 %v1095_v58, %v1021_v61  ;;  %v8220_v63 = vpop.f32.mrb[11].mxu0 }
 0x6a6   :  { %v1099_v0 = vadd.f32 %v9226_v13, %v1096_v62 }
 0x6a7   :  { %v1244_v2 = vpop.f32.mrb[12].mxu0 }
 0x6a8   :  { %8802 = vtanh.f32 %v1099_v0  ;;  %v8245_v3 = vpop.f32.mrb[13].mxu0 }
 0x6b2   :  { %v8803_v1 = vpop.eup %8802 }
 0x6b3   :  { %8237 = vmatmul.mubr.msk.f32.vlgmr.msra.gmra.mrb[14].mxu1 %vm206_vm2, %v8803_v1 }
 0x6b4   :  { %8248 = vmatprep.mubr.msk.f32.mxu1 %vm9020_vm0, %v9021_v4 }
 0x786   :  { %v1170_v18 = vpop.f32.mrb[14].mxu1 }
 0x787   :  { %v1245_v19 = vadd.f32 %v1244_v2, %v1170_v18  ;;  %v8238_v20 = vpop.f32.mrb[15].mxu1  ;;  %v9388_v18 = vld [vmem:[#allocation14] sm:$0xf] }
 0x789   :  { %v1248_v21 = vadd.f32 %v9226_v13, %v1245_v19  ;;  %v1267_v13 = vrot.slane %v1258_v26, %v1266_v27 }
 0x78b   :  { %8804 = vtanh.f32 %v1248_v21 }
 0x795   :  { %v8805_v22 = vpop.eup %8804 }
 0x796   :  { %7726 = vmatmul.mubr.msk.f32.vlgmr.msra.gmra.mrb[14].mxu0 %vm206_vm2, %v8805_v22 }
 0x797   :  { %8258 = vmatprep.mubr.msk.f32.mxu0 %vm9020_vm0, %v9021_v4 }
 0x869   :  { %v1339_v32 = vpop.f32.mrb[14].mxu0 }
 0x86a   :  { %v1340_v33 = vadd.f32 %v1339_v32, %v1263_v30  ;;  %v1341_v34 = vpop.f32.mrb[15].mxu0 }
 0x86b   :  { %v1342_v35 = vadd.f32 %v1341_v34, %v1267_v13 }
 0x86d   :  { %v1346_v37 = vcombine.low %v1340_v33, %v1342_v35 }
 0x86f   :  { %v1353_v38 = vrot.slane %v1346_v37, %v1352_v36 }
 0x871   :  { %1358 = vst.msk [vmem:[#allocation2] sm:$0xf] %vm1357_vm5, %v1353_v38 }
 0x878   :  { %v1359_v39 = vld [vmem:[#allocation2] sm:$0x3]  ;;  %v1477_v40 = vld [vmem:[#allocation2 + $0x2] sm:$0x1]  ;;  %v4631_v42 = vld [vmem:[#allocation2 + $0x3] sm:$0x1] }
 0x879   :  { %v1360_v41 = vmul.f32 %v1359_v39, %v1359_v39  ;;  %1478 = vst.msk [vmem:[#allocation3 + $0x7] sm:$0x1] %vm1415_vm6, %v1477_v40  ;;  %4632 = vst.msk [vmem:[#allocation3 + $0x17] sm:$0x1] %vm1415_vm6, %v4631_v42  ;;  %v7732_v48 = vld [vmem:[#allocation2] ss:$0 sm:$0xff] }
 0x87a   :  { %v7736_v5 = vld [vmem:[#allocation2 + $0x2] ss:$0 sm:$0xff]  ;;  %v1402_v42 = vand.u32 127, %v1260_v23 }
 0x87b   :  { %1362 = vrot.lane.b32.xlu1 %v1360_v41, %s9029_s6 }
 0x87c   :  { %vm1403_vm12 = vcmp.eq.s32.totalorder %v9320_v24, %v1402_v42 }
 0x8ed   :  { %v1363_v43 = vpop.permute.xlu1 %1362 }
 0x8ee   :  { %v1365_v44 = vadd.f32 %v1363_v43, %v1360_v41 }
 0x8f0   :  { %8806 = vrsqrt.f32 %v1365_v44 }
 0x8fa   :  { %v8807_v45 = vpop.eup %8806 }
 0x8fb   :  { %1369 = vrot.lane.b32.xlu0 %v8807_v45, %s9012_s12  ;;  %v1367_v46 = vmul.f32 %v8807_v45, %v1359_v39 }
 0x8fd   :  { %v1380_v47 = vrot.slane %v1367_v46, %v1352_v36 }
 0x8ff   :  { %1381 = vrot.lane.b32.xlu1 %v1380_v47, %s9027_s15  ;;  %v9433_v47 = vsel %vm1403_vm12, 1.0, %v9021_v4 }
 0x903   :  { %1453 = vrot.lane.b32.xlu1 %v7732_v48, %s9026_s1 }
 0x907   :  { %1473 = vrot.lane.b32.xlu1 %v7732_v48, %s9015_s14 }
 0x90b   :  { %1423 = vrot.lane.b32.xlu1 %v7732_v48, %s9023_s10 }
 0x90f   :  { %1443 = vrot.lane.b32.xlu1 %v7732_v48, %s9025_s13 }
 0x96d   :  { %v1370_v49 = vpop.permute.xlu0 %1369 }
 0x96e   :  { %v1372_v50 = vmul.f32 %v1370_v49, %v1359_v39 }
 0x970   :  { %v1393_v51 = vrot.slane %v1372_v50, %v1352_v36 }
 0x971   :  { %v1382_v52 = vpop.permute.xlu1 %1381 }
 0x972   :  { %1385 = vst.msk [vmem:[%s10178_s9] sm:$0x3] %vm1384_vm7, %v1382_v52  ;;  %1394 = vrot.lane.b32.xlu0 %v1393_v51, %s9027_s15 }
 0x975   :  { %v1454_v53 = vpop.permute.xlu1 %1453 }
 0x976   :  { %1456 = vst.msk [vmem:[#allocation3 + $0x4] sm:$0x1] %vm1415_vm6, %v1454_v53  ;;  %1463 = vrot.lane.b32.xlu0 %v7732_v48, %s9027_s15 }
 0x979   :  { %v1474_v54 = vpop.permute.xlu1 %1473 }
 0x97a   :  { %1476 = vst.msk [vmem:[#allocation3 + $0x6] sm:$0x1] %vm1415_vm6, %v1474_v54  ;;  %1412 = vrot.lane.b32.xlu0 %v7732_v48, %s9022_s20 }
 0x97d   :  { %v1424_v55 = vpop.permute.xlu1 %1423 }
 0x97e   :  { %1426 = vst.msk [vmem:[#allocation3 + $0x1] sm:$0x1] %vm1415_vm6, %v1424_v55  ;;  %1433 = vrot.lane.b32.xlu0 %v7732_v48, %s9024_s2 }
 0x981   :  { %v1444_v56 = vpop.permute.xlu1 %1443 }
 0x982   :  { %1446 = vst.msk [vmem:[#allocation3 + $0x3] sm:$0x1] %vm1415_vm6, %v1444_v56 }
 0x9e4   :  { %v1395_v57 = vpop.permute.xlu0 %1394 }
 0x9e5   :  { %1398 = vst.msk [vmem:[%s10178_s9] sm:$0x3] %vm1397_vm8, %v1395_v57 }
 0x9e8   :  { %v1464_v58 = vpop.permute.xlu0 %1463 }
 0x9e9   :  { %1466 = vst.msk [vmem:[#allocation3 + $0x5] sm:$0x1] %vm1415_vm6, %v1464_v58 }
 0x9ec   :  { %v1413_v59 = vpop.permute.xlu0 %1412  ;;  %v7739_v60 = vld [vmem:[%s10178_s9] ss:$0 sm:$0xff] }
 0x9ed   :  { %1416 = vst.msk [vmem:[#allocation3] sm:$0x1] %vm1415_vm6, %v1413_v59  ;;  %1542 = vrot.lane.b32.xlu1 %v7739_v60, %s9030_s5  ;;  %1529 = vrot.lane.b32.xlu0 %v7739_v60, %s9023_s10 }
 0x9f0   :  { %v1434_v61 = vpop.permute.xlu0 %1433  ;;  %v1521_v0 = vld [vmem:[#allocation3 + $0x4] sm:$0xf] }
 0x9f1   :  { %1436 = vst.msk [vmem:[#allocation3 + $0x2] sm:$0x1] %vm1415_vm6, %v1434_v61  ;;  %1538 = vrot.lane.b32.xlu1 %v7739_v60, %s9031_s23 }
 0x9f8   :  { %v1520_v62 = vld [vmem:[#allocation3] sm:$0xf] }
 0x9f9   :  { %8247 = vmatpush3.xpose.msk.msra.mxu1 %vm1551_vm9, %v1520_v62 }
 0x9fa   :  { %8251 = vmatprep.subr.mxu1 %v9021_v4 }
 0xa5f   :  { %v1530_v63 = vpop.permute.xlu0 %1529  ;;  %v1543_v1 = vpop.permute.xlu1 %1542 }
 0xa60   :  { %v1532_v2 = vmul.f32 %v1530_v63, %v1521_v0  ;;  %v1545_v3 = vmul.f32 %v1543_v1, %v1521_v0 }
 0xa62   :  { %1534 = vrot.lane.b32.xlu0 %v1532_v2, %s9029_s6  ;;  %1547 = vrot.lane.b32.xlu1 %v1545_v3, %s9029_s6 }
 0xa63   :  { %v1539_v6 = vpop.permute.xlu1 %1538 }
 0xa64   :  { %v1541_v10 = vmul.f32 %v1539_v6, %v1521_v0 }
 0xa66   :  { %1629 = vrot.lane.b32.xlu0 %v1520_v62, %s9029_s6  ;;  %1496 = vrot.lane.b32.xlu1 %v7736_v5, %s9030_s5 }
 0xa6a   :  { %1485 = vrot.lane.b32.xlu0 %v7736_v5, %s9022_s20  ;;  %1516 = vrot.lane.b32.xlu1 %v7736_v5, %s9031_s23 }
 0xa6e   :  { %1506 = vrot.lane.b32.xlu0 %v7736_v5, %s9023_s10 }
 0xad4   :  { %v1535_v7 = vpop.permute.xlu0 %1534  ;;  %v1548_v8 = vpop.permute.xlu1 %1547 }
 0xad5   :  { %v1537_v9 = vsub.f32 %v1532_v2, %v1535_v7  ;;  %v1550_v14 = vadd.f32 %v1548_v8, %v1541_v10 }
 0xad7   :  { %8249 = vmatmul.mubr.msk.f32.vlgmr.msra.gmra.mrb[16].mxu1 %vm1551_vm9, %v1537_v9 }
 0xad8   :  { %v1630_v11 = vpop.permute.xlu0 %1629  ;;  %v1497_v12 = vpop.permute.xlu1 %1496  ;;  %8253 = vmatprep.mubr.msk.f32.mxu1 %vm9020_vm0, %v9021_v4 }
 0xad9   :  { %1499 = vst.msk [vmem:[#allocation3 + $0x9] sm:$0x1] %vm1488_vm10, %v1497_v12  ;;  %8252 = vmatpush3.xpose.msk.msra.mxu1 %vm1551_vm9, %v1630_v11  ;;  %8257 = vmatpush3.xpose.msk.msra.mxu0 %vm1551_vm9, %v1630_v11 }
 0xada   :  { %8261 = vmatprep.subr.mxu1 %v9021_v4  ;;  %8266 = vmatprep.subr.mxu0 %v9021_v4 }
 0xadc   :  { %8259 = vmatmul.mubr.msk.f32.vlgmr.msra.gmra.mrb[16].mxu0 %vm1551_vm9, %v1537_v9  ;;  %v1486_v15 = vpop.permute.xlu0 %1485  ;;  %8254 = vmatmul.mubr.msk.f32.vlgmr.msra.gmra.mrb[18].mxu1 %vm1551_vm9, %v1550_v14  ;;  %v1517_v16 = vpop.permute.xlu1 %1516 }
 0xadd   :  { %1489 = vst.msk [vmem:[#allocation3 + $0x8] sm:$0x1] %vm1488_vm10, %v1486_v15  ;;  %1519 = vst.msk [vmem:[#allocation3 + $0xb] sm:$0x1] %vm1488_vm10, %v1517_v16  ;;  %8262 = vmatpush3.xpose.msk.msra.mxu1 %vm1551_vm9, %v1520_v62  ;;  %8263 = vmatprep.mubr.msk.f32.mxu1 %vm9020_vm0, %v9021_v4 }
 0xade   :  { %8276 = vmatprep.subr.mxu1 %v9021_v4  ;;  %8268 = vmatprep.mubr.msk.f32.mxu0 %vm9020_vm0, %v9021_v4 }
 0xadf   :  { %8267 = vmatpush3.xpose.msk.msra.mxu0 %vm1862_vm11, %v9388_v18 }
 0xae0   :  { %v1507_v17 = vpop.permute.xlu0 %1506  ;;  %8264 = vmatmul.mubr.msk.f32.vlgmr.msra.gmra.mrb[20].mxu1 %vm1551_vm9, %v1550_v14  ;;  %8271 = vmatprep.subr.mxu0 %v9021_v4 }
 0xae1   :  { %1509 = vst.msk [vmem:[#allocation3 + $0xa] sm:$0x1] %vm1488_vm10, %v1507_v17  ;;  %8278 = vmatprep.mubr.msk.f32.mxu1 %vm9020_vm0, %v9021_v4  ;;  %8277 = vmatpush3.xpose.msk.msra.mxu1 %vm1862_vm11, %v9388_v18 }
 0xae2   :  { %8281 = vmatprep.subr.mxu1 %v9021_v4 }
 0xae8   :  { %v1522_v21 = vld [vmem:[#allocation3 + $0x8] sm:$0xf] }
 0xbaa   :  { %v1624_v19 = vpop.f32.mrb[16].mxu1 }
 0xbab   :  { %v8250_v20 = vpop.f32.mrb[17].mxu1  ;;  %v1628_v22 = vadd.f32 %v1624_v19, %v1522_v21 }
 0xbaf   :  { %v1702_v25 = vpop.f32.mrb[18].mxu1  ;;  %v1773_v26 = vpop.f32.mrb[16].mxu0 }
 0xbb0   :  { %v9396_v27 = vsub.f32 %v1628_v22, %v1702_v25  ;;  %1778 = vrot.lane.b32.xlu0 %v1773_v26, %s9032_s24  ;;  %v8255_v28 = vpop.f32.mrb[19].mxu1  ;;  %v8260_v29 = vpop.f32.mrb[17].mxu0 }
 0xbb2   :  { %8279 = vmatmul.mubr.msk.f32.vlgmr.msra.gmra.mrb[22].mxu1 %vm1862_vm11, %v9396_v27 }
 0xbb3   :  { %v1848_v30 = vpop.f32.mrb[20].mxu1  ;;  %8283 = vmatprep.mubr.msk.f32.mxu1 %vm9020_vm0, %v9021_v4  ;;  %8282 = vmatpush3.xpose.msk.msra.mxu1 %vm1862_vm11, %v9404_v31 }
 0xbb4   :  { %1853 = vrot.lane.b32.xlu1 %v1848_v30, %s9032_s24  ;;  %v8265_v13 = vpop.f32.mrb[21].mxu1  ;;  %8296 = vmatprep.subr.mxu1 %v9021_v4 }
 0xc22   :  { %v1779_v32 = vpop.permute.xlu0 %1778 }
 0xc23   :  { %v1781_v33 = vadd.f32 %v1779_v32, %v1522_v21 }
 0xc26   :  { %v1854_v34 = vpop.permute.xlu1 %1853 }
 0xc27   :  { %v9409_v35 = vadd.f32 %v1854_v34, %v1781_v33 }
 0xc29   :  { %1860 = vrot.lane.b32.xlu0 %v9409_v35, %s9033_s25 }
 0xc85   :  { %v2080_v36 = vpop.f32.mrb[22].mxu1 }
 0xc86   :  { %v8280_v37 = vpop.f32.mrb[23].mxu1 }
 0xc9b   :  { %v9413_v38 = vpop.permute.xlu0 %1860 }
 0xc9c   :  { %8269 = vmatmul.mubr.msk.f32.vlgmr.msra.gmra.mrb[18].mxu0 %vm1862_vm11, %v9413_v38  ;;  %8284 = vmatmul.mubr.msk.f32.vlgmr.msra.gmra.mrb[24].mxu1 %vm1862_vm11, %v9413_v38 }
 0xc9d   :  { %8272 = vmatpush3.xpose.msk.msra.mxu0 %vm1862_vm11, %v9404_v31  ;;  %8273 = vmatprep.mubr.msk.f32.mxu0 %vm9020_vm0, %v9021_v4 }
 0xc9e   :  { %8286 = vmatprep.subr.mxu0 %v9021_v4  ;;  %8298 = vmatprep.mubr.msk.f32.mxu1 %vm9020_vm0, %v9021_v4 }
 0xca4   :  { %8274 = vmatmul.mubr.msk.f32.vlgmr.msra.gmra.mrb[18].mxu0 %vm1862_vm11, %v9396_v27 }
 0xca5   :  { %8288 = vmatprep.mubr.msk.f32.mxu0 %vm9020_vm0, %v9021_v4 }
 0xd6f   :  { %v2150_v39 = vpop.f32.mrb[24].mxu1 }
 0xd70   :  { %v2154_v40 = vsub.f32 %v2080_v36, %v2150_v39  ;;  %v8285_v41 = vpop.f32.mrb[25].mxu1 }
 0xd71   :  { %v2857_v41 = vstv %s2856_s27 }
 0xd72   :  { %v2156_v44 = vmul.f32 %v2154_v40, %v2154_v40  ;;  %v2163_v51 = vmul.f32 %v9433_v47, %v2154_v40 }
 0xd74   :  { %v2164_v52 = vsel %vm2159_vm13, %v2163_v51, 0.0 }
 0xd77   :  { %v2010_v43 = vpop.f32.mrb[18].mxu0 }
 0xd78   :  { %v2155_v45 = vmul.f32 %v2010_v43, %v2010_v43  ;;  %v8275_v46 = vpop.f32.mrb[19].mxu0  ;;  %v2158_v23 = vmul.f32 %v9433_v47, %v2010_v43 }
 0xd7a   :  { %v2157_v48 = vadd.f32 %v2156_v44, %v2155_v45  ;;  %v2160_v53 = vsel %vm2159_vm13, %v2158_v23, 0.0 }
 0xd7c   :  { %v2171_v49 = vsel %vm2159_vm13, %v2157_v48, 0.0  ;;  %v2167_v50 = vmul.f32 %v9433_v47, %v2157_v48 }
 0xd7d   :  { %2172 = vadd.xlane.f32.xlu1 %v2171_v49 }
 0xd7e   :  { %v2168_v24 = vsel %vm2159_vm13, %v2167_v50, 0.0 }
 0xd7f   :  { %2169 = vadd.xlane.f32.xlu0 %v2168_v24 }
 0xd81   :  { %2165 = vadd.xlane.f32.xlu1 %v2164_v52 }
 0xd83   :  { %2161 = vadd.xlane.f32.xlu0 %v2160_v53 }
 0xdb4   :  { %2189 = vxpose.xlu1.b32.start.end [1/1] (short) (narrow) %v9413_v38, 8 }
 0xe0a   :  { %v2173_v54 = vpop.xlane.xlu1 %2172 }
 0xe0b   :  { %v2174_v55 = vadd.f32 1.0, %v2173_v54 }
 0xe0c   :  { %v2170_v56 = vpop.xlane.xlu0 %2169 }
 0xe0d   :  { %8808 = vrcp.f32 %v2174_v55  ;;  %v2178_v57 = vsub.f32 %v2173_v54, %v2170_v56 }
 0xe0e   :  { %v2166_v60 = vpop.xlane.xlu1 %2165 }
 0xe0f   :  { %v2179_v58 = vadd.f32 1.0, %v2178_v57 }
 0xe10   :  { %v2162_v61 = vpop.xlane.xlu0 %2161 }
 0xe11   :  { %8810 = vrcp.f32 %v2179_v58 }
 0xe17   :  { %v8809_v59 = vpop.eup %8808 }
 0xe18   :  { %v2177_v62 = vmul.f32 %v8809_v59, %v2166_v60  ;;  %v2176_v63 = vmul.f32 %v8809_v59, %v2162_v61 }
 0xe1a   :  { %v2183_v0 = vmul.f32 %v2177_v62, %v2177_v62  ;;  %v2182_v1 = vmul.f32 %v2176_v63, %v2176_v63 }
 0xe1b   :  { %v8811_v2 = vpop.eup %8810 }
 0xe1c   :  { %v2181_v3 = vmul.f32 %v8811_v2, %v2174_v55  ;;  %v2184_v5 = vadd.f32 %v2183_v0, %v2182_v1 }
 0xe1e   :  { %v9443_v6 = vmul.f32 %v2181_v3, %v2177_v62  ;;  %v2549_v7 = vmul.f32 %v2181_v3, %v2176_v63  ;;  %v2185_v8 = vmul.f32 %v2184_v5, %v2181_v3 }
 0xe20   :  { %v2559_v9 = vmul.f32 %v2549_v7, %v9409_v35  ;;  %v2187_v10 = vmul.f32 %v2185_v8, %v9409_v35  ;;  %v2552_v11 = vmul.f32 %v9443_v6, %v9409_v35  ;;  %v2186_v14 = vmul.f32 %v2185_v8, %v9396_v27 }
 0xe21   :  { %v2551_v13 = vmul.f32 %v2549_v7, %v9396_v27  ;;  %v2558_v39 = vmul.f32 %v9443_v6, %v9396_v27 }
 0xe22   :  { %2561 = vrot.lane.b32.xlu1 %v2559_v9, %s9033_s25  ;;  %2222 = vrot.lane.b32.xlu0 %v2187_v10, %s9033_s25 }
 0xe34   :  { %v9454_v15 = vpop.trf.xlu1 }
 0xe40   :  { %2300 = vxpose.xlu0.b32.start.end [1/1] (short) (narrow) %v9396_v27, 8 }
 0xe69   :  { %2554 = vrot.lane.b32.xlu0 %v2552_v11, %s9033_s25 }
 0xe94   :  { %v2223_v12 = vpop.permute.xlu0 %2222  ;;  %v2562_v37 = vpop.permute.xlu1 %2561 }
 0xe95   :  { %8287 = vmatpush3.msk.msra.mxu0 %vm2227_vm14, %v2223_v12  ;;  %8297 = vmatpush3.msk.msra.mxu1 %vm2227_vm14, %v2223_v12  ;;  %v9520_v42 = vadd.f32 %v2562_v37, %v2558_v39 }
 0xe96   :  { %8291 = vmatprep.subr.mxu0 %v9021_v4  ;;  %8289 = vmatmul.mubr.msk.f32.vlgmr.msra.gmra.mrb[20].mxu0 %vm1862_vm11, %v9454_v15 }
 0xe97   :  { %8292 = vmatpush3.msk.msra.mxu0 %vm2227_vm14, %v2186_v14  ;;  %8293 = vmatprep.mubr.msk.f32.mxu0 %vm9020_vm0, %v9021_v4 }
 0xe98   :  { %8301 = vmatprep.subr.mxu1 %v9021_v4  ;;  %8306 = vmatprep.subr.mxu0 %v9021_v4 }
 0xec0   :  { %v9466_v16 = vpop.trf.xlu0 }
 0xec1   :  { %8294 = vmatmul.mubr.msk.f32.vlgmr.msra.gmra.mrb[20].mxu0 %vm1862_vm11, %v9466_v16  ;;  %8299 = vmatmul.mubr.msk.f32.vlgmr.msra.gmra.mrb[26].mxu1 %vm1862_vm11, %v9466_v16 }
 0xec2   :  { %8302 = vmatpush3.msk.msra.mxu1 %vm2227_vm14, %v2186_v14  ;;  %8303 = vmatprep.mubr.msk.f32.mxu1 %vm9020_vm0, %v9021_v4 }
 0xec3   :  { %8308 = vmatprep.mubr.msk.f32.mxu0 %vm9020_vm0, %v9021_v4  ;;  %8311 = vmatprep.subr.mxu1 %v9021_v4 }
 0xec5   :  { %8304 = vmatmul.mubr.msk.f32.vlgmr.msra.gmra.mrb[28].mxu1 %vm1862_vm11, %v9454_v15 }
 0xec6   :  { %8313 = vmatprep.mubr.msk.f32.mxu1 %vm9020_vm0, %v9021_v4 }
 0xedb   :  { %v2555_v30 = vpop.permute.xlu0 %2554 }
 0xedc   :  { %v9515_v33 = vsub.f32 %v2551_v13, %v2555_v30 }
 0xf94   :  { %v2404_v17 = vpop.f32.mrb[20].mxu0  ;;  %v2474_v19 = vpop.f32.mrb[26].mxu1 }
 0xf95   :  { %v8295_v20 = vpop.f32.mrb[21].mxu0  ;;  %v8300_v21 = vpop.f32.mrb[27].mxu1  ;;  %8307 = vmatpush3.msk.msra.mxu0 %vm2227_vm14, %v2404_v17 }
 0xf96   :  { %8309 = vmatmul.mubr.msk.f32.vlgmr.msra.gmra.mrb[22].mxu0 %vm1862_vm11, %v9404_v31  ;;  %8316 = vmatprep.subr.mxu0 %v9021_v4 }
 0xf97   :  { %8317 = vmatpush3.msk.msra.mxu0 %vm2227_vm14, %v2404_v17  ;;  %8318 = vmatprep.mubr.msk.f32.mxu0 %vm9020_vm0, %v9021_v4 }
 0xf98   :  { %v2544_v22 = vpop.f32.mrb[28].mxu1  ;;  %8321 = vmatprep.subr.mxu0 %v9021_v4 }
 0xf99   :  { %v9490_v25 = vsub.f32 %v2474_v19, %v2544_v22  ;;  %v8305_v26 = vpop.f32.mrb[29].mxu1  ;;  %v3185_v19 = vstv %s7781_s30 }
 0xf9a   :  { %8319 = vmatmul.mubr.msk.f32.vlgmr.msra.gmra.mrb[24].mxu0 %vm1862_vm11, %v9388_v18 }
 0xf9b   :  { %8312 = vmatpush3.msk.msra.mxu1 %vm2227_vm14, %v9490_v25  ;;  %8322 = vmatpush3.msk.msra.mxu0 %vm2227_vm14, %v9490_v25 }
 0xf9c   :  { %8314 = vmatmul.mubr.msk.f32.vlgmr.msra.gmra.mrb[30].mxu1 %vm1862_vm11, %v9388_v18  ;;  %8326 = vmatprep.subr.mxu1 %v9021_v4 }
 0xf9d   :  { %8327 = vmatpush3.msk.msra.mxu1 %vm2227_vm14, %v2404_v17  ;;  %8323 = vmatprep.mubr.msk.f32.mxu0 %vm9020_vm0, %v9021_v4 }
 0xf9e   :  { %8336 = vmatprep.subr.mxu0 %v9021_v4  ;;  %8328 = vmatprep.mubr.msk.f32.mxu1 %vm9020_vm0, %v9021_v4 }
 0xf9f   :  { %8331 = vmatprep.subr.mxu1 %v9021_v4 }
 0xfa2   :  { %8324 = vmatmul.mubr.msk.f32.vlgmr.msra.gmra.mrb[24].mxu0 %vm1862_vm11, %v9404_v31 }
 0xfa3   :  { %8337 = vmatpush3.msk.msra.mxu0 %vm2227_vm14, %v2404_v17  ;;  %8338 = vmatprep.mubr.msk.f32.mxu0 %vm9020_vm0, %v9021_v4 }
 0xfa4   :  { %8341 = vmatprep.subr.mxu0 %v9021_v4 }
0x1069   :  { %v2634_v28 = vpop.f32.mrb[22].mxu0 }
0x106a   :  { %v8310_v29 = vpop.f32.mrb[23].mxu0 }
0x106f   :  { %v2707_v32 = vpop.f32.mrb[30].mxu1 }
0x1070   :  { %v2711_v34 = vsub.f32 %v2634_v28, %v2707_v32  ;;  %v8315_v36 = vpop.f32.mrb[31].mxu1 }
0x1072   :  { %v2852_v40 = vsub.f32 %v2711_v34, %v9515_v33 }
0x1074   :  { %v2853_v43 = vmul.f32 2.0, %v2852_v40 }
0x1075   :  { %v2848_v44 = vpop.f32.mrb[24].mxu0 }
0x1076   :  { %v2854_v45 = vsub.f32 %v2848_v44, %v9520_v42  ;;  %v2858_v46 = vmul.f32 %v2857_v41, %v2853_v43  ;;  %v8325_v48 = vpop.f32.mrb[25].mxu0 }
0x1078   :  { %v2855_v49 = vmul.f32 2.0, %v2854_v45  ;;  %v2859_v51 = vsub.f32 %v9404_v31, %v2858_v46 }
0x107a   :  { %v2860_v50 = vmul.f32 %v2857_v41, %v2855_v49  ;;  %v2862_v24 = vmul.f32 %v2859_v51, %v2859_v51 }
0x107c   :  { %v2861_v23 = vsub.f32 %v9388_v18, %v2860_v50 }
0x107e   :  { %v2863_v52 = vmul.f32 %v2861_v23, %v2861_v23 }
0x1080   :  { %v2864_v53 = vadd.f32 %v2863_v52, %v2862_v24 }
0x1082   :  { %v2865_v54 = vsel %vm2159_vm13, %v2864_v53, 0.0 }
0x1083   :  { %2866 = vadd.xlane.f32.xlu1 %v2865_v54 }
0x1110   :  { %v2867_v55 = vpop.xlane.xlu1 %2866 }
0x1111   :  { %v2868_v56 = vrot.slane %v2867_v55, 4 }
0x1113   :  { %v2869_v57 = vadd.f32 %v2868_v56, %v2867_v55 }
0x1115   :  { %v2870_v58 = vrot.slane %v2869_v57, 2 }
0x1117   :  { %v2871_v59 = vadd.f32 %v2870_v58, %v2869_v57 }
0x1119   :  { %v2872_v60 = vrot.slane %v2871_v59, 1 }
0x111b   :  { %v2873_v61 = vadd.f32 %v2872_v60, %v2871_v59 }
0x111d   :  { %8712 = vpush %v2873_v61 }
0x114e   :  { %s8713_s7 = spop %8712 }
0x114f   :  { %v2875_v62 = vstv %s8713_s7 }
0x1150   :  { %8812 = vrsqrt.f32 %v2875_v62  ;;  %vm2878_vm15 = vcmp.eq.f32.partialorder %v2875_v62, inf  ;;  %v2881_v18 = vand.u32 2147483648, %v2875_v62  ;;  %vm2880_vm1 = vcmp.eq.f32.partialorder %v2875_v62, 0.0 }
0x115a   :  { %v8813_v31 = vpop.eup %8812 }
0x115b   :  { %v2877_v63 = vmul.f32 %v8813_v31, %v2875_v62 }
0x115d   :  { %v2879_v0 = vsel %vm2878_vm15, %v2875_v62, %v2877_v63  ;;  %vm4506_vm15 = vcmask 60448  }
0x115e   :  { %v2882_v1 = vsel %vm2880_vm1, %v2881_v18, %v2879_v0  ;;  %vm4509_vm1 = vcmask 24576  }
0x115f   :  { %8714 = vpush %v2882_v1 }
0x1190   :  { %s8715_s8 = spop %8714 }
0x1191   :  { %s7772_s0 = sadd.f32 -1.0, %s8715_s8 }
0x1193   :  { %s2885_s26 = smax.f32 %s9034_s4, %s7772_s0 }
0x1194   :  { %s2886_s28 = sadd.f32 1.0, %s2885_s26 }
0x1196   :  { %v2887_v2 = vstv %s2886_s28  ;;  %s6005_s28 = sld [smem:[#allocation16]] }
0x1197   :  { %8814 = vrcp.f32 %v2887_v2 }
0x11a1   :  { %v8815_v3 = vpop.eup %8814 }
0x11a2   :  { %8716 = vpush %v8815_v3 }
0x11d3   :  { %s8717_s29 = spop %8716 }
0x11d4   :  { %v2890_v5 = vstv %s8717_s29 }
0x11d5   :  { %v2891_v6 = vmul.f32 %v2890_v5, %v2859_v51  ;;  %v2892_v7 = vmul.f32 %v2890_v5, %v2861_v23 }
0x11d7   :  { %8329 = vmatmul.mubr.msk.f32.vlgmr.msra.gmra.mrb[32].mxu1 %vm1862_vm11, %v2891_v6  ;;  %8339 = vmatmul.mubr.msk.f32.vlgmr.msra.gmra.mrb[26].mxu0 %vm1862_vm11, %v2892_v7 }
0x11d8   :  { %8332 = vmatpush3.msk.msra.mxu1 %vm2227_vm14, %v9490_v25  ;;  %8342 = vmatpush3.msk.msra.mxu0 %vm2227_vm14, %v9490_v25 }
0x11d9   :  { %8333 = vmatprep.mubr.msk.f32.mxu1 %vm9020_vm0, %v9021_v4  ;;  %8343 = vmatprep.mubr.msk.f32.mxu0 %vm9020_vm0, %v9021_v4 }
0x11da   :  { %8346 = vmatprep.subr.mxu1 %v9021_v4  ;;  %8356 = vmatprep.subr.mxu0 %v9021_v4 }
0x11db   :  { %8334 = vmatmul.mubr.msk.f32.vlgmr.msra.gmra.mrb[34].mxu1 %vm1862_vm11, %v2892_v7 }
0x11dc   :  { %8348 = vmatprep.mubr.msk.f32.mxu1 %vm9020_vm0, %v9021_v4 }
0x11df   :  { %8344 = vmatmul.mubr.msk.f32.vlgmr.msra.gmra.mrb[26].mxu0 %vm1862_vm11, %v2891_v6 }
0x11e0   :  { %8358 = vmatprep.mubr.msk.f32.mxu0 %vm9020_vm0, %v9021_v4 }
0x12aa   :  { %v2962_v8 = vpop.f32.mrb[32].mxu1 }
0x12ab   :  { %v8330_v9 = vpop.f32.mrb[33].mxu1 }
0x12ae   :  { %v3035_v10 = vpop.f32.mrb[34].mxu1 }
0x12af   :  { %v3039_v11 = vsub.f32 %v2962_v8, %v3035_v10  ;;  %v8335_v12 = vpop.f32.mrb[35].mxu1 }
0x12b1   :  { %v3180_v14 = vsub.f32 %v3039_v11, %v9515_v33 }
0x12b2   :  { %v3176_v17 = vpop.f32.mrb[26].mxu0 }
0x12b3   :  { %v3181_v20 = vmul.f32 2.0, %v3180_v14  ;;  %v3182_v21 = vsub.f32 %v3176_v17, %v9520_v42  ;;  %v8345_v22 = vpop.f32.mrb[27].mxu0 }
0x12b5   :  { %v3183_v25 = vmul.f32 2.0, %v3182_v21  ;;  %v3186_v26 = vmul.f32 %v3185_v19, %v3181_v20 }
0x12b7   :  { %v3188_v28 = vmul.f32 %v3185_v19, %v3183_v25  ;;  %v3187_v29 = vsub.f32 %v2891_v6, %v3186_v26 }
0x12b9   :  { %v3189_v30 = vsub.f32 %v2892_v7, %v3188_v28  ;;  %v3190_v13 = vmul.f32 %v3187_v29, %v3187_v29 }
0x12bb   :  { %v3191_v32 = vmul.f32 %v3189_v30, %v3189_v30 }
0x12bd   :  { %v3192_v34 = vadd.f32 %v3191_v32, %v3190_v13 }
0x12bf   :  { %v3193_v36 = vsel %vm2159_vm13, %v3192_v34, 0.0  ;;  %v7823_v34 = vld [vmem:[#allocation2 + $0x1] ss:$0 sm:$0xff] }
0x12c0   :  { %3194 = vadd.xlane.f32.xlu0 %v3193_v36 }
0x134d   :  { %v3195_v37 = vpop.xlane.xlu0 %3194 }
0x134e   :  { %v3196_v39 = vrot.slane %v3195_v37, 4 }
0x1350   :  { %v3197_v33 = vadd.f32 %v3196_v39, %v3195_v37 }
0x1352   :  { %v3198_v40 = vrot.slane %v3197_v33, 2 }
0x1354   :  { %v3199_v41 = vadd.f32 %v3198_v40, %v3197_v33 }
0x1356   :  { %v3200_v43 = vrot.slane %v3199_v41, 1 }
0x1358   :  { %v3201_v44 = vadd.f32 %v3200_v43, %v3199_v41 }
0x135a   :  { %8718 = vpush %v3201_v44 }
0x138b   :  { %s8719_s11 = spop %8718 }
0x138c   :  { %v3203_v42 = vstv %s8719_s11 }
0x138d   :  { %8816 = vrsqrt.f32 %v3203_v42  ;;  %vm3206_vm2 = vcmp.eq.f32.partialorder %v3203_v42, inf  ;;  %v3209_v48 = vand.u32 2147483648, %v3203_v42  ;;  %vm3208_vm3 = vcmp.eq.f32.partialorder %v3203_v42, 0.0 }
0x1397   :  { %v8817_v45 = vpop.eup %8816 }
0x1398   :  { %v3205_v46 = vmul.f32 %v8817_v45, %v3203_v42 }
0x139a   :  { %v3207_v49 = vsel %vm3206_vm2, %v3203_v42, %v3205_v46 }
0x139b   :  { %v3210_v50 = vsel %vm3208_vm3, %v3209_v48, %v3207_v49 }
0x139c   :  { %8720 = vpush %v3210_v50 }
0x13cd   :  { %s8721_s3 = spop %8720 }
0x13ce   :  { %s7782_s16 = sadd.f32 -1.0, %s8721_s3 }
0x13d0   :  { %s3213_s17 = smax.f32 %s9034_s4, %s7782_s16 }
0x13d1   :  { %s3214_s18 = sadd.f32 1.0, %s3213_s17 }
0x13d3   :  { %v3215_v51 = vstv %s3214_s18  ;;  %s7872_s18 = sld [smem:[#allocation16 + $0x1]] }
0x13d4   :  { %8818 = vrcp.f32 %v3215_v51 }
0x13de   :  { %v8819_v23 = vpop.eup %8818 }
0x13df   :  { %8722 = vpush %v8819_v23 }
0x1410   :  { %s8723_s19 = spop %8722 }
0x1411   :  { %v3218_v24 = vstv %s8723_s19 }
0x1412   :  { %v9549_v52 = vmul.f32 %v3218_v24, %v3189_v30  ;;  %v9557_v53 = vmul.f32 %v3218_v24, %v3187_v29 }
0x1414   :  { %8347 = vmatpush3.xpose.msk.msra.mxu1 %vm1862_vm11, %v9549_v52  ;;  %8357 = vmatpush3.xpose.msk.msra.mxu0 %vm1862_vm11, %v9549_v52 }
0x1415   :  { %8351 = vmatprep.subr.mxu1 %v9021_v4  ;;  %8366 = vmatprep.subr.mxu0 %v9021_v4 }
0x1417   :  { %8349 = vmatmul.mubr.msk.f32.vlgmr.msra.gmra.mrb[36].mxu1 %vm1862_vm11, %v9413_v38  ;;  %8359 = vmatmul.mubr.msk.f32.vlgmr.msra.gmra.mrb[28].mxu0 %vm1862_vm11, %v9396_v27 }
0x1418   :  { %8352 = vmatpush3.xpose.msk.msra.mxu1 %vm1862_vm11, %v9557_v53  ;;  %8353 = vmatprep.mubr.msk.f32.mxu1 %vm9020_vm0, %v9021_v4 }
0x1419   :  { %8361 = vmatprep.subr.mxu1 %v9021_v4  ;;  %8368 = vmatprep.mubr.msk.f32.mxu0 %vm9020_vm0, %v9021_v4 }
0x141f   :  { %8354 = vmatmul.mubr.msk.f32.vlgmr.msra.gmra.mrb[36].mxu1 %vm1862_vm11, %v9396_v27 }
0x1420   :  { %8362 = vmatpush3.xpose.msk.msra.mxu1 %vm1862_vm11, %v9557_v53  ;;  %8363 = vmatprep.mubr.msk.f32.mxu1 %vm9020_vm0, %v9021_v4 }
0x1421   :  { %8376 = vmatprep.subr.mxu1 %v9021_v4 }
0x1423   :  { %8364 = vmatmul.mubr.msk.f32.vlgmr.msra.gmra.mrb[38].mxu1 %vm1862_vm11, %v9413_v38 }
0x1424   :  { %8378 = vmatprep.mubr.msk.f32.mxu1 %vm9020_vm0, %v9021_v4 }
0x14ea   :  { %v3433_v54 = vpop.f32.mrb[28].mxu0 }
0x14eb   :  { %v8360_v55 = vpop.f32.mrb[29].mxu0 }
0x14f2   :  { %v3363_v56 = vpop.f32.mrb[36].mxu1 }
0x14f3   :  { %v3511_v57 = vmul.f32 %v9433_v47, %v3363_v56  ;;  %v8355_v58 = vpop.f32.mrb[37].mxu1  ;;  %v3508_v31 = vmul.f32 %v3363_v56, %v3363_v56 }
0x14f5   :  { %v3512_v59 = vsel %vm2159_vm13, %v3511_v57, 0.0 }
0x14f6   :  { %3513 = vadd.xlane.f32.xlu0 %v3512_v59  ;;  %v3503_v60 = vpop.f32.mrb[38].mxu1 }
0x14f7   :  { %v3507_v61 = vsub.f32 %v3433_v54, %v3503_v60  ;;  %v8365_v62 = vpop.f32.mrb[39].mxu1 }
0x14f9   :  { %v3509_v63 = vmul.f32 %v3507_v61, %v3507_v61  ;;  %v3515_v2 = vmul.f32 %v9433_v47, %v3507_v61 }
0x14fb   :  { %v3510_v18 = vadd.f32 %v3509_v63, %v3508_v31  ;;  %v3516_v3 = vsel %vm2159_vm13, %v3515_v2, 0.0 }
0x14fd   :  { %v3523_v38 = vsel %vm2159_vm13, %v3510_v18, 0.0  ;;  %v3519_v0 = vmul.f32 %v9433_v47, %v3510_v18 }
0x14fe   :  { %3524 = vadd.xlane.f32.xlu1 %v3523_v38 }
0x14ff   :  { %v3520_v1 = vsel %vm2159_vm13, %v3519_v0, 0.0 }
0x1502   :  { %3521 = vadd.xlane.f32.xlu1 %v3520_v1 }
0x1506   :  { %3517 = vadd.xlane.f32.xlu1 %v3516_v3 }
0x1583   :  { %v3514_v11 = vpop.xlane.xlu0 %3513 }
0x158b   :  { %v3525_v5 = vpop.xlane.xlu1 %3524 }
0x158c   :  { %v3526_v6 = vadd.f32 1.0, %v3525_v5 }
0x158e   :  { %8820 = vrcp.f32 %v3526_v6 }
0x158f   :  { %v3522_v7 = vpop.xlane.xlu1 %3521 }
0x1590   :  { %v3530_v8 = vsub.f32 %v3525_v5, %v3522_v7 }
0x1592   :  { %v3531_v9 = vadd.f32 1.0, %v3530_v8 }
0x1593   :  { %v3518_v12 = vpop.xlane.xlu1 %3517 }
0x1594   :  { %8822 = vrcp.f32 %v3531_v9 }
0x1598   :  { %v8821_v10 = vpop.eup %8820 }
0x1599   :  { %v3528_v14 = vmul.f32 %v8821_v10, %v3514_v11  ;;  %v3529_v17 = vmul.f32 %v8821_v10, %v3518_v12 }
0x159b   :  { %v3534_v19 = vmul.f32 %v3528_v14, %v3528_v14  ;;  %v3535_v20 = vmul.f32 %v3529_v17, %v3529_v17 }
0x159d   :  { %v3536_v25 = vadd.f32 %v3535_v20, %v3534_v19 }
0x159e   :  { %v8823_v21 = vpop.eup %8822 }
0x159f   :  { %v3533_v22 = vmul.f32 %v8823_v21, %v3526_v6 }
0x15a1   :  { %v3830_v26 = vmul.f32 %v3533_v22, %v3529_v17  ;;  %v3537_v28 = vmul.f32 %v3536_v25, %v3533_v22  ;;  %v3829_v13 = vmul.f32 %v3533_v22, %v3528_v14  ;;  %v7827_v17 = vld [vmem:[#allocation2 + $0x3] ss:$0 sm:$0xff] }
0x15a3   :  { %v3832_v29 = vmul.f32 %v3830_v26, %v9409_v35  ;;  %v3539_v30 = vmul.f32 %v3537_v28, %v9409_v35  ;;  %v3839_v32 = vmul.f32 %v3829_v13, %v9409_v35  ;;  %v9604_v35 = vld [vmem:[%s10178_s9 + $0x1] ss:$0 sm:$0xff]  ;;  %v3831_v36 = vmul.f32 %v3829_v13, %v9396_v27 }
0x15a4   :  { %v3538_v40 = vmul.f32 %v3537_v28, %v9396_v27  ;;  %v3838_v41 = vmul.f32 %v3830_v26, %v9396_v27 }
0x15a5   :  { %3834 = vrot.lane.b32.xlu1 %v3832_v29, %s9033_s25  ;;  %3541 = vrot.lane.b32.xlu0 %v3539_v30, %s9033_s25 }
0x15a9   :  { %3841 = vrot.lane.b32.xlu1 %v3839_v32, %s9033_s25 }
0x15ad   :  { %4607 = vrot.lane.b32.xlu1 %v7823_v34, %s9026_s1 }
0x15b1   :  { %4617 = vrot.lane.b32.xlu1 %v7823_v34, %s9027_s15 }
0x15b5   :  { %4627 = vrot.lane.b32.xlu1 %v7823_v34, %s9015_s14 }
0x15b9   :  { %4566 = vrot.lane.b32.xlu1 %v7823_v34, %s9022_s20 }
0x15bd   :  { %4577 = vrot.lane.b32.xlu1 %v7823_v34, %s9023_s10 }
0x15c1   :  { %4587 = vrot.lane.b32.xlu1 %v7823_v34, %s9024_s2  ;;  %s7807_s2 = sld [smem:[#allocation16 + $0x2]] }
0x15c5   :  { %4597 = vrot.lane.b32.xlu1 %v7823_v34, %s9025_s13 }
0x15c7   :  { %v4137_v0 = vstv %s7807_s2 }
0x15c9   :  { %4682 = vrot.lane.b32.xlu1 %v9604_v35, %s9023_s10 }
0x1617   :  { %v3835_v37 = vpop.permute.xlu1 %3834  ;;  %v3542_v39 = vpop.permute.xlu0 %3541 }
0x1618   :  { %v9609_v33 = vsub.f32 %v3831_v36, %v3835_v37  ;;  %8367 = vmatpush3.msk.msra.mxu0 %vm2227_vm14, %v3542_v39  ;;  %8377 = vmatpush3.msk.msra.mxu1 %vm2227_vm14, %v3542_v39 }
0x1619   :  { %8369 = vmatmul.mubr.msk.f32.vlgmr.msra.gmra.mrb[30].mxu0 %vm1862_vm11, %v9454_v15  ;;  %8371 = vmatprep.subr.mxu0 %v9021_v4 }
0x161a   :  { %8379 = vmatmul.mubr.msk.f32.vlgmr.msra.gmra.mrb[40].mxu1 %vm1862_vm11, %v9466_v16  ;;  %8381 = vmatprep.subr.mxu1 %v9021_v4 }
0x161b   :  { %8372 = vmatpush3.msk.msra.mxu0 %vm2227_vm14, %v3538_v40  ;;  %8382 = vmatpush3.msk.msra.mxu1 %vm2227_vm14, %v3538_v40  ;;  %v3842_v43 = vpop.permute.xlu1 %3841 }
0x161c   :  { %v9623_v44 = vadd.f32 %v3842_v43, %v3838_v41  ;;  %8383 = vmatprep.mubr.msk.f32.mxu1 %vm9020_vm0, %v9021_v4  ;;  %8373 = vmatprep.mubr.msk.f32.mxu0 %vm9020_vm0, %v9021_v4 }
0x161d   :  { %8391 = vmatprep.subr.mxu1 %v9021_v4  ;;  %8386 = vmatprep.subr.mxu0 %v9021_v4 }
0x161e   :  { %8384 = vmatmul.mubr.msk.f32.vlgmr.msra.gmra.mrb[42].mxu1 %vm1862_vm11, %v9454_v15 }
0x161f   :  { %v4608_v27 = vpop.permute.xlu1 %4607  ;;  %8393 = vmatprep.mubr.msk.f32.mxu1 %vm9020_vm0, %v9021_v4 }
0x1620   :  { %4610 = vst.msk [vmem:[#allocation3 + $0x14] sm:$0x1] %vm1415_vm6, %v4608_v27 }
0x1621   :  { %8374 = vmatmul.mubr.msk.f32.vlgmr.msra.gmra.mrb[30].mxu0 %vm1862_vm11, %v9466_v16 }
0x1622   :  { %8388 = vmatprep.mubr.msk.f32.mxu0 %vm9020_vm0, %v9021_v4 }
0x1623   :  { %v4618_v42 = vpop.permute.xlu1 %4617 }
0x1624   :  { %4620 = vst.msk [vmem:[#allocation3 + $0x15] sm:$0x1] %vm1415_vm6, %v4618_v42 }
0x1627   :  { %v4628_v45 = vpop.permute.xlu1 %4627 }
0x1628   :  { %4630 = vst.msk [vmem:[#allocation3 + $0x16] sm:$0x1] %vm1415_vm6, %v4628_v45 }
0x162b   :  { %v4567_v46 = vpop.permute.xlu1 %4566 }
0x162c   :  { %4570 = vst.msk [vmem:[#allocation3 + $0x10] sm:$0x1] %vm1415_vm6, %v4567_v46 }
0x162f   :  { %v4578_v15 = vpop.permute.xlu1 %4577  ;;  %v9646_v16 = vld [vmem:[#allocation3 + $0x14] sm:$0xf] }
0x1630   :  { %4580 = vst.msk [vmem:[#allocation3 + $0x11] sm:$0x1] %vm1415_vm6, %v4578_v15 }
0x1633   :  { %v4588_v48 = vpop.permute.xlu1 %4587 }
0x1634   :  { %4590 = vst.msk [vmem:[#allocation3 + $0x12] sm:$0x1] %vm1415_vm6, %v4588_v48 }
0x1637   :  { %v4598_v49 = vpop.permute.xlu1 %4597 }
0x1638   :  { %4600 = vst.msk [vmem:[#allocation3 + $0x13] sm:$0x1] %vm1415_vm6, %v4598_v49 }
0x163b   :  { %v4683_v50 = vpop.permute.xlu1 %4682 }
0x163c   :  { %v9649_v51 = vmul.f32 %v4683_v50, %v9646_v16 }
0x163e   :  { %4687 = vrot.lane.b32.xlu1 %v9649_v51, %s9029_s6 }
0x163f   :  { %v9655_v23 = vld [vmem:[#allocation3 + $0x10] sm:$0xf] }
0x1642   :  { %4691 = vrot.lane.b32.xlu1 %v9604_v35, %s9031_s23 }
0x1646   :  { %4781 = vrot.lane.b32.xlu1 %v9655_v23, %s9029_s6 }
0x16b0   :  { %v4688_v39 = vpop.permute.xlu1 %4687 }
0x16b4   :  { %v4692_v40 = vpop.permute.xlu1 %4691 }
0x16b5   :  { %v4694_v43 = vmul.f32 %v4692_v40, %v9646_v16 }
0x16b8   :  { %v4782_v41 = vpop.permute.xlu1 %4781 }
0x16ed   :  { %v3754_v24 = vpop.f32.mrb[40].mxu1 }
0x16ee   :  { %v8380_v54 = vpop.f32.mrb[41].mxu1 }
0x16f1   :  { %v3824_v55 = vpop.f32.mrb[42].mxu1 }
0x16f2   :  { %v9659_v56 = vsub.f32 %v3754_v24, %v3824_v55  ;;  %v8385_v57 = vpop.f32.mrb[43].mxu1  ;;  %v4690_v24 = vsub.f32 %v9649_v51, %v4688_v39  ;;  %v9759_v51 = vld [vmem:[#allocation14] sm:$0xf] }
0x16f4   :  { %8392 = vmatpush3.msk.msra.mxu1 %vm2227_vm14, %v9659_v56  ;;  %v3684_v58 = vpop.f32.mrb[30].mxu0 }
0x16f5   :  { %8394 = vmatmul.mubr.msk.f32.vlgmr.msra.gmra.mrb[44].mxu1 %vm1862_vm11, %v9549_v52  ;;  %8406 = vmatprep.subr.mxu1 %v9021_v4  ;;  %v8375_v59 = vpop.f32.mrb[31].mxu0 }
0x16f6   :  { %8387 = vmatpush3.msk.msra.mxu0 %vm2227_vm14, %v3684_v58  ;;  %8407 = vmatpush3.msk.msra.mxu1 %vm2227_vm14, %v3684_v58 }
0x16f7   :  { %8389 = vmatmul.mubr.msk.f32.vlgmr.msra.gmra.mrb[32].mxu0 %vm1862_vm11, %v9557_v53  ;;  %8396 = vmatprep.subr.mxu0 %v9021_v4 }
0x16f8   :  { %8397 = vmatpush3.msk.msra.mxu0 %vm2227_vm14, %v3684_v58  ;;  %8398 = vmatprep.mubr.msk.f32.mxu0 %vm9020_vm0, %v9021_v4 }
0x16f9   :  { %8401 = vmatprep.subr.mxu0 %v9021_v4  ;;  %8408 = vmatprep.mubr.msk.f32.mxu1 %vm9020_vm0, %v9021_v4 }
0x16fa   :  { %8411 = vmatprep.subr.mxu1 %v9021_v4 }
0x16fb   :  { %8399 = vmatmul.mubr.msk.f32.vlgmr.msra.gmra.mrb[34].mxu0 %vm1862_vm11, %v9549_v52 }
0x16fc   :  { %8402 = vmatpush3.msk.msra.mxu0 %vm2227_vm14, %v9659_v56  ;;  %8403 = vmatprep.mubr.msk.f32.mxu0 %vm9020_vm0, %v9021_v4 }
0x16fd   :  { %8416 = vmatprep.subr.mxu0 %v9021_v4 }
0x1703   :  { %8404 = vmatmul.mubr.msk.f32.vlgmr.msra.gmra.mrb[34].mxu0 %vm1862_vm11, %v9557_v53 }
0x1704   :  { %8417 = vmatpush3.msk.msra.mxu0 %vm2227_vm14, %v3684_v58  ;;  %8418 = vmatprep.mubr.msk.f32.mxu0 %vm9020_vm0, %v9021_v4 }
0x1705   :  { %8421 = vmatprep.subr.mxu0 %v9021_v4 }
0x17c8   :  { %v3987_v60 = vpop.f32.mrb[44].mxu1 }
0x17c9   :  { %v8395_v61 = vpop.f32.mrb[45].mxu1 }
0x17ca   :  { %v3914_v62 = vpop.f32.mrb[32].mxu0 }
0x17cb   :  { %v3991_v31 = vsub.f32 %v3914_v62, %v3987_v60  ;;  %v8390_v63 = vpop.f32.mrb[33].mxu0 }
0x17cd   :  { %v4132_v18 = vsub.f32 %v3991_v31, %v9609_v33 }
0x17cf   :  { %v4133_v38 = vmul.f32 2.0, %v4132_v18 }
0x17d1   :  { %v4138_v3 = vmul.f32 %v4137_v0, %v4133_v38 }
0x17d3   :  { %v4139_v8 = vsub.f32 %v9557_v53, %v4138_v3 }
0x17d5   :  { %v4142_v10 = vmul.f32 %v4139_v8, %v4139_v8 }
0x17d6   :  { %v4128_v1 = vpop.f32.mrb[34].mxu0 }
0x17d7   :  { %v4134_v2 = vsub.f32 %v4128_v1, %v9623_v44  ;;  %v8405_v5 = vpop.f32.mrb[35].mxu0 }
0x17d8   :  { %v9778_v5 = vld [vmem:[#allocation13] sm:$0xf] }
0x17d9   :  { %v4135_v6 = vmul.f32 2.0, %v4134_v2 }
0x17db   :  { %v4140_v7 = vmul.f32 %v4137_v0, %v4135_v6 }
0x17dd   :  { %v4141_v9 = vsub.f32 %v9549_v52, %v4140_v7 }
0x17df   :  { %v4143_v11 = vmul.f32 %v4141_v9, %v4141_v9 }
0x17e1   :  { %v4144_v12 = vadd.f32 %v4143_v11, %v4142_v10 }
0x17e3   :  { %v4145_v14 = vsel %vm2159_vm13, %v4144_v12, 0.0 }
0x17e4   :  { %4146 = vadd.xlane.f32.xlu0 %v4145_v14 }
0x17fa   :  { %4695 = vrot.lane.b32.xlu0 %v9604_v35, %s9030_s5 }
0x17fe   :  { %4649 = vrot.lane.b32.xlu0 %v7827_v17, %s9030_s5  ;;  %s7817_s5 = sld [smem:[#allocation16 + $0x3]] }
0x1802   :  { %4669 = vrot.lane.b32.xlu0 %v7827_v17, %s9031_s23 }
0x1804   :  { %v9814_v39 = vstv %s7817_s5 }
0x1871   :  { %v4147_v19 = vpop.xlane.xlu0 %4146 }
0x1872   :  { %v4148_v20 = vrot.slane %v4147_v19, 4 }
0x1874   :  { %v4149_v21 = vadd.f32 %v4148_v20, %v4147_v19 }
0x1875   :  { %v4696_v53 = vpop.permute.xlu0 %4695 }
0x1876   :  { %v4150_v22 = vrot.slane %v4149_v21, 2  ;;  %v4698_v52 = vmul.f32 %v4696_v53, %v9646_v16 }
0x1878   :  { %4700 = vrot.lane.b32.xlu1 %v4698_v52, %s9029_s6  ;;  %v4151_v25 = vadd.f32 %v4150_v22, %v4149_v21 }
0x1879   :  { %v4650_v26 = vpop.permute.xlu0 %4649 }
0x187a   :  { %4652 = vst.msk [vmem:[#allocation3 + $0x19] sm:$0x1] %vm1488_vm10, %v4650_v26  ;;  %v4152_v28 = vrot.slane %v4151_v25, 1 }
0x187c   :  { %4639 = vrot.lane.b32.xlu1 %v7827_v17, %s9022_s20  ;;  %v4153_v29 = vadd.f32 %v4152_v28, %v4151_v25 }
0x187d   :  { %v4670_v30 = vpop.permute.xlu0 %4669 }
0x187e   :  { %4672 = vst.msk [vmem:[#allocation3 + $0x1b] sm:$0x1] %vm1488_vm10, %v4670_v30 }
0x187f   :  { %8724 = vpush %v4153_v29 }
0x1880   :  { %4659 = vrot.lane.b32.xlu1 %v7827_v17, %s9023_s10 }
0x18b0   :  { %s8725_s13 = spop %8724 }
0x18b1   :  { %v4155_v13 = vstv %s8725_s13 }
0x18b2   :  { %8824 = vrsqrt.f32 %v4155_v13  ;;  %vm4158_vm4 = vcmp.eq.f32.partialorder %v4155_v13, inf  ;;  %v4161_v35 = vand.u32 2147483648, %v4155_v13  ;;  %vm4160_vm5 = vcmp.eq.f32.partialorder %v4155_v13, 0.0 }
0x18bc   :  { %v8825_v32 = vpop.eup %8824 }
0x18bd   :  { %v4157_v34 = vmul.f32 %v8825_v32, %v4155_v13 }
0x18bf   :  { %v4159_v36 = vsel %vm4158_vm4, %v4155_v13, %v4157_v34  ;;  %vm4516_vm4 = vcmask 155776  }
0x18c0   :  { %v4162_v37 = vsel %vm4160_vm5, %v4161_v35, %v4159_v36  ;;  %vm4523_vm5 = vcmask 57376  }
0x18c1   :  { %8726 = vpush %v4162_v37 }
0x18ea   :  { %v4701_v27 = vpop.permute.xlu1 %4700 }
0x18eb   :  { %v4703_v42 = vadd.f32 %v4701_v27, %v4694_v43 }
0x18ee   :  { %v4640_v45 = vpop.permute.xlu1 %4639 }
0x18ef   :  { %4642 = vst.msk [vmem:[#allocation3 + $0x18] sm:$0x1] %vm1488_vm10, %v4640_v45 }
0x18f2   :  { %s8727_s20 = spop %8726  ;;  %v4660_v46 = vpop.permute.xlu1 %4659 }
0x18f3   :  { %s7808_s10 = sadd.f32 -1.0, %s8727_s20  ;;  %4662 = vst.msk [vmem:[#allocation3 + $0x1a] sm:$0x1] %vm1488_vm10, %v4660_v46 }
0x18f5   :  { %s4165_s1 = smax.f32 %s9034_s4, %s7808_s10  ;;  %s9035_s10 = smov 12  }
0x18f6   :  { %s4166_s15 = sadd.f32 1.0, %s4165_s1 }
0x18f8   :  { %v4167_v15 = vstv %s4166_s15 }
0x18f9   :  { %8826 = vrcp.f32 %v4167_v15 }
0x18fa   :  { %v4675_v31 = vld [vmem:[#allocation3 + $0x18] sm:$0xf] }
0x1903   :  { %v8827_v48 = vpop.eup %8826 }
0x1904   :  { %8728 = vpush %v8827_v48 }
0x1935   :  { %s8729_s6 = spop %8728 }
0x1936   :  { %v4170_v49 = vstv %s8729_s6 }
0x1937   :  { %v9710_v16 = vmul.f32 %v4170_v49, %v4139_v8  ;;  %v9712_v50 = vmul.f32 %v4170_v49, %v4141_v9 }
0x1939   :  { %8409 = vmatmul.mubr.msk.f32.vlgmr.msra.gmra.mrb[46].mxu1 %vm1862_vm11, %v9710_v16  ;;  %8419 = vmatmul.mubr.msk.f32.vlgmr.msra.gmra.mrb[36].mxu0 %vm1862_vm11, %v9712_v50 }
0x193a   :  { %8412 = vmatpush3.msk.msra.mxu1 %vm2227_vm14, %v9659_v56  ;;  %8422 = vmatpush3.msk.msra.mxu0 %vm2227_vm14, %v9659_v56 }
0x193b   :  { %8413 = vmatprep.mubr.msk.f32.mxu1 %vm9020_vm0, %v9021_v4  ;;  %8426 = vmatprep.subr.mxu1 %v9021_v4 }
0x193c   :  { %8423 = vmatprep.mubr.msk.f32.mxu0 %vm9020_vm0, %v9021_v4  ;;  %8436 = vmatprep.subr.mxu0 %v9021_v4 }
0x193d   :  { %8414 = vmatmul.mubr.msk.f32.vlgmr.msra.gmra.mrb[48].mxu1 %vm1862_vm11, %v9712_v50 }
0x193e   :  { %8428 = vmatprep.mubr.msk.f32.mxu1 %vm9020_vm0, %v9021_v4 }
0x1941   :  { %8427 = vmatpush3.xpose.msk.msra.mxu1 %vm1551_vm9, %v9655_v23  ;;  %8424 = vmatmul.mubr.msk.f32.vlgmr.msra.gmra.mrb[36].mxu0 %vm1862_vm11, %v9710_v16 }
0x1942   :  { %8437 = vmatpush3.xpose.msk.msra.mxu0 %vm1551_vm9, %v4782_v41  ;;  %8431 = vmatprep.subr.mxu1 %v9021_v4 }
0x1943   :  { %8438 = vmatprep.mubr.msk.f32.mxu0 %vm9020_vm0, %v9021_v4  ;;  %8446 = vmatprep.subr.mxu0 %v9021_v4 }
0x1944   :  { %8429 = vmatmul.mubr.msk.f32.vlgmr.msra.gmra.mrb[50].mxu1 %vm1551_vm9, %v4690_v24 }
0x1945   :  { %8432 = vmatpush3.xpose.msk.msra.mxu1 %vm1551_vm9, %v4782_v41  ;;  %8439 = vmatmul.mubr.msk.f32.vlgmr.msra.gmra.mrb[38].mxu0 %vm1551_vm9, %v4690_v24 }
0x1946   :  { %8433 = vmatprep.mubr.msk.f32.mxu1 %vm9020_vm0, %v9021_v4  ;;  %8441 = vmatprep.subr.mxu1 %v9021_v4 }
0x1947   :  { %8448 = vmatprep.mubr.msk.f32.mxu0 %vm9020_vm0, %v9021_v4  ;;  %8447 = vmatpush3.xpose.msk.msra.mxu0 %vm1862_vm11, %v9759_v51 }
0x1948   :  { %8434 = vmatmul.mubr.msk.f32.vlgmr.msra.gmra.mrb[52].mxu1 %vm1551_vm9, %v4703_v42  ;;  %8451 = vmatprep.subr.mxu0 %v9021_v4 }
0x1949   :  { %8442 = vmatpush3.xpose.msk.msra.mxu1 %vm1551_vm9, %v9655_v23  ;;  %8443 = vmatprep.mubr.msk.f32.mxu1 %vm9020_vm0, %v9021_v4 }
0x194a   :  { %8456 = vmatprep.subr.mxu1 %v9021_v4 }
0x194c   :  { %8444 = vmatmul.mubr.msk.f32.vlgmr.msra.gmra.mrb[54].mxu1 %vm1551_vm9, %v4703_v42 }
0x194d   :  { %8458 = vmatprep.mubr.msk.f32.mxu1 %vm9020_vm0, %v9021_v4  ;;  %8457 = vmatpush3.xpose.msk.msra.mxu1 %vm1862_vm11, %v9759_v51 }
0x194e   :  { %8461 = vmatprep.subr.mxu1 %v9021_v4 }
0x1a0c   :  { %v9767_v23 = vpop.f32.mrb[46].mxu1 }
0x1a0d   :  { %v8410_v54 = vpop.f32.mrb[47].mxu1 }
0x1a10   :  { %v4315_v55 = vpop.f32.mrb[48].mxu1 }
0x1a11   :  { %v4319_v56 = vsub.f32 %v9767_v23, %v4315_v55  ;;  %v8415_v57 = vpop.f32.mrb[49].mxu1 }
0x1a13   :  { %v4460_v35 = vsub.f32 %v4319_v56, %v9609_v33 }
0x1a14   :  { %v4456_v58 = vpop.f32.mrb[36].mxu0 }
0x1a15   :  { %v8425_v59 = vpop.f32.mrb[37].mxu0  ;;  %v4462_v34 = vsub.f32 %v4456_v58, %v9623_v44  ;;  %v4461_v37 = vmul.f32 2.0, %v4460_v35 }
0x1a17   :  { %v4776_v60 = vpop.f32.mrb[50].mxu1  ;;  %v4463_v36 = vmul.f32 2.0, %v4462_v34  ;;  %v4466_v41 = vmul.f32 %v9814_v39, %v4461_v37 }
0x1a18   :  { %v8430_v61 = vpop.f32.mrb[51].mxu1  ;;  %v4925_v62 = vpop.f32.mrb[38].mxu0  ;;  %v4780_v18 = vadd.f32 %v4776_v60, %v4675_v31 }
0x1a19   :  { %v8440_v63 = vpop.f32.mrb[39].mxu0  ;;  %4930 = vrot.lane.b32.xlu1 %v4925_v62, %s9032_s24  ;;  %v4468_v40 = vmul.f32 %v9814_v39, %v4463_v36  ;;  %v9822_v27 = vsub.f32 %v9710_v16, %v4466_v41 }
0x1a1b   :  { %v4854_v38 = vpop.f32.mrb[52].mxu1  ;;  %v9819_v43 = vsub.f32 %v9712_v50, %v4468_v40  ;;  %v4470_v33 = vmul.f32 %v9822_v27, %v9822_v27 }
0x1a1c   :  { %v9771_v0 = vsub.f32 %v4780_v18, %v4854_v38  ;;  %v8435_v1 = vpop.f32.mrb[53].mxu1 }
0x1a1d   :  { %v4471_v42 = vmul.f32 %v9819_v43, %v9819_v43 }
0x1a1e   :  { %8459 = vmatmul.mubr.msk.f32.vlgmr.msra.gmra.mrb[56].mxu1 %vm1862_vm11, %v9771_v0 }
0x1a1f   :  { %v5000_v2 = vpop.f32.mrb[54].mxu1  ;;  %8463 = vmatprep.mubr.msk.f32.mxu1 %vm9020_vm0, %v9021_v4  ;;  %8462 = vmatpush3.xpose.msk.msra.mxu1 %vm1862_vm11, %v9778_v5  ;;  %v4472_v44 = vadd.f32 %v4471_v42, %v4470_v33 }
0x1a20   :  { %5005 = vrot.lane.b32.xlu0 %v5000_v2, %s9032_s24  ;;  %v8445_v3 = vpop.f32.mrb[55].mxu1  ;;  %8476 = vmatprep.subr.mxu1 %v9021_v4 }
0x1a21   :  { %v4473_v45 = vsel %vm2159_vm13, %v4472_v44, 0.0 }
0x1a8b   :  { %v4931_v6 = vpop.permute.xlu1 %4930 }
0x1a8c   :  { %v4933_v7 = vadd.f32 %v4931_v6, %v4675_v31 }
0x1a92   :  { %v5006_v8 = vpop.permute.xlu0 %5005 }
0x1a93   :  { %v9783_v9 = vadd.f32 %v5006_v8, %v4933_v7 }
0x1a95   :  { %5012 = vrot.lane.b32.xlu1 %v9783_v9, %s9033_s25 }
0x1af1   :  { %v5231_v10 = vpop.f32.mrb[56].mxu1 }
0x1af2   :  { %v8460_v11 = vpop.f32.mrb[57].mxu1 }
0x1b07   :  { %v9787_v12 = vpop.permute.xlu1 %5012 }
0x1b08   :  { %8449 = vmatmul.mubr.msk.f32.vlgmr.msra.gmra.mrb[40].mxu0 %vm1862_vm11, %v9787_v12  ;;  %8464 = vmatmul.mubr.msk.f32.vlgmr.msra.gmra.mrb[58].mxu1 %vm1862_vm11, %v9787_v12 }
0x1b09   :  { %8452 = vmatpush3.xpose.msk.msra.mxu0 %vm1862_vm11, %v9778_v5  ;;  %8453 = vmatprep.mubr.msk.f32.mxu0 %vm9020_vm0, %v9021_v4 }
0x1b0a   :  { %8466 = vmatprep.subr.mxu0 %v9021_v4  ;;  %8478 = vmatprep.mubr.msk.f32.mxu1 %vm9020_vm0, %v9021_v4 }
0x1b10   :  { %8454 = vmatmul.mubr.msk.f32.vlgmr.msra.gmra.mrb[40].mxu0 %vm1862_vm11, %v9771_v0 }
0x1b11   :  { %8468 = vmatprep.mubr.msk.f32.mxu0 %vm9020_vm0, %v9021_v4 }
0x1bdb   :  { %v5301_v14 = vpop.f32.mrb[58].mxu1 }
0x1bdc   :  { %v5305_v17 = vsub.f32 %v5231_v10, %v5301_v14  ;;  %v8465_v19 = vpop.f32.mrb[59].mxu1 }
0x1bde   :  { %v5307_v21 = vmul.f32 %v5305_v17, %v5305_v17  ;;  %v5313_v13 = vmul.f32 %v9433_v47, %v5305_v17 }
0x1be0   :  { %v5314_v32 = vsel %vm2159_vm13, %v5313_v13, 0.0 }
0x1be3   :  { %v5161_v20 = vpop.f32.mrb[40].mxu0 }
0x1be4   :  { %v5306_v53 = vmul.f32 %v5161_v20, %v5161_v20  ;;  %v8455_v22 = vpop.f32.mrb[41].mxu0  ;;  %v5309_v25 = vmul.f32 %v9433_v47, %v5161_v20 }
0x1be6   :  { %v5308_v52 = vadd.f32 %v5307_v21, %v5306_v53  ;;  %v5310_v30 = vsel %vm2159_vm13, %v5309_v25, 0.0 }
0x1be8   :  { %v5321_v26 = vsel %vm2159_vm13, %v5308_v52, 0.0  ;;  %v5317_v28 = vmul.f32 %v9433_v47, %v5308_v52 }
0x1be9   :  { %5322 = vadd.xlane.f32.xlu0 %v5321_v26 }
0x1bea   :  { %v5318_v29 = vsel %vm2159_vm13, %v5317_v28, 0.0 }
0x1beb   :  { %5319 = vadd.xlane.f32.xlu1 %v5318_v29 }
0x1bed   :  { %5311 = vadd.xlane.f32.xlu0 %v5310_v30 }
0x1bf1   :  { %5315 = vadd.xlane.f32.xlu0 %v5314_v32 }
0x1c1e   :  { %5339 = vxpose.xlu0.b32.start.end [1/1] (short) (narrow) %v9787_v12, 8 }
0x1c4b   :  { %4474 = vadd.xlane.f32.xlu0 %v4473_v45 }
0x1c76   :  { %v5323_v46 = vpop.xlane.xlu0 %5322 }
0x1c77   :  { %v5324_v15 = vadd.f32 1.0, %v5323_v46 }
0x1c78   :  { %v5320_v48 = vpop.xlane.xlu1 %5319 }
0x1c79   :  { %8828 = vrcp.f32 %v5324_v15  ;;  %v5328_v49 = vsub.f32 %v5323_v46, %v5320_v48 }
0x1c7a   :  { %v5312_v24 = vpop.xlane.xlu0 %5311 }
0x1c7b   :  { %v5329_v50 = vadd.f32 1.0, %v5328_v49 }
0x1c7d   :  { %8830 = vrcp.f32 %v5329_v50 }
0x1c7e   :  { %v5316_v23 = vpop.xlane.xlu0 %5315 }
0x1c83   :  { %v8829_v16 = vpop.eup %8828 }
0x1c84   :  { %v5326_v54 = vmul.f32 %v8829_v16, %v5312_v24  ;;  %v5327_v55 = vmul.f32 %v8829_v16, %v5316_v23  ;;  %v6006_v24 = vstv %s6005_s28 }
0x1c86   :  { %v5332_v56 = vmul.f32 %v5326_v54, %v5326_v54  ;;  %v5333_v57 = vmul.f32 %v5327_v55, %v5327_v55 }
0x1c87   :  { %v8831_v58 = vpop.eup %8830 }
0x1c88   :  { %v5331_v59 = vmul.f32 %v8831_v58, %v5324_v15  ;;  %v5334_v60 = vadd.f32 %v5333_v57, %v5332_v56 }
0x1c8a   :  { %v9829_v61 = vmul.f32 %v5331_v59, %v5326_v54  ;;  %v9831_v62 = vmul.f32 %v5331_v59, %v5327_v55  ;;  %v5335_v31 = vmul.f32 %v5334_v60, %v5331_v59 }
0x1c8c   :  { %v5337_v63 = vmul.f32 %v5335_v31, %v9783_v9  ;;  %v5701_v38 = vmul.f32 %v9831_v62, %v9783_v9  ;;  %v5708_v1 = vmul.f32 %v9829_v61, %v9783_v9  ;;  %v5336_v17 = vmul.f32 %v5335_v31, %v9771_v0 }
0x1c8d   :  { %v5700_v33 = vmul.f32 %v9829_v61, %v9771_v0  ;;  %v5707_v49 = vmul.f32 %v9831_v62, %v9771_v0 }
0x1c8e   :  { %5372 = vrot.lane.b32.xlu1 %v5337_v63, %s9033_s25 }
0x1c9e   :  { %v9836_v18 = vpop.trf.xlu0 }
0x1cb7   :  { %5449 = vxpose.xlu1.b32.start.end [1/1] (short) (narrow) %v9771_v0, 8 }
0x1cd5   :  { %5703 = vrot.lane.b32.xlu1 %v5701_v38, %s9033_s25 }
0x1cd8   :  { %v4475_v2 = vpop.xlane.xlu0 %4474 }
0x1cd9   :  { %v4476_v3 = vrot.slane %v4475_v2, 4  ;;  %5710 = vrot.lane.b32.xlu1 %v5708_v1, %s9033_s25 }
0x1cdb   :  { %v4477_v6 = vadd.f32 %v4476_v3, %v4475_v2 }
0x1cdd   :  { %v4478_v7 = vrot.slane %v4477_v6, 2 }
0x1cdf   :  { %v4479_v8 = vadd.f32 %v4478_v7, %v4477_v6 }
0x1ce1   :  { %v4480_v10 = vrot.slane %v4479_v8, 1 }
0x1ce3   :  { %v4481_v11 = vadd.f32 %v4480_v10, %v4479_v8 }
0x1ce5   :  { %8730 = vpush %v4481_v11 }
0x1d00   :  { %v5373_v14 = vpop.permute.xlu1 %5372 }
0x1d01   :  { %8467 = vmatpush3.msk.msra.mxu0 %vm2227_vm14, %v5373_v14  ;;  %8477 = vmatpush3.msk.msra.mxu1 %vm2227_vm14, %v5373_v14 }
0x1d02   :  { %8471 = vmatprep.subr.mxu0 %v9021_v4  ;;  %8469 = vmatmul.mubr.msk.f32.vlgmr.msra.gmra.mrb[42].mxu0 %vm1862_vm11, %v9836_v18 }
0x1d03   :  { %8472 = vmatpush3.msk.msra.mxu0 %vm2227_vm14, %v5336_v17  ;;  %8473 = vmatprep.mubr.msk.f32.mxu0 %vm9020_vm0, %v9021_v4 }
0x1d04   :  { %8481 = vmatprep.subr.mxu1 %v9021_v4  ;;  %8486 = vmatprep.subr.mxu0 %v9021_v4 }
0x1d16   :  { %s8731_s23 = spop %8730 }
0x1d17   :  { %v4483_v19 = vstv %s8731_s23 }
0x1d18   :  { %8832 = vrsqrt.f32 %v4483_v19  ;;  %vm4486_vm6 = vcmp.eq.f32.partialorder %v4483_v19, inf  ;;  %v4489_v53 = vand.u32 2147483648, %v4483_v19  ;;  %vm4488_vm7 = vcmp.eq.f32.partialorder %v4483_v19, 0.0 }
0x1d22   :  { %v8833_v20 = vpop.eup %8832 }
0x1d23   :  { %v4485_v21 = vmul.f32 %v8833_v20, %v4483_v19 }
0x1d25   :  { %v4487_v22 = vsel %vm4486_vm6, %v4483_v19, %v4485_v21  ;;  %vm4537_vm6 = vcmask 90176  }
0x1d26   :  { %v4490_v52 = vsel %vm4488_vm7, %v4489_v53, %v4487_v22  ;;  %vm4551_vm7 = vcmask 122976  }
0x1d27   :  { %8732 = vpush %v4490_v52 }
0x1d37   :  { %v9855_v25 = vpop.trf.xlu1 }
0x1d38   :  { %8474 = vmatmul.mubr.msk.f32.vlgmr.msra.gmra.mrb[42].mxu0 %vm1862_vm11, %v9855_v25  ;;  %8479 = vmatmul.mubr.msk.f32.vlgmr.msra.gmra.mrb[60].mxu1 %vm1862_vm11, %v9855_v25 }
0x1d39   :  { %8482 = vmatpush3.msk.msra.mxu1 %vm2227_vm14, %v5336_v17  ;;  %8483 = vmatprep.mubr.msk.f32.mxu1 %vm9020_vm0, %v9021_v4 }
0x1d3a   :  { %8488 = vmatprep.mubr.msk.f32.mxu0 %vm9020_vm0, %v9021_v4  ;;  %8491 = vmatprep.subr.mxu1 %v9021_v4 }
0x1d3c   :  { %8484 = vmatmul.mubr.msk.f32.vlgmr.msra.gmra.mrb[62].mxu1 %vm1862_vm11, %v9836_v18 }
0x1d3d   :  { %8493 = vmatprep.mubr.msk.f32.mxu1 %vm9020_vm0, %v9021_v4 }
0x1d47   :  { %v5704_v42 = vpop.permute.xlu1 %5703 }
0x1d48   :  { %v9913_v45 = vsub.f32 %v5700_v33, %v5704_v42 }
0x1d4b   :  { %v5711_v48 = vpop.permute.xlu1 %5710 }
0x1d4c   :  { %v9918_v16 = vadd.f32 %v5711_v48, %v5707_v49 }
0x1d58   :  { %s8733_s27 = spop %8732 }
0x1d59   :  { %s7818_s7 = sadd.f32 -1.0, %s8733_s27 }
0x1d5b   :  { %s4493_s8 = smax.f32 %s9034_s4, %s7818_s7 }
0x1d5c   :  { %s4494_s0 = sadd.f32 1.0, %s4493_s8 }
0x1d5e   :  { %v4495_v26 = vstv %s4494_s0 }
0x1d5f   :  { %8834 = vrcp.f32 %v4495_v26 }
0x1d69   :  { %v8835_v28 = vpop.eup %8834 }
0x1d6a   :  { %8734 = vpush %v8835_v28 }
0x1d9b   :  { %s9872_s26 = spop %8734 }
0x1d9c   :  { %v4498_v29 = vstv %s9872_s26 }
0x1d9d   :  { %v4499_v30 = vmul.f32 %v4498_v29, %v9822_v27 }
0x1d9f   :  { %4501 = vst.msk [vmem:[#allocation4] sm:$0xf] %vm2159_vm13, %v4499_v30 }
0x1e0b   :  { %v5553_v13 = vpop.f32.mrb[42].mxu0  ;;  %v5623_v32 = vpop.f32.mrb[60].mxu1 }
0x1e0c   :  { %v8475_v34 = vpop.f32.mrb[43].mxu0  ;;  %v8480_v35 = vpop.f32.mrb[61].mxu1  ;;  %8487 = vmatpush3.msk.msra.mxu0 %vm2227_vm14, %v5553_v13 }
0x1e0d   :  { %8489 = vmatmul.mubr.msk.f32.vlgmr.msra.gmra.mrb[44].mxu0 %vm1862_vm11, %v9778_v5  ;;  %8496 = vmatprep.subr.mxu0 %v9021_v4 }
0x1e0e   :  { %8497 = vmatpush3.msk.msra.mxu0 %vm2227_vm14, %v5553_v13  ;;  %8498 = vmatprep.mubr.msk.f32.mxu0 %vm9020_vm0, %v9021_v4 }
0x1e0f   :  { %v5693_v36 = vpop.f32.mrb[62].mxu1  ;;  %8501 = vmatprep.subr.mxu0 %v9021_v4 }
0x1e10   :  { %v9887_v37 = vsub.f32 %v5623_v32, %v5693_v36  ;;  %v8485_v40 = vpop.f32.mrb[63].mxu1  ;;  %v6334_v36 = vstv %s7872_s18 }
0x1e11   :  { %8499 = vmatmul.mubr.msk.f32.vlgmr.msra.gmra.mrb[46].mxu0 %vm1862_vm11, %v9759_v51 }
0x1e12   :  { %8492 = vmatpush3.msk.msra.mxu1 %vm2227_vm14, %v9887_v37  ;;  %8502 = vmatpush3.msk.msra.mxu0 %vm2227_vm14, %v9887_v37 }
0x1e13   :  { %8494 = vmatmul.mubr.msk.f32.vlgmr.msra.gmra.mrb[64].mxu1 %vm1862_vm11, %v9759_v51  ;;  %8506 = vmatprep.subr.mxu1 %v9021_v4 }
0x1e14   :  { %8507 = vmatpush3.msk.msra.mxu1 %vm2227_vm14, %v5553_v13  ;;  %8503 = vmatprep.mubr.msk.f32.mxu0 %vm9020_vm0, %v9021_v4 }
0x1e15   :  { %8516 = vmatprep.subr.mxu0 %v9021_v4  ;;  %8508 = vmatprep.mubr.msk.f32.mxu1 %vm9020_vm0, %v9021_v4 }
0x1e16   :  { %8511 = vmatprep.subr.mxu1 %v9021_v4 }
0x1e19   :  { %8504 = vmatmul.mubr.msk.f32.vlgmr.msra.gmra.mrb[46].mxu0 %vm1862_vm11, %v9778_v5 }
0x1e1a   :  { %8517 = vmatpush3.msk.msra.mxu0 %vm2227_vm14, %v5553_v13  ;;  %8518 = vmatprep.mubr.msk.f32.mxu0 %vm9020_vm0, %v9021_v4 }
0x1e1b   :  { %8521 = vmatprep.subr.mxu0 %v9021_v4 }
0x1ee0   :  { %v5783_v41 = vpop.f32.mrb[44].mxu0 }
0x1ee1   :  { %v8490_v27 = vpop.f32.mrb[45].mxu0 }
0x1ee6   :  { %v5856_v44 = vpop.f32.mrb[64].mxu1 }
0x1ee7   :  { %v5860_v46 = vsub.f32 %v5783_v41, %v5856_v44  ;;  %v8495_v15 = vpop.f32.mrb[65].mxu1 }
0x1ee9   :  { %v6001_v50 = vsub.f32 %v5860_v46, %v9913_v45 }
0x1eeb   :  { %v6002_v23 = vmul.f32 2.0, %v6001_v50 }
0x1eec   :  { %v5997_v54 = vpop.f32.mrb[46].mxu0 }
0x1eed   :  { %v6003_v55 = vsub.f32 %v5997_v54, %v9918_v16  ;;  %v6007_v56 = vmul.f32 %v6006_v24, %v6002_v23  ;;  %v8505_v57 = vpop.f32.mrb[47].mxu0 }
0x1eef   :  { %v6004_v58 = vmul.f32 2.0, %v6003_v55  ;;  %v6008_v60 = vsub.f32 %v9778_v5, %v6007_v56 }
0x1ef1   :  { %v6009_v59 = vmul.f32 %v6006_v24, %v6004_v58  ;;  %v6011_v31 = vmul.f32 %v6008_v60, %v6008_v60 }
0x1ef3   :  { %v6010_v61 = vsub.f32 %v9759_v51, %v6009_v59 }
0x1ef5   :  { %v6012_v63 = vmul.f32 %v6010_v61, %v6010_v61 }
0x1ef7   :  { %v6013_v62 = vadd.f32 %v6012_v63, %v6011_v31 }
0x1ef9   :  { %v6014_v38 = vsel %vm2159_vm13, %v6013_v62, 0.0 }
0x1efa   :  { %6015 = vadd.xlane.f32.xlu1 %v6014_v38 }
0x1f87   :  { %v6016_v1 = vpop.xlane.xlu1 %6015 }
0x1f88   :  { %v6017_v2 = vrot.slane %v6016_v1, 4 }
0x1f8a   :  { %v6018_v3 = vadd.f32 %v6017_v2, %v6016_v1 }
0x1f8c   :  { %v6019_v6 = vrot.slane %v6018_v3, 2 }
0x1f8e   :  { %v6020_v7 = vadd.f32 %v6019_v6, %v6018_v3 }
0x1f90   :  { %v6021_v8 = vrot.slane %v6020_v7, 1 }
0x1f92   :  { %v6022_v10 = vadd.f32 %v6021_v8, %v6020_v7 }
0x1f94   :  { %8736 = vpush %v6022_v10 }
0x1fc5   :  { %s8737_s29 = spop %8736 }
0x1fc6   :  { %v6024_v11 = vstv %s8737_s29 }
0x1fc7   :  { %8836 = vrsqrt.f32 %v6024_v11  ;;  %vm6027_vm8 = vcmp.eq.f32.partialorder %v6024_v11, inf  ;;  %v6030_v51 = vand.u32 2147483648, %v6024_v11  ;;  %vm6029_vm9 = vcmp.eq.f32.partialorder %v6024_v11, 0.0 }
0x1fd1   :  { %v8837_v5 = vpop.eup %8836 }
0x1fd2   :  { %v6026_v14 = vmul.f32 %v8837_v5, %v6024_v11 }
0x1fd4   :  { %v6028_v17 = vsel %vm6027_vm8, %v6024_v11, %v6026_v14  ;;  %vm4558_vm8 = vcmask 254176  }
0x1fd5   :  { %v6031_v19 = vsel %vm6029_vm9, %v6030_v51, %v6028_v17 }
0x1fd6   :  { %8738 = vpush %v6031_v19 }
0x2007   :  { %s8739_s30 = spop %8738 }
0x2008   :  { %s7863_s11 = sadd.f32 -1.0, %s8739_s30 }
0x200a   :  { %s6034_s3 = smax.f32 %s9034_s4, %s7863_s11 }
0x200b   :  { %s6035_s16 = sadd.f32 1.0, %s6034_s3 }
0x200d   :  { %v6036_v20 = vstv %s6035_s16 }
0x200e   :  { %8838 = vrcp.f32 %v6036_v20 }
0x2018   :  { %v8839_v21 = vpop.eup %8838 }
0x2019   :  { %8740 = vpush %v8839_v21 }
0x204a   :  { %s8741_s17 = spop %8740 }
0x204b   :  { %v6039_v53 = vstv %s8741_s17 }
0x204c   :  { %v6040_v22 = vmul.f32 %v6039_v53, %v6008_v60  ;;  %v6041_v52 = vmul.f32 %v6039_v53, %v6010_v61 }
0x204e   :  { %8509 = vmatmul.mubr.msk.f32.vlgmr.msra.gmra.mrb[66].mxu1 %vm1862_vm11, %v6040_v22  ;;  %8519 = vmatmul.mubr.msk.f32.vlgmr.msra.gmra.mrb[48].mxu0 %vm1862_vm11, %v6041_v52 }
0x204f   :  { %8512 = vmatpush3.msk.msra.mxu1 %vm2227_vm14, %v9887_v37  ;;  %8522 = vmatpush3.msk.msra.mxu0 %vm2227_vm14, %v9887_v37 }
0x2050   :  { %8513 = vmatprep.mubr.msk.f32.mxu1 %vm9020_vm0, %v9021_v4  ;;  %8523 = vmatprep.mubr.msk.f32.mxu0 %vm9020_vm0, %v9021_v4 }
0x2051   :  { %8526 = vmatprep.subr.mxu1 %v9021_v4  ;;  %8536 = vmatprep.subr.mxu0 %v9021_v4 }
0x2052   :  { %8514 = vmatmul.mubr.msk.f32.vlgmr.msra.gmra.mrb[68].mxu1 %vm1862_vm11, %v6041_v52 }
0x2053   :  { %8528 = vmatprep.mubr.msk.f32.mxu1 %vm9020_vm0, %v9021_v4 }
0x2056   :  { %8524 = vmatmul.mubr.msk.f32.vlgmr.msra.gmra.mrb[48].mxu0 %vm1862_vm11, %v6040_v22 }
0x2057   :  { %8538 = vmatprep.mubr.msk.f32.mxu0 %vm9020_vm0, %v9021_v4 }
0x2121   :  { %v6111_v26 = vpop.f32.mrb[66].mxu1 }
0x2122   :  { %v8510_v28 = vpop.f32.mrb[67].mxu1 }
0x2125   :  { %v6184_v30 = vpop.f32.mrb[68].mxu1 }
0x2126   :  { %v6188_v13 = vsub.f32 %v6111_v26, %v6184_v30  ;;  %v8515_v32 = vpop.f32.mrb[69].mxu1 }
0x2128   :  { %v6329_v34 = vsub.f32 %v6188_v13, %v9913_v45 }
0x2129   :  { %v6325_v35 = vpop.f32.mrb[48].mxu0 }
0x212a   :  { %v6330_v37 = vmul.f32 2.0, %v6329_v34  ;;  %v6331_v40 = vsub.f32 %v6325_v35, %v9918_v16  ;;  %v8525_v41 = vpop.f32.mrb[49].mxu0 }
0x212c   :  { %v6332_v27 = vmul.f32 2.0, %v6331_v40  ;;  %v6335_v42 = vmul.f32 %v6334_v36, %v6330_v37 }
0x212e   :  { %v6337_v33 = vmul.f32 %v6334_v36, %v6332_v27  ;;  %v6336_v44 = vsub.f32 %v6040_v22, %v6335_v42 }
0x2130   :  { %v6338_v46 = vsub.f32 %v6041_v52, %v6337_v33  ;;  %v6339_v15 = vmul.f32 %v6336_v44, %v6336_v44 }
0x2132   :  { %v6340_v48 = vmul.f32 %v6338_v46, %v6338_v46 }
0x2134   :  { %v6341_v49 = vadd.f32 %v6340_v48, %v6339_v15 }
0x2136   :  { %v6342_v50 = vsel %vm2159_vm13, %v6341_v49, 0.0 }
0x2137   :  { %6343 = vadd.xlane.f32.xlu0 %v6342_v50 }
0x21c4   :  { %v6344_v24 = vpop.xlane.xlu0 %6343 }
0x21c5   :  { %v6345_v23 = vrot.slane %v6344_v24, 4 }
0x21c7   :  { %v6346_v45 = vadd.f32 %v6345_v23, %v6344_v24 }
0x21c9   :  { %v6347_v54 = vrot.slane %v6346_v45, 2 }
0x21cb   :  { %v6348_v55 = vadd.f32 %v6347_v54, %v6346_v45 }
0x21cd   :  { %v6349_v56 = vrot.slane %v6348_v55, 1 }
0x21cf   :  { %v6350_v57 = vadd.f32 %v6349_v56, %v6348_v55 }
0x21d1   :  { %8742 = vpush %v6350_v57 }
0x2202   :  { %s8743_s19 = spop %8742 }
0x2203   :  { %v6352_v16 = vstv %s8743_s19  ;;  %s9036_s19 = smov 20  }
0x2204   :  { %8840 = vrsqrt.f32 %v6352_v16  ;;  %vm6355_vm10 = vcmp.eq.f32.partialorder %v6352_v16, inf  ;;  %v6358_v60 = vand.u32 2147483648, %v6352_v16  ;;  %vm6357_vm12 = vcmp.eq.f32.partialorder %v6352_v16, 0.0 }
0x220e   :  { %v8841_v58 = vpop.eup %8840 }
0x220f   :  { %v6354_v59 = vmul.f32 %v8841_v58, %v6352_v16 }
0x2211   :  { %v6356_v61 = vsel %vm6355_vm10, %v6352_v16, %v6354_v59 }
0x2212   :  { %v6359_v31 = vsel %vm6357_vm12, %v6358_v60, %v6356_v61 }
0x2213   :  { %8744 = vpush %v6359_v31 }
0x2244   :  { %s8745_s21 = spop %8744 }
0x2245   :  { %s7873_s22 = sadd.f32 -1.0, %s8745_s21 }
0x2247   :  { %s6362_s2 = smax.f32 %s9034_s4, %s7873_s22 }
0x2248   :  { %s6363_s13 = sadd.f32 1.0, %s6362_s2 }
0x224a   :  { %v6364_v63 = vstv %s6363_s13 }
0x224b   :  { %8842 = vrcp.f32 %v6364_v63 }
0x2255   :  { %v8843_v62 = vpop.eup %8842 }
0x2256   :  { %8746 = vpush %v8843_v62 }
0x2287   :  { %s8747_s20 = spop %8746 }
0x2288   :  { %v6367_v38 = vstv %s8747_s20 }
0x2289   :  { %v9947_v1 = vmul.f32 %v6367_v38, %v6338_v46  ;;  %v9955_v2 = vmul.f32 %v6367_v38, %v6336_v44 }
0x228b   :  { %8527 = vmatpush3.xpose.msk.msra.mxu1 %vm1862_vm11, %v9947_v1  ;;  %8537 = vmatpush3.xpose.msk.msra.mxu0 %vm1862_vm11, %v9947_v1 }
0x228c   :  { %8531 = vmatprep.subr.mxu1 %v9021_v4  ;;  %8546 = vmatprep.subr.mxu0 %v9021_v4 }
0x228e   :  { %8529 = vmatmul.mubr.msk.f32.vlgmr.msra.gmra.mrb[70].mxu1 %vm1862_vm11, %v9787_v12  ;;  %8539 = vmatmul.mubr.msk.f32.vlgmr.msra.gmra.mrb[50].mxu0 %vm1862_vm11, %v9771_v0 }
0x228f   :  { %8532 = vmatpush3.xpose.msk.msra.mxu1 %vm1862_vm11, %v9955_v2  ;;  %8533 = vmatprep.mubr.msk.f32.mxu1 %vm9020_vm0, %v9021_v4 }
0x2290   :  { %8541 = vmatprep.subr.mxu1 %v9021_v4  ;;  %8548 = vmatprep.mubr.msk.f32.mxu0 %vm9020_vm0, %v9021_v4 }
0x2296   :  { %8534 = vmatmul.mubr.msk.f32.vlgmr.msra.gmra.mrb[70].mxu1 %vm1862_vm11, %v9771_v0 }
0x2297   :  { %8542 = vmatpush3.xpose.msk.msra.mxu1 %vm1862_vm11, %v9955_v2  ;;  %8543 = vmatprep.mubr.msk.f32.mxu1 %vm9020_vm0, %v9021_v4 }
0x2298   :  { %8556 = vmatprep.subr.mxu1 %v9021_v4 }
0x229a   :  { %8544 = vmatmul.mubr.msk.f32.vlgmr.msra.gmra.mrb[72].mxu1 %vm1862_vm11, %v9787_v12 }
0x229b   :  { %8558 = vmatprep.mubr.msk.f32.mxu1 %vm9020_vm0, %v9021_v4 }
0x2361   :  { %v6582_v3 = vpop.f32.mrb[50].mxu0 }
0x2362   :  { %v8540_v6 = vpop.f32.mrb[51].mxu0 }
0x2369   :  { %v6512_v7 = vpop.f32.mrb[70].mxu1 }
0x236a   :  { %v8535_v8 = vpop.f32.mrb[71].mxu1  ;;  %v6657_v14 = vmul.f32 %v6512_v7, %v6512_v7  ;;  %v6660_v12 = vmul.f32 %v9433_v47, %v6512_v7 }
0x236c   :  { %v6661_v53 = vsel %vm2159_vm13, %v6660_v12, 0.0 }
0x236d   :  { %v6652_v10 = vpop.f32.mrb[72].mxu1 }
0x236e   :  { %v6656_v11 = vsub.f32 %v6582_v3, %v6652_v10  ;;  %v8545_v5 = vpop.f32.mrb[73].mxu1 }
0x2370   :  { %v6658_v51 = vmul.f32 %v6656_v11, %v6656_v11  ;;  %v6664_v22 = vmul.f32 %v9433_v47, %v6656_v11 }
0x2372   :  { %v6659_v17 = vadd.f32 %v6658_v51, %v6657_v14  ;;  %v6665_v52 = vsel %vm2159_vm13, %v6664_v22, 0.0  ;;  %v4500_v22 = vmul.f32 %v4498_v29, %v9819_v43 }
0x2374   :  { %v6672_v19 = vsel %vm2159_vm13, %v6659_v17, 0.0  ;;  %v6668_v20 = vmul.f32 %v9433_v47, %v6659_v17 }
0x2375   :  { %6673 = vadd.xlane.f32.xlu0 %v6672_v19 }
0x2376   :  { %v6669_v21 = vsel %vm2159_vm13, %v6668_v20, 0.0 }
0x2379   :  { %6670 = vadd.xlane.f32.xlu0 %v6669_v21 }
0x237d   :  { %6662 = vadd.xlane.f32.xlu0 %v6661_v53 }
0x2381   :  { %6666 = vadd.xlane.f32.xlu0 %v6665_v52 }
0x2402   :  { %v6674_v26 = vpop.xlane.xlu0 %6673 }
0x2403   :  { %v6675_v28 = vadd.f32 1.0, %v6674_v26 }
0x2405   :  { %8844 = vrcp.f32 %v6675_v28 }
0x2406   :  { %v6671_v30 = vpop.xlane.xlu0 %6670 }
0x2407   :  { %v6679_v13 = vsub.f32 %v6674_v26, %v6671_v30 }
0x2409   :  { %v6680_v32 = vadd.f32 1.0, %v6679_v13 }
0x240a   :  { %v6663_v34 = vpop.xlane.xlu0 %6662 }
0x240b   :  { %8846 = vrcp.f32 %v6680_v32 }
0x240e   :  { %v6667_v35 = vpop.xlane.xlu0 %6666 }
0x240f   :  { %v8845_v36 = vpop.eup %8844 }
0x2410   :  { %v6677_v37 = vmul.f32 %v8845_v36, %v6663_v34  ;;  %v6678_v40 = vmul.f32 %v8845_v36, %v6667_v35 }
0x2412   :  { %v6683_v41 = vmul.f32 %v6677_v37, %v6677_v37  ;;  %v6684_v27 = vmul.f32 %v6678_v40, %v6678_v40 }
0x2414   :  { %v6685_v33 = vadd.f32 %v6684_v27, %v6683_v41 }
0x2415   :  { %v8847_v42 = vpop.eup %8846 }
0x2416   :  { %v6682_v47 = vmul.f32 %v8847_v42, %v6675_v28 }
0x2418   :  { %v9986_v44 = vmul.f32 %v6682_v47, %v6678_v40  ;;  %v6686_v46 = vmul.f32 %v6685_v33, %v6682_v47  ;;  %v6978_v15 = vmul.f32 %v6682_v47, %v6677_v37 }
0x241a   :  { %v6981_v48 = vmul.f32 %v9986_v44, %v9783_v9  ;;  %v6688_v49 = vmul.f32 %v6686_v46, %v9783_v9  ;;  %v6988_v50 = vmul.f32 %v6978_v15, %v9783_v9  ;;  %v6687_v23 = vmul.f32 %v6686_v46, %v9771_v0 }
0x241b   :  { %v6980_v60 = vmul.f32 %v6978_v15, %v9771_v0  ;;  %v6987_v3 = vmul.f32 %v9986_v44, %v9771_v0 }
0x241c   :  { %6983 = vrot.lane.b32.xlu1 %v6981_v48, %s9033_s25  ;;  %6690 = vrot.lane.b32.xlu0 %v6688_v49, %s9033_s25 }
0x2420   :  { %6990 = vrot.lane.b32.xlu0 %v6988_v50, %s9033_s25  ;;  %s7898_s25 = sld [smem:[#allocation16 + $0x2]] }
0x2426   :  { %v7286_v7 = vstv %s7898_s25 }
0x248e   :  { %v6691_v24 = vpop.permute.xlu0 %6690  ;;  %v6984_v58 = vpop.permute.xlu1 %6983 }
0x248f   :  { %8547 = vmatpush3.msk.msra.mxu0 %vm2227_vm14, %v6691_v24  ;;  %8557 = vmatpush3.msk.msra.mxu1 %vm2227_vm14, %v6691_v24  ;;  %v10053_v63 = vsub.f32 %v6980_v60, %v6984_v58 }
0x2490   :  { %8549 = vmatmul.mubr.msk.f32.vlgmr.msra.gmra.mrb[52].mxu0 %vm1862_vm11, %v9836_v18  ;;  %8551 = vmatprep.subr.mxu0 %v9021_v4 }
0x2491   :  { %8559 = vmatmul.mubr.msk.f32.vlgmr.msra.gmra.mrb[74].mxu1 %vm1862_vm11, %v9855_v25  ;;  %8561 = vmatprep.subr.mxu1 %v9021_v4 }
0x2492   :  { %8552 = vmatpush3.msk.msra.mxu0 %vm2227_vm14, %v6687_v23  ;;  %8562 = vmatpush3.msk.msra.mxu1 %vm2227_vm14, %v6687_v23  ;;  %v6991_v38 = vpop.permute.xlu0 %6990 }
0x2493   :  { %8563 = vmatprep.mubr.msk.f32.mxu1 %vm9020_vm0, %v9021_v4  ;;  %8553 = vmatprep.mubr.msk.f32.mxu0 %vm9020_vm0, %v9021_v4  ;;  %v10058_v8 = vadd.f32 %v6991_v38, %v6987_v3 }
0x2494   :  { %8571 = vmatprep.subr.mxu1 %v9021_v4  ;;  %8566 = vmatprep.subr.mxu0 %v9021_v4 }
0x2495   :  { %8564 = vmatmul.mubr.msk.f32.vlgmr.msra.gmra.mrb[76].mxu1 %vm1862_vm11, %v9836_v18 }
0x2496   :  { %8573 = vmatprep.mubr.msk.f32.mxu1 %vm9020_vm0, %v9021_v4 }
0x2498   :  { %8554 = vmatmul.mubr.msk.f32.vlgmr.msra.gmra.mrb[52].mxu0 %vm1862_vm11, %v9855_v25 }
0x2499   :  { %8568 = vmatprep.mubr.msk.f32.mxu0 %vm9020_vm0, %v9021_v4 }
0x2564   :  { %v6903_v9 = vpop.f32.mrb[74].mxu1 }
0x2565   :  { %v8560_v45 = vpop.f32.mrb[75].mxu1 }
0x2568   :  { %v6973_v54 = vpop.f32.mrb[76].mxu1 }
0x2569   :  { %v10020_v55 = vsub.f32 %v6903_v9, %v6973_v54  ;;  %v8565_v56 = vpop.f32.mrb[77].mxu1 }
0x256b   :  { %8572 = vmatpush3.msk.msra.mxu1 %vm2227_vm14, %v10020_v55  ;;  %v6833_v57 = vpop.f32.mrb[52].mxu0 }
0x256c   :  { %8574 = vmatmul.mubr.msk.f32.vlgmr.msra.gmra.mrb[78].mxu1 %vm1862_vm11, %v9947_v1  ;;  %8586 = vmatprep.subr.mxu1 %v9021_v4  ;;  %v8555_v18 = vpop.f32.mrb[53].mxu0 }
0x256d   :  { %8567 = vmatpush3.msk.msra.mxu0 %vm2227_vm14, %v6833_v57  ;;  %8587 = vmatpush3.msk.msra.mxu1 %vm2227_vm14, %v6833_v57 }
0x256e   :  { %8569 = vmatmul.mubr.msk.f32.vlgmr.msra.gmra.mrb[54].mxu0 %vm1862_vm11, %v9955_v2  ;;  %8576 = vmatprep.subr.mxu0 %v9021_v4 }
0x256f   :  { %8577 = vmatpush3.msk.msra.mxu0 %vm2227_vm14, %v6833_v57  ;;  %8578 = vmatprep.mubr.msk.f32.mxu0 %vm9020_vm0, %v9021_v4 }
0x2570   :  { %8581 = vmatprep.subr.mxu0 %v9021_v4  ;;  %8588 = vmatprep.mubr.msk.f32.mxu1 %vm9020_vm0, %v9021_v4 }
0x2571   :  { %8591 = vmatprep.subr.mxu1 %v9021_v4 }
0x2572   :  { %8579 = vmatmul.mubr.msk.f32.vlgmr.msra.gmra.mrb[56].mxu0 %vm1862_vm11, %v9947_v1 }
0x2573   :  { %8582 = vmatpush3.msk.msra.mxu0 %vm2227_vm14, %v10020_v55  ;;  %8583 = vmatprep.mubr.msk.f32.mxu0 %vm9020_vm0, %v9021_v4 }
0x2574   :  { %8596 = vmatprep.subr.mxu0 %v9021_v4 }
0x257a   :  { %8584 = vmatmul.mubr.msk.f32.vlgmr.msra.gmra.mrb[56].mxu0 %vm1862_vm11, %v9955_v2 }
0x257b   :  { %8597 = vmatpush3.msk.msra.mxu0 %vm2227_vm14, %v6833_v57  ;;  %8598 = vmatprep.mubr.msk.f32.mxu0 %vm9020_vm0, %v9021_v4 }
0x257c   :  { %8601 = vmatprep.subr.mxu0 %v9021_v4 }
0x263f   :  { %v7136_v25 = vpop.f32.mrb[78].mxu1 }
0x2640   :  { %v8575_v16 = vpop.f32.mrb[79].mxu1 }
0x2641   :  { %v7063_v59 = vpop.f32.mrb[54].mxu0 }
0x2642   :  { %v7140_v61 = vsub.f32 %v7063_v59, %v7136_v25  ;;  %v8570_v31 = vpop.f32.mrb[55].mxu0 }
0x2644   :  { %v7281_v62 = vsub.f32 %v7140_v61, %v10053_v63 }
0x2646   :  { %v7282_v6 = vmul.f32 2.0, %v7281_v62 }
0x2648   :  { %v7287_v5 = vmul.f32 %v7286_v7, %v7282_v6 }
0x264a   :  { %v7288_v19 = vsub.f32 %v9955_v2, %v7287_v5 }
0x264c   :  { %v7291_v12 = vmul.f32 %v7288_v19, %v7288_v19 }
0x264d   :  { %v7277_v10 = vpop.f32.mrb[56].mxu0 }
0x264e   :  { %v7283_v11 = vsub.f32 %v7277_v10, %v10058_v8  ;;  %v8585_v14 = vpop.f32.mrb[57].mxu0 }
0x2650   :  { %v7284_v51 = vmul.f32 2.0, %v7283_v11 }
0x2652   :  { %v7289_v17 = vmul.f32 %v7286_v7, %v7284_v51 }
0x2654   :  { %v7290_v20 = vsub.f32 %v9947_v1, %v7289_v17 }
0x2656   :  { %v7292_v21 = vmul.f32 %v7290_v20, %v7290_v20 }
0x2658   :  { %v7293_v53 = vadd.f32 %v7292_v21, %v7291_v12 }
0x265a   :  { %v7294_v0 = vsel %vm2159_vm13, %v7293_v53, 0.0 }
0x265b   :  { %7295 = vadd.xlane.f32.xlu0 %v7294_v0 }
0x2671   :  { %4503 = vrot.lane.b32.xlu0 %v4500_v22, %s9032_s24 }
0x26e8   :  { %v7296_v52 = vpop.xlane.xlu0 %7295 }
0x26e9   :  { %v7297_v26 = vrot.slane %v7296_v52, 4 }
0x26eb   :  { %v7298_v28 = vadd.f32 %v7297_v26, %v7296_v52 }
0x26ec   :  { %v4504_v30 = vpop.permute.xlu0 %4503 }
0x26ed   :  { %v7299_v13 = vrot.slane %v7298_v28, 2  ;;  %4507 = vst.msk [vmem:[#allocation4] sm:$0xf] %vm4506_vm15, %v4504_v30 }
0x26ef   :  { %v7300_v1 = vadd.f32 %v7299_v13, %v7298_v28 }
0x26f1   :  { %v7301_v2 = vrot.slane %v7300_v1, 1 }
0x26f3   :  { %v7302_v32 = vadd.f32 %v7301_v2, %v7300_v1 }
0x26f4   :  { %v4511_v34 = vld [vmem:[#allocation4] sm:$0x1]  ;;  %v4518_v29 = vld [vmem:[#allocation4 + $0x1] sm:$0x1]  ;;  %v4532_v35 = vld [vmem:[#allocation4 + $0x2] sm:$0x1] }
0x26f5   :  { %8748 = vpush %v7302_v32  ;;  %4513 = vrot.lane.b32.xlu0 %v4511_v34, %s9035_s10  ;;  %v4508_v43 = vld [vmem:[#allocation4] sm:$0x1]  ;;  %v4546_v36 = vld [vmem:[#allocation4 + $0x3] sm:$0x1]  ;;  %v4525_v22 = vld [vmem:[#allocation4 + $0x1] sm:$0x1] }
0x26f6   :  { %4510 = vst.msk [vmem:[%s10178_s9] sm:$0x1] %vm4509_vm1, %v4508_v43  ;;  %v4539_v52 = vld [vmem:[#allocation4 + $0x2] sm:$0x1]  ;;  %v4553_v26 = vld [vmem:[#allocation4 + $0x3] sm:$0x1] }
0x26f9   :  { %4520 = vrot.lane.b32.xlu0 %v4518_v29, %s9032_s24 }
0x26fd   :  { %4534 = vrot.lane.b32.xlu0 %v4532_v35, %s9012_s12 }
0x2701   :  { %4548 = vrot.lane.b32.xlu0 %v4546_v36, %s9035_s10 }
0x2726   :  { %s8749_s6 = spop %8748 }
0x2727   :  { %v7304_v37 = vstv %s8749_s6 }
0x2728   :  { %8848 = vrsqrt.f32 %v7304_v37  ;;  %vm7307_vm2 = vcmp.eq.f32.partialorder %v7304_v37, inf  ;;  %v7310_v27 = vand.u32 2147483648, %v7304_v37  ;;  %vm7309_vm3 = vcmp.eq.f32.partialorder %v7304_v37, 0.0 }
0x2732   :  { %v8849_v40 = vpop.eup %8848 }
0x2733   :  { %v7306_v41 = vmul.f32 %v8849_v40, %v7304_v37 }
0x2735   :  { %v7308_v42 = vsel %vm7307_vm2, %v7304_v37, %v7306_v41 }
0x2736   :  { %v7311_v47 = vsel %vm7309_vm3, %v7310_v27, %v7308_v42 }
0x2737   :  { %8750 = vpush %v7311_v47 }
0x2767   :  { %v4514_v33 = vpop.permute.xlu0 %4513 }
0x2768   :  { %4517 = vst.msk [vmem:[%s10178_s9] sm:$0x1] %vm4516_vm4, %v4514_v33  ;;  %s8751_s27 = spop %8750 }
0x2769   :  { %s7899_s7 = sadd.f32 -1.0, %s8751_s27 }
0x276b   :  { %s7314_s8 = smax.f32 %s9034_s4, %s7899_s7  ;;  %v4521_v44 = vpop.permute.xlu0 %4520 }
0x276c   :  { %s7315_s0 = sadd.f32 1.0, %s7314_s8  ;;  %4524 = vst.msk [vmem:[%s10178_s9] sm:$0x1] %vm4523_vm5, %v4521_v44 }
0x276e   :  { %v7316_v46 = vstv %s7315_s0 }
0x276f   :  { %8850 = vrcp.f32 %v7316_v46  ;;  %v4535_v30 = vpop.permute.xlu0 %4534 }
0x2773   :  { %v4549_v34 = vpop.permute.xlu0 %4548 }
0x2779   :  { %v8851_v15 = vpop.eup %8850 }
0x277a   :  { %8752 = vpush %v8851_v15 }
0x27ab   :  { %s8753_s29 = spop %8752 }
0x27ac   :  { %v7319_v48 = vstv %s8753_s29 }
0x27ad   :  { %v7320_v49 = vmul.f32 %v7319_v48, %v7288_v19  ;;  %v7321_v50 = vmul.f32 %v7319_v48, %v7290_v20 }
0x27af   :  { %8589 = vmatmul.mubr.msk.f32.vlgmr.msra.gmra.mrb[80].mxu1 %vm1862_vm11, %v7320_v49  ;;  %8599 = vmatmul.mubr.msk.f32.vlgmr.msra.gmra.mrb[58].mxu0 %vm1862_vm11, %v7321_v50 }
0x27b0   :  { %8592 = vmatpush3.msk.msra.mxu1 %vm2227_vm14, %v10020_v55  ;;  %8602 = vmatpush3.msk.msra.mxu0 %vm2227_vm14, %v10020_v55  ;;  %vm4530_vm14 = vcmask 188576  }
0x27b1   :  { %8593 = vmatprep.mubr.msk.f32.mxu1 %vm9020_vm0, %v9021_v4  ;;  %8603 = vmatprep.mubr.msk.f32.mxu0 %vm9020_vm0, %v9021_v4 }
0x27b3   :  { %8594 = vmatmul.mubr.msk.f32.vlgmr.msra.gmra.mrb[82].mxu1 %vm1862_vm11, %v7321_v50 }
0x27b7   :  { %8604 = vmatmul.mubr.msk.f32.vlgmr.msra.gmra.mrb[58].mxu0 %vm1862_vm11, %v7320_v49 }
0x2882   :  { %v7391_v24 = vpop.f32.mrb[80].mxu1 }
0x2883   :  { %v8590_v23 = vpop.f32.mrb[81].mxu1 }
0x2886   :  { %v7464_v9 = vpop.f32.mrb[82].mxu1 }
0x2887   :  { %v7468_v45 = vsub.f32 %v7391_v24, %v7464_v9  ;;  %v8595_v54 = vpop.f32.mrb[83].mxu1 }
0x2889   :  { %v7609_v56 = vsub.f32 %v7468_v45, %v10053_v63 }
0x288a   :  { %v7605_v57 = vpop.f32.mrb[58].mxu0 }
0x288b   :  { %v7610_v18 = vmul.f32 2.0, %v7609_v56  ;;  %v7611_v55 = vsub.f32 %v7605_v57, %v10058_v8  ;;  %v8605_v25 = vpop.f32.mrb[59].mxu0 }
0x288d   :  { %v7612_v16 = vmul.f32 2.0, %v7611_v55  ;;  %v7615_v58 = vmul.f32 %v7610_v18, %v9814_v39 }
0x288f   :  { %v7617_v4 = vmul.f32 %v7612_v16, %v9814_v39  ;;  %v7616_v59 = vsub.f32 %v7320_v49, %v7615_v58 }
0x2891   :  { %v7618_v60 = vsub.f32 %v7321_v50, %v7617_v4  ;;  %v7619_v61 = vmul.f32 %v7616_v59, %v7616_v59 }
0x2893   :  { %v7620_v31 = vmul.f32 %v7618_v60, %v7618_v60 }
0x2895   :  { %v7621_v62 = vadd.f32 %v7620_v31, %v7619_v61 }
0x2897   :  { %v7622_v38 = vsel %vm2159_vm13, %v7621_v62, 0.0 }
0x2898   :  { %7623 = vadd.xlane.f32.xlu1 %v7622_v38 }
0x2925   :  { %v7624_v3 = vpop.xlane.xlu1 %7623 }
0x2926   :  { %v7625_v63 = vrot.slane %v7624_v3, 4 }
0x2928   :  { %v7626_v6 = vadd.f32 %v7625_v63, %v7624_v3 }
0x292a   :  { %v7627_v7 = vrot.slane %v7626_v6, 2 }
0x292c   :  { %v7628_v10 = vadd.f32 %v7627_v7, %v7626_v6 }
0x292e   :  { %v7629_v8 = vrot.slane %v7628_v10, 1 }
0x2930   :  { %v7630_v11 = vadd.f32 %v7629_v8, %v7628_v10 }
0x2932   :  { %8754 = vpush %v7630_v11 }
0x2963   :  { %s8755_s30 = spop %8754 }
0x2964   :  { %v7632_v5 = vstv %s8755_s30 }
0x2965   :  { %8852 = vrsqrt.f32 %v7632_v5  ;;  %vm7635_vm0 = vcmp.eq.f32.partialorder %v7632_v5, inf  ;;  %v7638_v51 = vand.u32 2147483648, %v7632_v5  ;;  %vm7637_vm11 = vcmp.eq.f32.partialorder %v7632_v5, 0.0 }
0x296f   :  { %v8853_v39 = vpop.eup %8852 }
0x2970   :  { %v7634_v14 = vmul.f32 %v8853_v39, %v7632_v5 }
0x2972   :  { %v7636_v17 = vsel %vm7635_vm0, %v7632_v5, %v7634_v14 }
0x2973   :  { %v7639_v19 = vsel %vm7637_vm11, %v7638_v51, %v7636_v17 }
0x2974   :  { %8756 = vpush %v7639_v19 }
0x29a5   :  { %s8757_s11 = spop %8756 }
0x29a6   :  { %s7909_s3 = sadd.f32 -1.0, %s8757_s11 }
0x29a8   :  { %s7642_s16 = smax.f32 %s9034_s4, %s7909_s3  ;;  %s9037_s4 = smov 24  }
0x29a9   :  { %s7643_s17 = sadd.f32 1.0, %s7642_s16 }
0x29ab   :  { %v7644_v20 = vstv %s7643_s17 }
0x29ac   :  { %8854 = vrcp.f32 %v7644_v20 }
0x29b6   :  { %v8855_v12 = vpop.eup %8854 }
0x29b7   :  { %8758 = vpush %v8855_v12 }
0x29e8   :  { %s8759_s18 = spop %8758 }
0x29e9   :  { %v7647_v21 = vstv %s8759_s18 }
0x29ea   :  { %v7648_v53 = vmul.f32 %v7647_v21, %v7616_v59  ;;  %v7649_v0 = vmul.f32 %v7647_v21, %v7618_v60 }
0x29ec   :  { %7651 = vst.msk [vmem:[#allocation4 + $0x4] sm:$0xf] %vm2159_vm13, %v7648_v53  ;;  %7653 = vrot.lane.b32.xlu1 %v7649_v0, %s9032_s24  ;;  %vm4544_vm13 = vcmask 221376  }
0x29f0   :  { %4527 = vrot.lane.b32.xlu1 %v4525_v22, %s9015_s14 }
0x29f4   :  { %4541 = vrot.lane.b32.xlu1 %v4539_v52, %s9036_s19 }
0x29f8   :  { %4555 = vrot.lane.b32.xlu1 %v4553_v26, %s9037_s4 }
0x2a5e   :  { %v7654_v28 = vpop.permute.xlu1 %7653 }
0x2a5f   :  { %7656 = vst.msk [vmem:[#allocation4 + $0x4] sm:$0xf] %vm4506_vm15, %v7654_v28 }
0x2a62   :  { %v4528_v13 = vpop.permute.xlu1 %4527 }
0x2a63   :  { %4531 = vst.msk [vmem:[%s10178_s9] sm:$0x1] %vm4530_vm14, %v4528_v13 }
0x2a64   :  { %4538 = vst.msk [vmem:[%s10178_s9] sm:$0x1] %vm4537_vm6, %v4535_v30 }
0x2a66   :  { %v4542_v1 = vpop.permute.xlu1 %4541  ;;  %v7665_v2 = vld [vmem:[#allocation4 + $0x5] sm:$0x1]  ;;  %v7659_v32 = vld [vmem:[#allocation4 + $0x4] sm:$0x1]  ;;  %v7677_v35 = vld [vmem:[#allocation4 + $0x6] sm:$0x1] }
0x2a67   :  { %4545 = vst.msk [vmem:[%s10178_s9] sm:$0x1] %vm4544_vm13, %v4542_v1  ;;  %7667 = vrot.lane.b32.xlu1 %v7665_v2, %s9032_s24  ;;  %7661 = vrot.lane.b32.xlu0 %v7659_v32, %s9035_s10  ;;  %v7657_v43 = vld [vmem:[#allocation4 + $0x4] sm:$0x1]  ;;  %v7671_v36 = vld [vmem:[#allocation4 + $0x5] sm:$0x1] }
0x2a68   :  { %4552 = vst.msk [vmem:[%s10178_s9] sm:$0x1] %vm4551_vm7, %v4549_v34  ;;  %v7689_v37 = vld [vmem:[#allocation4 + $0x7] sm:$0x1]  ;;  %v7683_v40 = vld [vmem:[#allocation4 + $0x6] sm:$0x1] }
0x2a69   :  { %7658 = vst.msk [vmem:[%s10178_s9 + $0x1] sm:$0x1] %vm4509_vm1, %v7657_v43  ;;  %v7695_v41 = vld [vmem:[#allocation4 + $0x7] sm:$0x1] }
0x2a6a   :  { %v4556_v29 = vpop.permute.xlu1 %4555 }
0x2a6b   :  { %4559 = vst.msk [vmem:[%s10178_s9] sm:$0x1] %vm4558_vm8, %v4556_v29  ;;  %7679 = vrot.lane.b32.xlu1 %v7677_v35, %s9012_s12  ;;  %7673 = vrot.lane.b32.xlu0 %v7671_v36, %s9015_s14 }
0x2a6f   :  { %7691 = vrot.lane.b32.xlu1 %v7689_v37, %s9035_s10  ;;  %7685 = vrot.lane.b32.xlu0 %v7683_v40, %s9036_s19 }
0x2a73   :  { %7697 = vrot.lane.b32.xlu0 %v7695_v41, %s9037_s4 }
0x2ad9   :  { %v7668_v27 = vpop.permute.xlu1 %7667  ;;  %v7662_v42 = vpop.permute.xlu0 %7661 }
0x2ada   :  { %7664 = vst.msk [vmem:[%s10178_s9 + $0x1] sm:$0x1] %vm4516_vm4, %v7662_v42 }
0x2adb   :  { %7670 = vst.msk [vmem:[%s10178_s9 + $0x1] sm:$0x1] %vm4523_vm5, %v7668_v27 }
0x2add   :  { %v7680_v47 = vpop.permute.xlu1 %7679  ;;  %v7674_v33 = vpop.permute.xlu0 %7673 }
0x2ade   :  { %7676 = vst.msk [vmem:[%s10178_s9 + $0x1] sm:$0x1] %vm4530_vm14, %v7674_v33 }
0x2adf   :  { %7682 = vst.msk [vmem:[%s10178_s9 + $0x1] sm:$0x1] %vm4537_vm6, %v7680_v47 }
0x2ae1   :  { %v7692_v44 = vpop.permute.xlu1 %7691  ;;  %v7686_v46 = vpop.permute.xlu0 %7685 }
0x2ae2   :  { %7688 = vst.msk [vmem:[%s10178_s9 + $0x1] sm:$0x1] %vm4544_vm13, %v7686_v46 }
0x2ae3   :  { %7694 = vst.msk [vmem:[%s10178_s9 + $0x1] sm:$0x1] %vm4551_vm7, %v7692_v44 }
0x2ae5   :  { %v7698_v15 = vpop.permute.xlu0 %7697 }
0x2ae6   :  { %7700 = vst.msk [vmem:[%s10178_s9 + $0x1] sm:$0x1] %vm4558_vm8, %v7698_v15 }
0x2ae7   :  { %7705 = vsyncpa [#allocation6], 1 }
0x2ae8   :  { %7706 = vsyncpa [#allocation9], 1 }
0x2ae9   :  { %7707 = vsyncpa [#allocation12], 1 }
0x2aea   :  { %7708 = vsyncpa [#allocation15], 1 }
0x2aeb   :  { %7709 = vsyncpa [#allocation7], 1 }

</bundles_post_ra>
